<compile_context>
chip_gen: v7x
topology: tpu7x:2x2x1
jax: 0.10.0
libtpu: 0.0.40
codegen_flags: <defaults>
</compile_context>

<pallas_src>
import functools
import math

import jax
import jax.numpy as jnp
from jax import lax
from jax.experimental import pallas as pl
from jax.experimental.pallas import tpu as pltpu

_LANE = 128
_MAX_ROW_TILE = 512  # rows per grid step (multiple of 16), per perf review


def _round_up(x, m):
    return (x + m - 1) // m * m


def _pick_row_tile(m, max_tile=_MAX_ROW_TILE):
    m16 = _round_up(m, 16)
    return m16 if m16 <= max_tile else max_tile


# ---------------------------------------------------------------------------
# Pallas kernels
# ---------------------------------------------------------------------------

def _linear_kernel(x_ref, w_ref, b_ref, o_ref, *, relu):
    """Fused  y = [relu](x @ w + b)  for one row tile. bf16 matmul, f32 accum."""
    y = jnp.dot(x_ref[...], w_ref[...],
                preferred_element_type=jnp.float32) + b_ref[...]
    if relu:
        y = jnp.maximum(y, 0.0)
    o_ref[...] = y.astype(o_ref.dtype)


def _head_kernel(x_ref, w4_ref, b4_ref, w5_ref, b5_ref, w6_ref, b6_ref, o_ref):
    """Fused conv4-as-dense + fc1 + fc2 head:
       relu(x@W4+b4) -> relu(@W5+b5) -> @W6+b6 ."""
    h = jnp.dot(x_ref[...], w4_ref[...],
                preferred_element_type=jnp.float32) + b4_ref[...]
    h = jnp.maximum(h, 0.0).astype(jnp.bfloat16)
    h = jnp.dot(h, w5_ref[...],
                preferred_element_type=jnp.float32) + b5_ref[...]
    h = jnp.maximum(h, 0.0).astype(jnp.bfloat16)
    q = jnp.dot(h, w6_ref[...],
                preferred_element_type=jnp.float32) + b6_ref[...]
    o_ref[...] = q.astype(o_ref.dtype)


# ---------------------------------------------------------------------------
# pallas_call wrappers
# ---------------------------------------------------------------------------

def _pallas_linear(x2d, w, b, *, relu):
    """x2d: (M, K) bf16, w: (K, N) bf16, b: (1, N) f32 -> (M, N) f32."""
    m, k = x2d.shape
    n = w.shape[1]
    n_pad = _round_up(n, _LANE)
    tm = _pick_row_tile(m)
    m_pad = _round_up(m, tm)

    if m_pad != m:
        x2d = jnp.pad(x2d, ((0, m_pad - m), (0, 0)))
    if n_pad != n:
        w = jnp.pad(w, ((0, 0), (0, n_pad - n)))
        b = jnp.pad(b, ((0, 0), (0, n_pad - n)))

    grid = (m_pad // tm,)
    cost = pl.CostEstimate(
        flops=2 * m_pad * k * n_pad,
        transcendentals=0,
        bytes_accessed=2 * m_pad * k + 2 * k * n_pad + 4 * m_pad * n_pad)

    out = pl.pallas_call(
        functools.partial(_linear_kernel, relu=relu),
        out_shape=jax.ShapeDtypeStruct((m_pad, n_pad), jnp.float32),
        grid=grid,
        in_specs=[
            pl.BlockSpec((tm, k), lambda i: (i, 0)),       # activations: tiled
            pl.BlockSpec((k, n_pad), lambda i: (0, 0)),    # weights: resident
            pl.BlockSpec((1, n_pad), lambda i: (0, 0)),    # bias: resident
        ],
        out_specs=pl.BlockSpec((tm, n_pad), lambda i: (i, 0)),
        compiler_params=pltpu.CompilerParams(
            dimension_semantics=("parallel",),
            vmem_limit_bytes=32 * 1024 * 1024),
        cost_estimate=cost,
    )(x2d, w, b)
    return out[:m, :n]


def _pallas_head(x2d, w4, b4, w5, b5, w6, b6):
    """x2d: (B, 3136) bf16 -> Q-values (B, num_actions) f32 (conv4+fc1+fc2)."""
    m, k = x2d.shape
    h1 = w4.shape[1]
    h2 = w5.shape[1]
    n = w6.shape[1]
    n_pad = _round_up(n, _LANE)
    tm = _pick_row_tile(m)
    m_pad = _round_up(m, tm)

    if m_pad != m:
        x2d = jnp.pad(x2d, ((0, m_pad - m), (0, 0)))
    if n_pad != n:
        w6 = jnp.pad(w6, ((0, 0), (0, n_pad - n)))
        b6 = jnp.pad(b6, ((0, 0), (0, n_pad - n)))

    grid = (m_pad // tm,)
    cost = pl.CostEstimate(
        flops=2 * m_pad * (k * h1 + h1 * h2 + h2 * n_pad),
        transcendentals=0,
        bytes_accessed=2 * (m_pad * k + k * h1 + h1 * h2 + h2 * n_pad)
        + 4 * m_pad * n_pad)

    out = pl.pallas_call(
        _head_kernel,
        out_shape=jax.ShapeDtypeStruct((m_pad, n_pad), jnp.float32),
        grid=grid,
        in_specs=[
            pl.BlockSpec((tm, k), lambda i: (i, 0)),
            pl.BlockSpec((k, h1), lambda i: (0, 0)),
            pl.BlockSpec((1, h1), lambda i: (0, 0)),
            pl.BlockSpec((h1, h2), lambda i: (0, 0)),
            pl.BlockSpec((1, h2), lambda i: (0, 0)),
            pl.BlockSpec((h2, n_pad), lambda i: (0, 0)),
            pl.BlockSpec((1, n_pad), lambda i: (0, 0)),
        ],
        out_specs=pl.BlockSpec((tm, n_pad), lambda i: (i, 0)),
        compiler_params=pltpu.CompilerParams(
            dimension_semantics=("parallel",),
            vmem_limit_bytes=32 * 1024 * 1024),
        cost_estimate=cost,
    )(x2d, w4, b4, w5, b5, w6, b6)
    return out[:m, :n]


# ---------------------------------------------------------------------------
# Conv-as-GEMM plumbing (wrapper-side im2col) and the full forward pass
# ---------------------------------------------------------------------------

def _im2col(x, kernel, stride):
    """x: (B, H, W, C) -> patches (B*OH*OW, kernel*kernel*C), order (ky, kx, c)."""
    b, h, w, c = x.shape
    oh = (h - kernel) // stride + 1
    ow = (w - kernel) // stride + 1
    cols = []
    for ky in range(kernel):
        for kx in range(kernel):
            cols.append(x[:, ky:ky + stride * (oh - 1) + 1:stride,
                          kx:kx + stride * (ow - 1) + 1:stride, :])
    patches = jnp.concatenate(cols, axis=-1)            # (B, OH, OW, k*k*C)
    return patches.reshape(b * oh * ow, kernel * kernel * c), (b, oh, ow)


@jax.jit
def cnn_dqn_forward(x, params):
    """x: (B, 3, 84, 84) f32. params: conv weights (KH,KW,IC,OC) + fc (IN,OUT),
       biases (1, OC). Returns Q-values (B, num_actions) f32."""
    (w1, b1), (w2, b2), (w3, b3), (w4, b4), (w5, b5), (w6, b6) = params
    x = x.reshape(-1, 3, 84, 84)
    a = jnp.transpose(x, (0, 2, 3, 1)).astype(jnp.bfloat16)   # NHWC, bf16 operands

    # conv1: 3 -> 32, k=8, s=4
    p, (bb, oh, ow) = _im2col(a, 8, 4)
    h = _pallas_linear(p, w1.reshape(8 * 8 * 3, 32).astype(jnp.bfloat16), b1,
                       relu=True).reshape(bb, oh, ow, 32).astype(jnp.bfloat16)

    # conv2: 32 -> 64, k=4, s=2
    p, (bb, oh, ow) = _im2col(h, 4, 2)
    h = _pallas_linear(p, w2.reshape(4 * 4 * 32, 64).astype(jnp.bfloat16), b2,
                       relu=True).reshape(bb, oh, ow, 64).astype(jnp.bfloat16)

    # conv3: 64 -> 64, k=3, s=1
    p, (bb, oh, ow) = _im2col(h, 3, 1)
    h = _pallas_linear(p, w3.reshape(3 * 3 * 64, 64).astype(jnp.bfloat16), b3,
                       relu=True).reshape(bb, oh, ow, 64).astype(jnp.bfloat16)

    # conv4 (7x7 kernel on the 7x7 map == dense on the flat map) + fc1 + fc2,
    # fused in a single Pallas kernel with all head weights VMEM-resident.
    flat = h.reshape(bb, 7 * 7 * 64)
    q = _pallas_head(flat,
                     w4.reshape(7 * 7 * 64, 512).astype(jnp.bfloat16), b4,
                     w5.astype(jnp.bfloat16), b5,
                     w6.astype(jnp.bfloat16), b6)
    return q


def init_cnn_dqn_params(key, num_actions):
    """PyTorch default init U(-1/sqrt(fan_in), 1/sqrt(fan_in)).
       Conv weights stored (KH, KW, IC, OC); fc weights (IN, OUT); bias (1, OC)."""
    conv_dims = [(8, 8, 3, 32), (4, 4, 32, 64), (3, 3, 64, 64), (7, 7, 64, 512)]
    fc_dims = [(512, 512), (512, num_actions)]
    params = []
    for kh, kw, ic, oc in conv_dims:
        key, k_w, k_b = jax.random.split(key, 3)
        bound = 1.0 / math.sqrt(kh * kw * ic)
        w = jax.random.uniform(k_w, (kh, kw, ic, oc), jnp.float32, -bound, bound)
        b = jax.random.uniform(k_b, (1, oc), jnp.float32, -bound, bound)
        params.append((w, b))
    for fin, fout in fc_dims:
        key, k_w, k_b = jax.random.split(key, 3)
        bound = 1.0 / math.sqrt(fin)
        w = jax.random.uniform(k_w, (fin, fout), jnp.float32, -bound, bound)
        b = jax.random.uniform(k_b, (1, fout), jnp.float32, -bound, bound)
        params.append((w, b))
    return params


def cnn_dqn_forward_ref(x, params):
    """Pure-JAX reference with identical operand quantization (bf16 in, f32 acc)."""
    (w1, b1), (w2, b2), (w3, b3), (w4, b4), (w5, b5), (w6, b6) = params
    dn = ("NHWC", "HWIO", "NHWC")

    def conv_relu(a, w, b, s):
        y = lax.conv_general_dilated(a, w.astype(jnp.bfloat16), (s, s), "VALID",
                                     dimension_numbers=dn,
                                     preferred_element_type=jnp.float32)
        return jnp.maximum(y + b.reshape(1, 1, 1, -1), 0.0)

    a = jnp.transpose(x.reshape(-1, 3, 84, 84), (0, 2, 3, 1)).astype(jnp.bfloat16)
    a = conv_relu(a, w1, b1, 4).astype(jnp.bfloat16)
    a = conv_relu(a, w2, b2, 2).astype(jnp.bfloat16)
    a = conv_relu(a, w3, b3, 1).astype(jnp.bfloat16)
    a = conv_relu(a, w4, b4, 1).reshape(-1, 512).astype(jnp.bfloat16)
    a = jnp.maximum(jnp.dot(a, w5.astype(jnp.bfloat16),
                            preferred_element_type=jnp.float32) + b5,
                    0.0).astype(jnp.bfloat16)
    q = jnp.dot(a, w6.astype(jnp.bfloat16),
                preferred_element_type=jnp.float32) + b6
    return q


if __name__ == "__main__":
    num_actions = 6
    batch = 2

    key = jax.random.PRNGKey(0)
    key, kx = jax.random.split(key)
    x = jax.random.normal(kx, (batch, 3, 84, 84), jnp.float32)
    params = init_cnn_dqn_params(key, num_actions)

    q = cnn_dqn_forward(x, params)
    q = jax.block_until_ready(q)

    q_ref = cnn_dqn_forward_ref(x, params)
    assert q.shape == (batch, num_actions)
    max_err = float(jnp.max(jnp.abs(q - q_ref)))
    assert jnp.allclose(q, q_ref, atol=1e-2, rtol=1e-2), (
        f"mismatch vs reference, max abs err = {max_err}")

    # Greedy action selection (`act` with epsilon=0) -- plain JAX glue.
    _ = jnp.argmax(q, axis=-1)

    print("KERNEL_OK")
</pallas_src>

<mosaic_0001>
module attributes {stable_mosaic.version = 11 : i64} {
  func.func @_linear_kernel(%arg0: i32, %arg1: memref<512x192xbf16, #tpu.memory_space<vmem>>, %arg2: memref<192x128xbf16, #tpu.memory_space<vmem>>, %arg3: memref<1x128xf32, #tpu.memory_space<vmem>>, %arg4: memref<512x128xf32, #tpu.memory_space<vmem>>) attributes {dimension_semantics = [#tpu.dimension_semantics<parallel>], iteration_bounds = array<i64: 2>, scalar_prefetch = 0 : i64, scratch_operands = 0 : i64, tpu.core_type = #tpu.core_type<tc>, window_params = [{transform_indices = @transform_0, window_bounds = array<i64: 512, 192>}, {pipeline_mode = #tpu.pipeline_mode<synchronous>, transform_indices = @transform_1, window_bounds = array<i64: 192, 128>}, {pipeline_mode = #tpu.pipeline_mode<synchronous>, transform_indices = @transform_2, window_bounds = array<i64: 1, 128>}, {transform_indices = @transform_3, window_bounds = array<i64: 512, 128>}]} {
    %c0 = arith.constant 0 : index
    %c0_0 = arith.constant 0 : index
    %0 = vector.load %arg1[%c0, %c0_0] : memref<512x192xbf16, #tpu.memory_space<vmem>>, vector<512x192xbf16>
    %c0_1 = arith.constant 0 : index
    %c0_2 = arith.constant 0 : index
    %1 = vector.load %arg2[%c0_1, %c0_2] : memref<192x128xbf16, #tpu.memory_space<vmem>>, vector<192x128xbf16>
    %cst = arith.constant dense<0.000000e+00> : vector<512x128xf32>
    %2 = tpu.matmul %0, %1, %cst {dimension_numbers = #tpu.dot_dimension_numbers<[1], [0], [0], [1], [0, 0, 1, 1], [], []>} : vector<512x192xbf16>, vector<192x128xbf16>, vector<512x128xf32> -> vector<512x128xf32>
    %c0_3 = arith.constant 0 : index
    %c0_4 = arith.constant 0 : index
    %3 = vector.load %arg3[%c0_3, %c0_4] : memref<1x128xf32, #tpu.memory_space<vmem>>, vector<1x128xf32>
    %4 = vector.broadcast %3 : vector<1x128xf32> to vector<512x128xf32>
    %5 = arith.addf %2, %4 : vector<512x128xf32>
    %cst_5 = arith.constant 0.000000e+00 : f32
    %6 = vector.broadcast %cst_5 : f32 to vector<512x128xf32>
    %7 = arith.maximumf %5, %6 : vector<512x128xf32>
    %c0_6 = arith.constant 0 : index
    %c0_7 = arith.constant 0 : index
    %8 = vector.load %arg4[%c0_6, %c0_7] : memref<512x128xf32, #tpu.memory_space<vmem>>, vector<512x128xf32>
    tpu.vector_store %arg4[%c0_6, %c0_7], %7 {strides = array<i32>} : memref<512x128xf32, #tpu.memory_space<vmem>>, vector<512x128xf32>,
    return
  }
  func.func @transform_0(%arg0: i32) -> (i32, i32) {
    %c0_i32 = arith.constant 0 : i32
    %c0_i32_0 = arith.constant 0 : i32
    return %arg0, %c0_i32 : i32, i32
  }
  func.func @transform_1(%arg0: i32) -> (i32, i32) {
    %c0_i32 = arith.constant 0 : i32
    %c0_i32_0 = arith.constant 0 : i32
    %c0_i32_1 = arith.constant 0 : i32
    return %c0_i32, %c0_i32_0 : i32, i32
  }
  func.func @transform_2(%arg0: i32) -> (i32, i32) {
    %c0_i32 = arith.constant 0 : i32
    %c0_i32_0 = arith.constant 0 : i32
    %c0_i32_1 = arith.constant 0 : i32
    return %c0_i32, %c0_i32_0 : i32, i32
  }
  func.func @transform_3(%arg0: i32) -> (i32, i32) {
    %c0_i32 = arith.constant 0 : i32
    %c0_i32_0 = arith.constant 0 : i32
    return %arg0, %c0_i32 : i32, i32
  }
}

module attributes {stable_mosaic.version = 11 : i64} {
  func.func @_linear_kernel(%arg0: i32, %arg1: memref<176x512xbf16, #tpu.memory_space<vmem>>, %arg2: memref<512x128xbf16, #tpu.memory_space<vmem>>, %arg3: memref<1x128xf32, #tpu.memory_space<vmem>>, %arg4: memref<176x128xf32, #tpu.memory_space<vmem>>) attributes {dimension_semantics = [#tpu.dimension_semantics<parallel>], iteration_bounds = array<i64: 1>, scalar_prefetch = 0 : i64, scratch_operands = 0 : i64, tpu.core_type = #tpu.core_type<tc>, window_params = [{transform_indices = @transform_0, window_bounds = array<i64: 176, 512>}, {pipeline_mode = #tpu.pipeline_mode<synchronous>, transform_indices = @transform_1, window_bounds = array<i64: 512, 128>}, {pipeline_mode = #tpu.pipeline_mode<synchronous>, transform_indices = @transform_2, window_bounds = array<i64: 1, 128>}, {transform_indices = @transform_3, window_bounds = array<i64: 176, 128>}]} {
    %c0 = arith.constant 0 : index
    %c0_0 = arith.constant 0 : index
    %0 = vector.load %arg1[%c0, %c0_0] : memref<176x512xbf16, #tpu.memory_space<vmem>>, vector<176x512xbf16>
    %c0_1 = arith.constant 0 : index
    %c0_2 = arith.constant 0 : index
    %1 = vector.load %arg2[%c0_1, %c0_2] : memref<512x128xbf16, #tpu.memory_space<vmem>>, vector<512x128xbf16>
    %cst = arith.constant dense<0.000000e+00> : vector<176x128xf32>
    %2 = tpu.matmul %0, %1, %cst {dimension_numbers = #tpu.dot_dimension_numbers<[1], [0], [0], [1], [0, 0, 1, 1], [], []>} : vector<176x512xbf16>, vector<512x128xbf16>, vector<176x128xf32> -> vector<176x128xf32>
    %c0_3 = arith.constant 0 : index
    %c0_4 = arith.constant 0 : index
    %3 = vector.load %arg3[%c0_3, %c0_4] : memref<1x128xf32, #tpu.memory_space<vmem>>, vector<1x128xf32>
    %4 = vector.broadcast %3 : vector<1x128xf32> to vector<176x128xf32>
    %5 = arith.addf %2, %4 : vector<176x128xf32>
    %cst_5 = arith.constant 0.000000e+00 : f32
    %6 = vector.broadcast %cst_5 : f32 to vector<176x128xf32>
    %7 = arith.maximumf %5, %6 : vector<176x128xf32>
    %c0_6 = arith.constant 0 : index
    %c0_7 = arith.constant 0 : index
    %8 = vector.load %arg4[%c0_6, %c0_7] : memref<176x128xf32, #tpu.memory_space<vmem>>, vector<176x128xf32>
    tpu.vector_store %arg4[%c0_6, %c0_7], %7 {strides = array<i32>} : memref<176x128xf32, #tpu.memory_space<vmem>>, vector<176x128xf32>,
    return
  }
  func.func @transform_0(%arg0: i32) -> (i32, i32) {
    %c0_i32 = arith.constant 0 : i32
    %c0_i32_0 = arith.constant 0 : i32
    return %arg0, %c0_i32 : i32, i32
  }
  func.func @transform_1(%arg0: i32) -> (i32, i32) {
    %c0_i32 = arith.constant 0 : i32
    %c0_i32_0 = arith.constant 0 : i32
    %c0_i32_1 = arith.constant 0 : i32
    return %c0_i32, %c0_i32_0 : i32, i32
  }
  func.func @transform_2(%arg0: i32) -> (i32, i32) {
    %c0_i32 = arith.constant 0 : i32
    %c0_i32_0 = arith.constant 0 : i32
    %c0_i32_1 = arith.constant 0 : i32
    return %c0_i32, %c0_i32_0 : i32, i32
  }
  func.func @transform_3(%arg0: i32) -> (i32, i32) {
    %c0_i32 = arith.constant 0 : i32
    %c0_i32_0 = arith.constant 0 : i32
    return %arg0, %c0_i32 : i32, i32
  }
}

module attributes {stable_mosaic.version = 11 : i64} {
  func.func @_linear_kernel(%arg0: i32, %arg1: memref<112x576xbf16, #tpu.memory_space<vmem>>, %arg2: memref<576x128xbf16, #tpu.memory_space<vmem>>, %arg3: memref<1x128xf32, #tpu.memory_space<vmem>>, %arg4: memref<112x128xf32, #tpu.memory_space<vmem>>) attributes {dimension_semantics = [#tpu.dimension_semantics<parallel>], iteration_bounds = array<i64: 1>, scalar_prefetch = 0 : i64, scratch_operands = 0 : i64, tpu.core_type = #tpu.core_type<tc>, window_params = [{transform_indices = @transform_0, window_bounds = array<i64: 112, 576>}, {pipeline_mode = #tpu.pipeline_mode<synchronous>, transform_indices = @transform_1, window_bounds = array<i64: 576, 128>}, {pipeline_mode = #tpu.pipeline_mode<synchronous>, transform_indices = @transform_2, window_bounds = array<i64: 1, 128>}, {transform_indices = @transform_3, window_bounds = array<i64: 112, 128>}]} {
    %c0 = arith.constant 0 : index
    %c0_0 = arith.constant 0 : index
    %0 = vector.load %arg1[%c0, %c0_0] : memref<112x576xbf16, #tpu.memory_space<vmem>>, vector<112x576xbf16>
    %c0_1 = arith.constant 0 : index
    %c0_2 = arith.constant 0 : index
    %1 = vector.load %arg2[%c0_1, %c0_2] : memref<576x128xbf16, #tpu.memory_space<vmem>>, vector<576x128xbf16>
    %cst = arith.constant dense<0.000000e+00> : vector<112x128xf32>
    %2 = tpu.matmul %0, %1, %cst {dimension_numbers = #tpu.dot_dimension_numbers<[1], [0], [0], [1], [0, 0, 1, 1], [], []>} : vector<112x576xbf16>, vector<576x128xbf16>, vector<112x128xf32> -> vector<112x128xf32>
    %c0_3 = arith.constant 0 : index
    %c0_4 = arith.constant 0 : index
    %3 = vector.load %arg3[%c0_3, %c0_4] : memref<1x128xf32, #tpu.memory_space<vmem>>, vector<1x128xf32>
    %4 = vector.broadcast %3 : vector<1x128xf32> to vector<112x128xf32>
    %5 = arith.addf %2, %4 : vector<112x128xf32>
    %cst_5 = arith.constant 0.000000e+00 : f32
    %6 = vector.broadcast %cst_5 : f32 to vector<112x128xf32>
    %7 = arith.maximumf %5, %6 : vector<112x128xf32>
    %c0_6 = arith.constant 0 : index
    %c0_7 = arith.constant 0 : index
    %8 = vector.load %arg4[%c0_6, %c0_7] : memref<112x128xf32, #tpu.memory_space<vmem>>, vector<112x128xf32>
    tpu.vector_store %arg4[%c0_6, %c0_7], %7 {strides = array<i32>} : memref<112x128xf32, #tpu.memory_space<vmem>>, vector<112x128xf32>,
    return
  }
  func.func @transform_0(%arg0: i32) -> (i32, i32) {
    %c0_i32 = arith.constant 0 : i32
    %c0_i32_0 = arith.constant 0 : i32
    return %arg0, %c0_i32 : i32, i32
  }
  func.func @transform_1(%arg0: i32) -> (i32, i32) {
    %c0_i32 = arith.constant 0 : i32
    %c0_i32_0 = arith.constant 0 : i32
    %c0_i32_1 = arith.constant 0 : i32
    return %c0_i32, %c0_i32_0 : i32, i32
  }
  func.func @transform_2(%arg0: i32) -> (i32, i32) {
    %c0_i32 = arith.constant 0 : i32
    %c0_i32_0 = arith.constant 0 : i32
    %c0_i32_1 = arith.constant 0 : i32
    return %c0_i32, %c0_i32_0 : i32, i32
  }
  func.func @transform_3(%arg0: i32) -> (i32, i32) {
    %c0_i32 = arith.constant 0 : i32
    %c0_i32_0 = arith.constant 0 : i32
    return %arg0, %c0_i32 : i32, i32
  }
}

module attributes {stable_mosaic.version = 11 : i64} {
  func.func @_head_kernel(%arg0: i32, %arg1: memref<16x3136xbf16, #tpu.memory_space<vmem>>, %arg2: memref<3136x512xbf16, #tpu.memory_space<vmem>>, %arg3: memref<1x512xf32, #tpu.memory_space<vmem>>, %arg4: memref<512x512xbf16, #tpu.memory_space<vmem>>, %arg5: memref<1x512xf32, #tpu.memory_space<vmem>>, %arg6: memref<512x128xbf16, #tpu.memory_space<vmem>>, %arg7: memref<1x128xf32, #tpu.memory_space<vmem>>, %arg8: memref<16x128xf32, #tpu.memory_space<vmem>>) attributes {dimension_semantics = [#tpu.dimension_semantics<parallel>], iteration_bounds = array<i64: 1>, scalar_prefetch = 0 : i64, scratch_operands = 0 : i64, tpu.core_type = #tpu.core_type<tc>, window_params = [{transform_indices = @transform_0, window_bounds = array<i64: 16, 3136>}, {pipeline_mode = #tpu.pipeline_mode<synchronous>, transform_indices = @transform_1, window_bounds = array<i64: 3136, 512>}, {pipeline_mode = #tpu.pipeline_mode<synchronous>, transform_indices = @transform_2, window_bounds = array<i64: 1, 512>}, {pipeline_mode = #tpu.pipeline_mode<synchronous>, transform_indices = @transform_3, window_bounds = array<i64: 512, 512>}, {pipeline_mode = #tpu.pipeline_mode<synchronous>, transform_indices = @transform_4, window_bounds = array<i64: 1, 512>}, {pipeline_mode = #tpu.pipeline_mode<synchronous>, transform_indices = @transform_5, window_bounds = array<i64: 512, 128>}, {pipeline_mode = #tpu.pipeline_mode<synchronous>, transform_indices = @transform_6, window_bounds = array<i64: 1, 128>}, {transform_indices = @transform_7, window_bounds = array<i64: 16, 128>}]} {
    %c0 = arith.constant 0 : index
    %c0_0 = arith.constant 0 : index
    %0 = vector.load %arg1[%c0, %c0_0] : memref<16x3136xbf16, #tpu.memory_space<vmem>>, vector<16x3136xbf16>
    %c0_1 = arith.constant 0 : index
    %c0_2 = arith.constant 0 : index
    %1 = vector.load %arg2[%c0_1, %c0_2] : memref<3136x512xbf16, #tpu.memory_space<vmem>>, vector<3136x512xbf16>
    %cst = arith.constant dense<0.000000e+00> : vector<16x512xf32>
    %2 = tpu.matmul %0, %1, %cst {dimension_numbers = #tpu.dot_dimension_numbers<[1], [0], [0], [1], [0, 0, 1, 1], [], []>} : vector<16x3136xbf16>, vector<3136x512xbf16>, vector<16x512xf32> -> vector<16x512xf32>
    %c0_3 = arith.constant 0 : index
    %c0_4 = arith.constant 0 : index
    %3 = vector.load %arg3[%c0_3, %c0_4] : memref<1x512xf32, #tpu.memory_space<vmem>>, vector<1x512xf32>
    %4 = vector.broadcast %3 : vector<1x512xf32> to vector<16x512xf32>
    %5 = arith.addf %2, %4 : vector<16x512xf32>
    %cst_5 = arith.constant 0.000000e+00 : f32
    %6 = vector.broadcast %cst_5 : f32 to vector<16x512xf32>
    %7 = arith.maximumf %5, %6 : vector<16x512xf32>
    %8 = arith.truncf %7 : vector<16x512xf32> to vector<16x512xbf16>
    %c0_6 = arith.constant 0 : index
    %c0_7 = arith.constant 0 : index
    %9 = vector.load %arg4[%c0_6, %c0_7] : memref<512x512xbf16, #tpu.memory_space<vmem>>, vector<512x512xbf16>
    %cst_8 = arith.constant dense<0.000000e+00> : vector<16x512xf32>
    %10 = tpu.matmul %8, %9, %cst_8 {dimension_numbers = #tpu.dot_dimension_numbers<[1], [0], [0], [1], [0, 0, 1, 1], [], []>} : vector<16x512xbf16>, vector<512x512xbf16>, vector<16x512xf32> -> vector<16x512xf32>
    %c0_9 = arith.constant 0 : index
    %c0_10 = arith.constant 0 : index
    %11 = vector.load %arg5[%c0_9, %c0_10] : memref<1x512xf32, #tpu.memory_space<vmem>>, vector<1x512xf32>
    %12 = vector.broadcast %11 : vector<1x512xf32> to vector<16x512xf32>
    %13 = arith.addf %10, %12 : vector<16x512xf32>
    %cst_11 = arith.constant 0.000000e+00 : f32
    %14 = vector.broadcast %cst_11 : f32 to vector<16x512xf32>
    %15 = arith.maximumf %13, %14 : vector<16x512xf32>
    %16 = arith.truncf %15 : vector<16x512xf32> to vector<16x512xbf16>
    %c0_12 = arith.constant 0 : index
    %c0_13 = arith.constant 0 : index
    %17 = vector.load %arg6[%c0_12, %c0_13] : memref<512x128xbf16, #tpu.memory_space<vmem>>, vector<512x128xbf16>
    %cst_14 = arith.constant dense<0.000000e+00> : vector<16x128xf32>
    %18 = tpu.matmul %16, %17, %cst_14 {dimension_numbers = #tpu.dot_dimension_numbers<[1], [0], [0], [1], [0, 0, 1, 1], [], []>} : vector<16x512xbf16>, vector<512x128xbf16>, vector<16x128xf32> -> vector<16x128xf32>
    %c0_15 = arith.constant 0 : index
    %c0_16 = arith.constant 0 : index
    %19 = vector.load %arg7[%c0_15, %c0_16] : memref<1x128xf32, #tpu.memory_space<vmem>>, vector<1x128xf32>
    %20 = vector.broadcast %19 : vector<1x128xf32> to vector<16x128xf32>
    %21 = arith.addf %18, %20 : vector<16x128xf32>
    %c0_17 = arith.constant 0 : index
    %c0_18 = arith.constant 0 : index
    %22 = vector.load %arg8[%c0_17, %c0_18] : memref<16x128xf32, #tpu.memory_space<vmem>>, vector<16x128xf32>
    tpu.vector_store %arg8[%c0_17, %c0_18], %21 {strides = array<i32>} : memref<16x128xf32, #tpu.memory_space<vmem>>, vector<16x128xf32>,
    return
  }
  func.func @transform_0(%arg0: i32) -> (i32, i32) {
    %c0_i32 = arith.constant 0 : i32
    %c0_i32_0 = arith.constant 0 : i32
    return %arg0, %c0_i32 : i32, i32
  }
  func.func @transform_1(%arg0: i32) -> (i32, i32) {
    %c0_i32 = arith.constant 0 : i32
    %c0_i32_0 = arith.constant 0 : i32
    %c0_i32_1 = arith.constant 0 : i32
    return %c0_i32, %c0_i32_0 : i32, i32
  }
  func.func @transform_2(%arg0: i32) -> (i32, i32) {
    %c0_i32 = arith.constant 0 : i32
    %c0_i32_0 = arith.constant 0 : i32
    %c0_i32_1 = arith.constant 0 : i32
    return %c0_i32, %c0_i32_0 : i32, i32
  }
  func.func @transform_3(%arg0: i32) -> (i32, i32) {
    %c0_i32 = arith.constant 0 : i32
    %c0_i32_0 = arith.constant 0 : i32
    %c0_i32_1 = arith.constant 0 : i32
    return %c0_i32, %c0_i32_0 : i32, i32
  }
  func.func @transform_4(%arg0: i32) -> (i32, i32) {
    %c0_i32 = arith.constant 0 : i32
    %c0_i32_0 = arith.constant 0 : i32
    %c0_i32_1 = arith.constant 0 : i32
    return %c0_i32, %c0_i32_0 : i32, i32
  }
  func.func @transform_5(%arg0: i32) -> (i32, i32) {
    %c0_i32 = arith.constant 0 : i32
    %c0_i32_0 = arith.constant 0 : i32
    %c0_i32_1 = arith.constant 0 : i32
    return %c0_i32, %c0_i32_0 : i32, i32
  }
  func.func @transform_6(%arg0: i32) -> (i32, i32) {
    %c0_i32 = arith.constant 0 : i32
    %c0_i32_0 = arith.constant 0 : i32
    %c0_i32_1 = arith.constant 0 : i32
    return %c0_i32, %c0_i32_0 : i32, i32
  }
  func.func @transform_7(%arg0: i32) -> (i32, i32) {
    %c0_i32 = arith.constant 0 : i32
    %c0_i32_0 = arith.constant 0 : i32
    return %arg0, %c0_i32 : i32, i32
  }
}

</mosaic_0001>

<bundles_post_ra>
// kernel: cnn_dqn_forward.4
= control target key start
LH: loop header
LB: loop body
LE: loop exit
PB: predicated region body
PF: predicated region fallthrough
CT: control target
= control target key end

     0   :  { %s1495_s12 = smov 0   ;;  %s1812_s0 = inlined_call_operand.vmem [shape: bf16[1024,192], index: 0, kind: input, shape index: {}]   ;;  %s1813_s1 = inlined_call_operand.vmem [shape: bf16[192,128], index: 1, kind: input, shape index: {}]   ;;  %s1814_s2 = inlined_call_operand.vmem [shape: f32[1,128], index: 2, kind: input, shape index: {}]   ;;  %s1815_s3 = inlined_call_operand.vmem [shape: f32[1024,128], index: 3, kind: output, shape index: {}]  }
   0x1 LB: > { %s1203_s13 = sadd.s32 4294967295, %s1472_s12   ;;  %p1207_p0 = scmp.ge.s32.totalorder %s1472_s12, 1  ;;  %s1472_s12 = sphi %s1495_s12, %s13_s12  }
   0x2   : > { %p139_p1 = scmp.lt.s32.totalorder %s1472_s12, 3 }
   0x4   : > { %p140_p2 = pnand %p1207_p0, %p139_p1 }
   0x5   : > { %v1358_v0 = vld [vmem:[%s1813_s1] sm:$0xff] (!%p140_p2)   ;;  %v1474_v1 = vmov (!%p140_p2), 0   ;;  %s1208_s16 = sshll.u32 (!%p140_p2), %s1203_s13, 6  ;;  %v1359_v2 = vld [vmem:[%s1813_s1 + $0x8] sm:$0xff] (!%p140_p2)   ;;  %v1360_v3 = vld [vmem:[%s1813_s1 + $0x10] sm:$0xff] (!%p140_p2)   ;;  %vm633_vm0 = vcmask (!%p140_p2), 523264  }
   0x6   : > { %143 = sbr.rel (%p140_p2) target bundleno = 393 (0x189), region = 32  ;;  %730 = vmatprep.subr.bf16.mxu0 (!%p140_p2), %v1474_v1  ;;  %1325 = vmatprep.subr.bf16.mxu1 (!%p140_p2), %v1474_v1  ;;  %p165_p3 = scmp.lt.s32.totalorder (!%p140_p2), %s1208_s16, 127  ;;  %v1361_v4 = vld [vmem:[%s1813_s1 + $0x18] sm:$0xff] (!%p140_p2)   ;;  %v1362_v6 = vld [vmem:[%s1813_s1 + $0x20] sm:$0xff] (!%p140_p2)   ;;  %v1363_v8 = vld [vmem:[%s1813_s1 + $0x28] sm:$0xff] (!%p140_p2)  }
   0x7   : > { %731 = vmatpush1.bf16.msra.mxu0 (!%p140_p2), %v1358_v0  ;;  %1337 = vmatpush1.bf16.msra.mxu1 (!%p140_p2), %v1358_v0  ;;  %v1364_v9 = vld [vmem:[%s1813_s1 + $0x30] sm:$0xff] (!%p140_p2)   ;;  %v1365_v10 = vld [vmem:[%s1813_s1 + $0x38] sm:$0xff] (!%p140_p2)   ;;  %v1366_v11 = vld [vmem:[%s1813_s1 + $0x40] sm:$0xff] (!%p140_p2)  }
   0x8   : > { %732 = vmatprep.subr.bf16.mxu0 (!%p140_p2), %v1474_v1  ;;  %1326 = vmatprep.subr.bf16.mxu1 (!%p140_p2), %v1474_v1  ;;  %v1367_v12 = vld [vmem:[%s1813_s1 + $0x48] sm:$0xff] (!%p140_p2)   ;;  %v1368_v13 = vld [vmem:[%s1813_s1 + $0x50] sm:$0xff] (!%p140_p2)   ;;  %v1369_v14 = vld [vmem:[%s1813_s1 + $0x58] sm:$0xff] (!%p140_p2)  }
   0xb   : > { %733 = vmatpush1.bf16.msra.mxu0 (!%p140_p2), %v1359_v2  ;;  %1338 = vmatpush1.bf16.msra.mxu1 (!%p140_p2), %v1359_v2 }
   0xc   : > { %734 = vmatprep.subr.bf16.mxu0 (!%p140_p2), %v1474_v1  ;;  %1327 = vmatprep.subr.bf16.mxu1 (!%p140_p2), %v1474_v1 }
   0xd   : > { %s1817_s16 = smov (!%p165_p3, %s1208_s16), 127 }
   0xe   : > { %s1324_s21 = sshll.u32 %s1817_s16, 3 }
   0xf   : > { %735 = vmatpush1.bf16.msra.mxu0 %v1360_v3  ;;  %1339 = vmatpush1.bf16.msra.mxu1 %v1360_v3  ;;  %s1529_s26 = scalar_lea.vmem %s1812_s0, %s1324_s21  ;;  %s1681_s23 = scalar_lea.vmem %s1815_s3, %s1324_s21 }
  0x10   : > { %736 = vmatprep.subr.bf16.mxu0 %v1474_v1  ;;  %1328 = vmatprep.subr.bf16.mxu1 %v1474_v1  ;;  %v1372_v5 = vld [vmem:[%s1529_s26 + $0x4] ss:$8 sps:$4 sm:$0xff]   ;;  %v1370_v15 = vld [vmem:[%s1529_s26] ss:$8 sps:$4 sm:$0xff]   ;;  %v1376_v17 = vld [vmem:[%s1529_s26 + $0x14] ss:$8 sps:$4 sm:$0xff]  }
  0x11   : > { %v1375_v7 = vld [vmem:[%s1529_s26 + $0x104] ss:$8 sps:$4 sm:$0xff]   ;;  %1290 = vmatprep.mubr.msk.bf16.mxu0 %vm633_vm0, %v1372_v5  ;;  %v1373_v16 = vld [vmem:[%s1529_s26 + $0x100] ss:$8 sps:$4 sm:$0xff]   ;;  %v1378_v18 = vld [vmem:[%s1529_s26 + $0x114] ss:$8 sps:$4 sm:$0xff]  }
  0x12   : > { %1306 = vmatprep.mubr.msk.bf16.mxu1 %vm633_vm0, %v1375_v7  ;;  %v1380_v19 = vld [vmem:[%s1529_s26 + $0x10] ss:$8 sps:$4 sm:$0xff]   ;;  %v1382_v21 = vld [vmem:[%s1529_s26 + $0x24] ss:$8 sps:$4 sm:$0xff]   ;;  %v1386_v23 = vld [vmem:[%s1529_s26 + $0x20] ss:$8 sps:$4 sm:$0xff]  }
  0x13   : > { %737 = vmatpush1.bf16.msra.mxu0 %v1361_v4  ;;  %1340 = vmatpush1.bf16.msra.mxu1 %v1361_v4  ;;  %v1381_v20 = vld [vmem:[%s1529_s26 + $0x110] ss:$8 sps:$4 sm:$0xff]   ;;  %v1384_v22 = vld [vmem:[%s1529_s26 + $0x124] ss:$8 sps:$4 sm:$0xff]   ;;  %v1387_v24 = vld [vmem:[%s1529_s26 + $0x120] ss:$8 sps:$4 sm:$0xff]  }
  0x14   : > { %738 = vmatprep.subr.bf16.mxu0 %v1474_v1  ;;  %1329 = vmatprep.subr.bf16.mxu1 %v1474_v1  ;;  %v1388_v25 = vld [vmem:[%s1529_s26 + $0x34] ss:$8 sps:$4 sm:$0xff]   ;;  %v1392_v27 = vld [vmem:[%s1529_s26 + $0x30] ss:$8 sps:$4 sm:$0xff]   ;;  %v1394_v29 = vld [vmem:[%s1529_s26 + $0x44] ss:$8 sps:$4 sm:$0xff]  }
  0x15   : > { %v1390_v26 = vld [vmem:[%s1529_s26 + $0x134] ss:$8 sps:$4 sm:$0xff]   ;;  %v1393_v28 = vld [vmem:[%s1529_s26 + $0x130] ss:$8 sps:$4 sm:$0xff]   ;;  %v1396_v30 = vld [vmem:[%s1529_s26 + $0x144] ss:$8 sps:$4 sm:$0xff]  }
  0x16   : > { %v1398_v31 = vld [vmem:[%s1529_s26 + $0x40] ss:$8 sps:$4 sm:$0xff]   ;;  %v1400_v33 = vld [vmem:[%s1529_s26 + $0x54] ss:$8 sps:$4 sm:$0xff]   ;;  %v1404_v35 = vld [vmem:[%s1529_s26 + $0x50] ss:$8 sps:$4 sm:$0xff]  }
  0x17   : > { %739 = vmatpush1.bf16.msra.mxu0 %v1362_v6  ;;  %1341 = vmatpush1.bf16.msra.mxu1 %v1362_v6  ;;  %v1399_v32 = vld [vmem:[%s1529_s26 + $0x140] ss:$8 sps:$4 sm:$0xff]   ;;  %v1402_v34 = vld [vmem:[%s1529_s26 + $0x154] ss:$8 sps:$4 sm:$0xff]   ;;  %v1405_v36 = vld [vmem:[%s1529_s26 + $0x150] ss:$8 sps:$4 sm:$0xff]  }
  0x18   : > { %740 = vmatprep.subr.bf16.mxu0 %v1474_v1  ;;  %1330 = vmatprep.subr.bf16.mxu1 %v1474_v1  ;;  %v1406_v37 = vld [vmem:[%s1529_s26 + $0x64] ss:$8 sps:$4 sm:$0xff]   ;;  %v1410_v39 = vld [vmem:[%s1529_s26 + $0x60] ss:$8 sps:$4 sm:$0xff]   ;;  %v1412_v41 = vld [vmem:[%s1529_s26 + $0x74] ss:$8 sps:$4 sm:$0xff]  }
  0x19   : > { %v1408_v38 = vld [vmem:[%s1529_s26 + $0x164] ss:$8 sps:$4 sm:$0xff]   ;;  %v1411_v40 = vld [vmem:[%s1529_s26 + $0x160] ss:$8 sps:$4 sm:$0xff]   ;;  %v1414_v42 = vld [vmem:[%s1529_s26 + $0x174] ss:$8 sps:$4 sm:$0xff]  }
  0x1a   : > { %v1416_v43 = vld [vmem:[%s1529_s26 + $0x70] ss:$8 sps:$4 sm:$0xff]   ;;  %v1418_v45 = vld [vmem:[%s1529_s26 + $0x84] ss:$8 sps:$4 sm:$0xff]   ;;  %v1422_v47 = vld [vmem:[%s1529_s26 + $0x80] ss:$8 sps:$4 sm:$0xff]  }
  0x1b   : > { %741 = vmatpush1.bf16.msra.mxu0 %v1363_v8  ;;  %1342 = vmatpush1.bf16.msra.mxu1 %v1363_v8  ;;  %v1417_v44 = vld [vmem:[%s1529_s26 + $0x170] ss:$8 sps:$4 sm:$0xff]   ;;  %v1420_v46 = vld [vmem:[%s1529_s26 + $0x184] ss:$8 sps:$4 sm:$0xff]   ;;  %v1423_v48 = vld [vmem:[%s1529_s26 + $0x180] ss:$8 sps:$4 sm:$0xff]  }
  0x1c   : > { %742 = vmatprep.subr.bf16.mxu0 %v1474_v1  ;;  %1331 = vmatprep.subr.bf16.mxu1 %v1474_v1  ;;  %v1424_v49 = vld [vmem:[%s1529_s26 + $0x94] ss:$8 sps:$4 sm:$0xff]   ;;  %v1428_v51 = vld [vmem:[%s1529_s26 + $0x90] ss:$8 sps:$4 sm:$0xff]   ;;  %v1430_v53 = vld [vmem:[%s1529_s26 + $0xa4] ss:$8 sps:$4 sm:$0xff]  }
  0x1d   : > { %v1426_v50 = vld [vmem:[%s1529_s26 + $0x194] ss:$8 sps:$4 sm:$0xff]   ;;  %v1429_v52 = vld [vmem:[%s1529_s26 + $0x190] ss:$8 sps:$4 sm:$0xff]   ;;  %v1432_v54 = vld [vmem:[%s1529_s26 + $0x1a4] ss:$8 sps:$4 sm:$0xff]  }
  0x1e   : > { %v1434_v55 = vld [vmem:[%s1529_s26 + $0xa0] ss:$8 sps:$4 sm:$0xff]   ;;  %v1436_v57 = vld [vmem:[%s1529_s26 + $0xb4] ss:$8 sps:$4 sm:$0xff]   ;;  %v1440_v59 = vld [vmem:[%s1529_s26 + $0xb0] ss:$8 sps:$4 sm:$0xff]  }
  0x1f   : > { %743 = vmatpush1.bf16.msra.mxu0 %v1364_v9  ;;  %1343 = vmatpush1.bf16.msra.mxu1 %v1364_v9  ;;  %v1435_v56 = vld [vmem:[%s1529_s26 + $0x1a0] ss:$8 sps:$4 sm:$0xff]   ;;  %v1438_v58 = vld [vmem:[%s1529_s26 + $0x1b4] ss:$8 sps:$4 sm:$0xff]   ;;  %v1441_v60 = vld [vmem:[%s1529_s26 + $0x1b0] ss:$8 sps:$4 sm:$0xff]  }
  0x20   : > { %744 = vmatprep.subr.bf16.mxu0 %v1474_v1  ;;  %1332 = vmatprep.subr.bf16.mxu1 %v1474_v1  ;;  %v1442_v61 = vld [vmem:[%s1529_s26 + $0xc4] ss:$8 sps:$4 sm:$0xff]   ;;  %v1446_v63 = vld [vmem:[%s1529_s26 + $0xc0] ss:$8 sps:$4 sm:$0xff]   ;;  %v1450_v2 = vld [vmem:[%s1529_s26 + $0x1d4] ss:$8 sps:$4 sm:$0xff]  }
  0x21   : > { %v1444_v62 = vld [vmem:[%s1529_s26 + $0x1c4] ss:$8 sps:$4 sm:$0xff]   ;;  %v1447_v0 = vld [vmem:[%s1529_s26 + $0x1c0] ss:$8 sps:$4 sm:$0xff]   ;;  %v1452_v3 = vld [vmem:[%s1529_s26 + $0xd0] ss:$8 sps:$4 sm:$0xff]  }
  0x22   : > { %v1453_v4 = vld [vmem:[%s1529_s26 + $0x1d0] ss:$8 sps:$4 sm:$0xff]   ;;  %v1454_v5 = vld [vmem:[%s1529_s26 + $0xe4] ss:$8 sps:$4 sm:$0xff]   ;;  %v1458_v7 = vld [vmem:[%s1529_s26 + $0xe0] ss:$8 sps:$4 sm:$0xff]  }
  0x23   : > { %745 = vmatpush1.bf16.msra.mxu0 %v1365_v10  ;;  %1344 = vmatpush1.bf16.msra.mxu1 %v1365_v10  ;;  %v1456_v6 = vld [vmem:[%s1529_s26 + $0x1e4] ss:$8 sps:$4 sm:$0xff]   ;;  %v1459_v8 = vld [vmem:[%s1529_s26 + $0x1e0] ss:$8 sps:$4 sm:$0xff]   ;;  %v1460_v9 = vld [vmem:[%s1529_s26 + $0xf4] ss:$8 sps:$4 sm:$0xff]  }
  0x24   : > { %746 = vmatprep.subr.bf16.mxu0 %v1474_v1  ;;  %1333 = vmatprep.subr.bf16.mxu1 %v1474_v1  ;;  %v1462_v10 = vld [vmem:[%s1529_s26 + $0x1f4] ss:$8 sps:$4 sm:$0xff]  }
  0x27   : > { %747 = vmatpush1.bf16.msra.mxu0 %v1366_v11  ;;  %1345 = vmatpush1.bf16.msra.mxu1 %v1366_v11  ;;  %v1464_v11 = vld [vmem:[%s1529_s26 + $0xf0] ss:$8 sps:$4 sm:$0xff]  }
  0x28   : > { %748 = vmatprep.subr.bf16.mxu0 %v1474_v1  ;;  %1334 = vmatprep.subr.bf16.mxu1 %v1474_v1 }
  0x2b   : > { %749 = vmatpush1.bf16.msra.mxu0 %v1367_v12  ;;  %1346 = vmatpush1.bf16.msra.mxu1 %v1367_v12  ;;  %v1465_v12 = vld [vmem:[%s1529_s26 + $0x1f0] ss:$8 sps:$4 sm:$0xff]  }
  0x2c   : > { %750 = vmatprep.subr.bf16.mxu0 %v1474_v1  ;;  %1335 = vmatprep.subr.bf16.mxu1 %v1474_v1 }
  0x2f   : > { %751 = vmatpush1.bf16.msra.mxu0 %v1368_v13  ;;  %1347 = vmatpush1.bf16.msra.mxu1 %v1368_v13  ;;  %v1672_v13 = vld [vmem:[%s1814_s2] ss:$0 sm:$0xff] }
  0x30   : > { %752 = vmatprep.subr.bf16.mxu0 %v1474_v1  ;;  %1336 = vmatprep.subr.bf16.mxu1 %v1474_v1  ;;  %v1448_v1 = vld [vmem:[%s1529_s26 + $0xd4] ss:$8 sps:$4 sm:$0xff]  }
  0x33   : > { %753 = vmatpush1.bf16.msra.mxu0 %v1369_v14  ;;  %1348 = vmatpush1.bf16.msra.mxu1 %v1369_v14 }
  0x36   : > { %763 = vmatmul.mubr.bf16.vlgmr.msra.gmra.mrb[0].mxu0 %v1370_v15  ;;  %891 = vmatmul.mubr.bf16.vlgmr.msra.gmra.mrb[0].mxu1 %v1373_v16 }
  0x37   : > { %1291 = vmatprep.mubr.msk.bf16.mxu0 %vm633_vm0, %v1376_v17  ;;  %1307 = vmatprep.mubr.msk.bf16.mxu1 %vm633_vm0, %v1378_v18 }
  0x3e   : > { %771 = vmatmul.mubr.bf16.gmra.mrb[4].mxu0 %v1380_v19  ;;  %899 = vmatmul.mubr.bf16.gmra.mrb[4].mxu1 %v1381_v20 }
  0x3f   : > { %1292 = vmatprep.mubr.msk.bf16.mxu0 %vm633_vm0, %v1382_v21  ;;  %1308 = vmatprep.mubr.msk.bf16.mxu1 %vm633_vm0, %v1384_v22 }
  0x46   : > { %779 = vmatmul.mubr.bf16.gmra.mrb[8].mxu0 %v1386_v23  ;;  %907 = vmatmul.mubr.bf16.gmra.mrb[8].mxu1 %v1387_v24 }
  0x47   : > { %1293 = vmatprep.mubr.msk.bf16.mxu0 %vm633_vm0, %v1388_v25  ;;  %1309 = vmatprep.mubr.msk.bf16.mxu1 %vm633_vm0, %v1390_v26 }
  0x4e   : > { %787 = vmatmul.mubr.bf16.gmra.mrb[12].mxu0 %v1392_v27  ;;  %915 = vmatmul.mubr.bf16.gmra.mrb[12].mxu1 %v1393_v28 }
  0x4f   : > { %1294 = vmatprep.mubr.msk.bf16.mxu0 %vm633_vm0, %v1394_v29  ;;  %1310 = vmatprep.mubr.msk.bf16.mxu1 %vm633_vm0, %v1396_v30 }
  0x56   : > { %795 = vmatmul.mubr.bf16.gmra.mrb[16].mxu0 %v1398_v31  ;;  %923 = vmatmul.mubr.bf16.gmra.mrb[16].mxu1 %v1399_v32 }
  0x57   : > { %1295 = vmatprep.mubr.msk.bf16.mxu0 %vm633_vm0, %v1400_v33  ;;  %1311 = vmatprep.mubr.msk.bf16.mxu1 %vm633_vm0, %v1402_v34 }
  0x5e   : > { %803 = vmatmul.mubr.bf16.gmra.mrb[20].mxu0 %v1404_v35  ;;  %931 = vmatmul.mubr.bf16.gmra.mrb[20].mxu1 %v1405_v36 }
  0x5f   : > { %1296 = vmatprep.mubr.msk.bf16.mxu0 %vm633_vm0, %v1406_v37  ;;  %1312 = vmatprep.mubr.msk.bf16.mxu1 %vm633_vm0, %v1408_v38 }
  0x66   : > { %811 = vmatmul.mubr.bf16.gmra.mrb[24].mxu0 %v1410_v39  ;;  %939 = vmatmul.mubr.bf16.gmra.mrb[24].mxu1 %v1411_v40 }
  0x67   : > { %1297 = vmatprep.mubr.msk.bf16.mxu0 %vm633_vm0, %v1412_v41  ;;  %1313 = vmatprep.mubr.msk.bf16.mxu1 %vm633_vm0, %v1414_v42 }
  0x6e   : > { %819 = vmatmul.mubr.bf16.gmra.mrb[28].mxu0 %v1416_v43  ;;  %947 = vmatmul.mubr.bf16.gmra.mrb[28].mxu1 %v1417_v44 }
  0x6f   : > { %1298 = vmatprep.mubr.msk.bf16.mxu0 %vm633_vm0, %v1418_v45  ;;  %1314 = vmatprep.mubr.msk.bf16.mxu1 %vm633_vm0, %v1420_v46 }
  0x76   : > { %827 = vmatmul.mubr.bf16.gmra.mrb[32].mxu0 %v1422_v47  ;;  %955 = vmatmul.mubr.bf16.gmra.mrb[32].mxu1 %v1423_v48 }
  0x77   : > { %1299 = vmatprep.mubr.msk.bf16.mxu0 %vm633_vm0, %v1424_v49  ;;  %1315 = vmatprep.mubr.msk.bf16.mxu1 %vm633_vm0, %v1426_v50 }
  0x7e   : > { %835 = vmatmul.mubr.bf16.gmra.mrb[36].mxu0 %v1428_v51  ;;  %963 = vmatmul.mubr.bf16.gmra.mrb[36].mxu1 %v1429_v52 }
  0x7f   : > { %1300 = vmatprep.mubr.msk.bf16.mxu0 %vm633_vm0, %v1430_v53  ;;  %1316 = vmatprep.mubr.msk.bf16.mxu1 %vm633_vm0, %v1432_v54 }
  0x86   : > { %843 = vmatmul.mubr.bf16.gmra.mrb[40].mxu0 %v1434_v55  ;;  %971 = vmatmul.mubr.bf16.gmra.mrb[40].mxu1 %v1435_v56 }
  0x87   : > { %1301 = vmatprep.mubr.msk.bf16.mxu0 %vm633_vm0, %v1436_v57  ;;  %1317 = vmatprep.mubr.msk.bf16.mxu1 %vm633_vm0, %v1438_v58 }
  0x8e   : > { %851 = vmatmul.mubr.bf16.gmra.mrb[44].mxu0 %v1440_v59  ;;  %979 = vmatmul.mubr.bf16.gmra.mrb[44].mxu1 %v1441_v60 }
  0x8f   : > { %1302 = vmatprep.mubr.msk.bf16.mxu0 %vm633_vm0, %v1442_v61  ;;  %1318 = vmatprep.mubr.msk.bf16.mxu1 %vm633_vm0, %v1444_v62 }
  0x96   : > { %859 = vmatmul.mubr.bf16.gmra.mrb[48].mxu0 %v1446_v63  ;;  %987 = vmatmul.mubr.bf16.gmra.mrb[48].mxu1 %v1447_v0 }
  0x97   : > { %1303 = vmatprep.mubr.msk.bf16.mxu0 %vm633_vm0, %v1448_v1  ;;  %1319 = vmatprep.mubr.msk.bf16.mxu1 %vm633_vm0, %v1450_v2 }
  0x9e   : > { %867 = vmatmul.mubr.bf16.gmra.mrb[52].mxu0 %v1452_v3  ;;  %995 = vmatmul.mubr.bf16.gmra.mrb[52].mxu1 %v1453_v4 }
  0x9f   : > { %1304 = vmatprep.mubr.msk.bf16.mxu0 %vm633_vm0, %v1454_v5  ;;  %1320 = vmatprep.mubr.msk.bf16.mxu1 %vm633_vm0, %v1456_v6 }
  0xa6   : > { %875 = vmatmul.mubr.bf16.gmra.mrb[56].mxu0 %v1458_v7  ;;  %1003 = vmatmul.mubr.bf16.gmra.mrb[56].mxu1 %v1459_v8 }
  0xa7   : > { %1305 = vmatprep.mubr.msk.bf16.mxu0 %vm633_vm0, %v1460_v9  ;;  %1321 = vmatprep.mubr.msk.bf16.mxu1 %vm633_vm0, %v1462_v10 }
  0xae   : > { %883 = vmatmul.mubr.bf16.gmra.mrb[60].mxu0 %v1464_v11  ;;  %1011 = vmatmul.mubr.bf16.gmra.mrb[60].mxu1 %v1465_v12 }
 0x109   : > { %v764_v14 = vpop.f32.mrb[0].mxu0  ;;  %v892_v15 = vpop.f32.mrb[0].mxu1 }
 0x10a   : > { %v765_v16 = vadd.f32 %v1672_v13, %v764_v14  ;;  %v893_v17 = vadd.f32 %v1672_v13, %v892_v15  ;;  %v766_v18 = vpop.f32.mrb[1].mxu0  ;;  %v894_v19 = vpop.f32.mrb[1].mxu1 }
 0x10b   : > { %v767_v20 = vpop.f32.mrb[2].mxu0  ;;  %v895_v21 = vpop.f32.mrb[2].mxu1 }
 0x10c   : > { %v1019_v22 = vmax.f32 %v765_v16, 0.0  ;;  %v1051_v23 = vmax.f32 %v893_v17, 0.0  ;;  %v768_v24 = vadd.f32 %v1672_v13, %v767_v20  ;;  %v896_v25 = vadd.f32 %v1672_v13, %v895_v21  ;;  %v769_v26 = vpop.f32.mrb[3].mxu0  ;;  %v897_v27 = vpop.f32.mrb[3].mxu1 }
 0x10e   : > { %1083 = vst [vmem:[%s1681_s23] sm:$0xff] %v1019_v22  ;;  %1115 = vst [vmem:[%s1681_s23 + $0x100] sm:$0xff] %v1051_v23  ;;  %v1020_v28 = vmax.f32 %v768_v24, 0.0  ;;  %v1052_v29 = vmax.f32 %v896_v25, 0.0 }
 0x110   : > { %1084 = vst [vmem:[%s1681_s23 + $0x8] sm:$0xff] %v1020_v28  ;;  %1116 = vst [vmem:[%s1681_s23 + $0x108] sm:$0xff] %v1052_v29 }
 0x111   : > { %v772_v30 = vpop.f32.mrb[4].mxu0  ;;  %v900_v31 = vpop.f32.mrb[4].mxu1 }
 0x112   : > { %v773_v32 = vadd.f32 %v1672_v13, %v772_v30  ;;  %v901_v33 = vadd.f32 %v1672_v13, %v900_v31  ;;  %v774_v34 = vpop.f32.mrb[5].mxu0  ;;  %v902_v35 = vpop.f32.mrb[5].mxu1 }
 0x113   : > { %v775_v36 = vpop.f32.mrb[6].mxu0  ;;  %v903_v37 = vpop.f32.mrb[6].mxu1 }
 0x114   : > { %v1021_v38 = vmax.f32 %v773_v32, 0.0  ;;  %v1053_v39 = vmax.f32 %v901_v33, 0.0  ;;  %v776_v40 = vadd.f32 %v1672_v13, %v775_v36  ;;  %v904_v41 = vadd.f32 %v1672_v13, %v903_v37  ;;  %v777_v42 = vpop.f32.mrb[7].mxu0  ;;  %v905_v43 = vpop.f32.mrb[7].mxu1 }
 0x116   : > { %1085 = vst [vmem:[%s1681_s23 + $0x10] sm:$0xff] %v1021_v38  ;;  %1117 = vst [vmem:[%s1681_s23 + $0x110] sm:$0xff] %v1053_v39  ;;  %v1022_v44 = vmax.f32 %v776_v40, 0.0  ;;  %v1054_v45 = vmax.f32 %v904_v41, 0.0 }
 0x118   : > { %1086 = vst [vmem:[%s1681_s23 + $0x18] sm:$0xff] %v1022_v44  ;;  %1118 = vst [vmem:[%s1681_s23 + $0x118] sm:$0xff] %v1054_v45 }
 0x119   : > { %v780_v46 = vpop.f32.mrb[8].mxu0  ;;  %v908_v47 = vpop.f32.mrb[8].mxu1 }
 0x11a   : > { %v781_v48 = vadd.f32 %v1672_v13, %v780_v46  ;;  %v909_v49 = vadd.f32 %v1672_v13, %v908_v47  ;;  %v782_v50 = vpop.f32.mrb[9].mxu0  ;;  %v910_v51 = vpop.f32.mrb[9].mxu1 }
 0x11b   : > { %v783_v52 = vpop.f32.mrb[10].mxu0  ;;  %v911_v53 = vpop.f32.mrb[10].mxu1 }
 0x11c   : > { %v1023_v54 = vmax.f32 %v781_v48, 0.0  ;;  %v1055_v55 = vmax.f32 %v909_v49, 0.0  ;;  %v784_v56 = vadd.f32 %v1672_v13, %v783_v52  ;;  %v912_v57 = vadd.f32 %v1672_v13, %v911_v53  ;;  %v785_v58 = vpop.f32.mrb[11].mxu0  ;;  %v913_v59 = vpop.f32.mrb[11].mxu1 }
 0x11e   : > { %1087 = vst [vmem:[%s1681_s23 + $0x20] sm:$0xff] %v1023_v54  ;;  %1119 = vst [vmem:[%s1681_s23 + $0x120] sm:$0xff] %v1055_v55  ;;  %v1024_v60 = vmax.f32 %v784_v56, 0.0  ;;  %v1056_v61 = vmax.f32 %v912_v57, 0.0 }
 0x120   : > { %1088 = vst [vmem:[%s1681_s23 + $0x28] sm:$0xff] %v1024_v60  ;;  %1120 = vst [vmem:[%s1681_s23 + $0x128] sm:$0xff] %v1056_v61 }
 0x121   : > { %v788_v62 = vpop.f32.mrb[12].mxu0  ;;  %v916_v63 = vpop.f32.mrb[12].mxu1 }
 0x122   : > { %v789_v0 = vadd.f32 %v1672_v13, %v788_v62  ;;  %v917_v1 = vadd.f32 %v1672_v13, %v916_v63  ;;  %v790_v2 = vpop.f32.mrb[13].mxu0  ;;  %v918_v3 = vpop.f32.mrb[13].mxu1 }
 0x123   : > { %v791_v4 = vpop.f32.mrb[14].mxu0  ;;  %v919_v5 = vpop.f32.mrb[14].mxu1 }
 0x124   : > { %v1025_v6 = vmax.f32 %v789_v0, 0.0  ;;  %v1057_v7 = vmax.f32 %v917_v1, 0.0  ;;  %v792_v8 = vadd.f32 %v1672_v13, %v791_v4  ;;  %v920_v9 = vadd.f32 %v1672_v13, %v919_v5  ;;  %v793_v10 = vpop.f32.mrb[15].mxu0  ;;  %v921_v11 = vpop.f32.mrb[15].mxu1 }
 0x126   : > { %1089 = vst [vmem:[%s1681_s23 + $0x30] sm:$0xff] %v1025_v6  ;;  %1121 = vst [vmem:[%s1681_s23 + $0x130] sm:$0xff] %v1057_v7  ;;  %v1026_v12 = vmax.f32 %v792_v8, 0.0  ;;  %v1058_v14 = vmax.f32 %v920_v9, 0.0 }
 0x128   : > { %1090 = vst [vmem:[%s1681_s23 + $0x38] sm:$0xff] %v1026_v12  ;;  %1122 = vst [vmem:[%s1681_s23 + $0x138] sm:$0xff] %v1058_v14 }
 0x129   : > { %v796_v15 = vpop.f32.mrb[16].mxu0  ;;  %v924_v16 = vpop.f32.mrb[16].mxu1 }
 0x12a   : > { %v797_v17 = vadd.f32 %v1672_v13, %v796_v15  ;;  %v925_v18 = vadd.f32 %v1672_v13, %v924_v16  ;;  %v798_v19 = vpop.f32.mrb[17].mxu0  ;;  %v926_v20 = vpop.f32.mrb[17].mxu1 }
 0x12b   : > { %v799_v21 = vpop.f32.mrb[18].mxu0  ;;  %v927_v22 = vpop.f32.mrb[18].mxu1 }
 0x12c   : > { %v1027_v23 = vmax.f32 %v797_v17, 0.0  ;;  %v1059_v24 = vmax.f32 %v925_v18, 0.0  ;;  %v800_v25 = vadd.f32 %v1672_v13, %v799_v21  ;;  %v928_v26 = vadd.f32 %v1672_v13, %v927_v22  ;;  %v801_v27 = vpop.f32.mrb[19].mxu0  ;;  %v929_v28 = vpop.f32.mrb[19].mxu1 }
 0x12e   : > { %1091 = vst [vmem:[%s1681_s23 + $0x40] sm:$0xff] %v1027_v23  ;;  %1123 = vst [vmem:[%s1681_s23 + $0x140] sm:$0xff] %v1059_v24  ;;  %v1028_v29 = vmax.f32 %v800_v25, 0.0  ;;  %v1060_v30 = vmax.f32 %v928_v26, 0.0 }
 0x130   : > { %1092 = vst [vmem:[%s1681_s23 + $0x48] sm:$0xff] %v1028_v29  ;;  %1124 = vst [vmem:[%s1681_s23 + $0x148] sm:$0xff] %v1060_v30 }
 0x131   : > { %v804_v31 = vpop.f32.mrb[20].mxu0  ;;  %v932_v32 = vpop.f32.mrb[20].mxu1 }
 0x132   : > { %v805_v33 = vadd.f32 %v1672_v13, %v804_v31  ;;  %v933_v34 = vadd.f32 %v1672_v13, %v932_v32  ;;  %v806_v35 = vpop.f32.mrb[21].mxu0  ;;  %v934_v36 = vpop.f32.mrb[21].mxu1 }
 0x133   : > { %v807_v37 = vpop.f32.mrb[22].mxu0  ;;  %v935_v38 = vpop.f32.mrb[22].mxu1 }
 0x134   : > { %v1029_v39 = vmax.f32 %v805_v33, 0.0  ;;  %v1061_v40 = vmax.f32 %v933_v34, 0.0  ;;  %v808_v41 = vadd.f32 %v1672_v13, %v807_v37  ;;  %v936_v42 = vadd.f32 %v1672_v13, %v935_v38  ;;  %v809_v43 = vpop.f32.mrb[23].mxu0  ;;  %v937_v44 = vpop.f32.mrb[23].mxu1 }
 0x136   : > { %1093 = vst [vmem:[%s1681_s23 + $0x50] sm:$0xff] %v1029_v39  ;;  %1125 = vst [vmem:[%s1681_s23 + $0x150] sm:$0xff] %v1061_v40  ;;  %v1030_v45 = vmax.f32 %v808_v41, 0.0  ;;  %v1062_v46 = vmax.f32 %v936_v42, 0.0 }
 0x138   : > { %1094 = vst [vmem:[%s1681_s23 + $0x58] sm:$0xff] %v1030_v45  ;;  %1126 = vst [vmem:[%s1681_s23 + $0x158] sm:$0xff] %v1062_v46 }
 0x139   : > { %v812_v47 = vpop.f32.mrb[24].mxu0  ;;  %v940_v48 = vpop.f32.mrb[24].mxu1 }
 0x13a   : > { %v813_v49 = vadd.f32 %v1672_v13, %v812_v47  ;;  %v941_v50 = vadd.f32 %v1672_v13, %v940_v48  ;;  %v814_v51 = vpop.f32.mrb[25].mxu0  ;;  %v942_v52 = vpop.f32.mrb[25].mxu1 }
 0x13b   : > { %v815_v53 = vpop.f32.mrb[26].mxu0  ;;  %v943_v54 = vpop.f32.mrb[26].mxu1 }
 0x13c   : > { %v1031_v55 = vmax.f32 %v813_v49, 0.0  ;;  %v1063_v56 = vmax.f32 %v941_v50, 0.0  ;;  %v816_v57 = vadd.f32 %v1672_v13, %v815_v53  ;;  %v944_v58 = vadd.f32 %v1672_v13, %v943_v54  ;;  %v817_v59 = vpop.f32.mrb[27].mxu0  ;;  %v945_v60 = vpop.f32.mrb[27].mxu1 }
 0x13e   : > { %1095 = vst [vmem:[%s1681_s23 + $0x60] sm:$0xff] %v1031_v55  ;;  %1127 = vst [vmem:[%s1681_s23 + $0x160] sm:$0xff] %v1063_v56  ;;  %v1032_v61 = vmax.f32 %v816_v57, 0.0  ;;  %v1064_v62 = vmax.f32 %v944_v58, 0.0 }
 0x140   : > { %1096 = vst [vmem:[%s1681_s23 + $0x68] sm:$0xff] %v1032_v61  ;;  %1128 = vst [vmem:[%s1681_s23 + $0x168] sm:$0xff] %v1064_v62 }
 0x141   : > { %v820_v63 = vpop.f32.mrb[28].mxu0  ;;  %v948_v0 = vpop.f32.mrb[28].mxu1 }
 0x142   : > { %v821_v1 = vadd.f32 %v1672_v13, %v820_v63  ;;  %v949_v2 = vadd.f32 %v1672_v13, %v948_v0  ;;  %v822_v3 = vpop.f32.mrb[29].mxu0  ;;  %v950_v4 = vpop.f32.mrb[29].mxu1 }
 0x143   : > { %v823_v5 = vpop.f32.mrb[30].mxu0  ;;  %v951_v6 = vpop.f32.mrb[30].mxu1 }
 0x144   : > { %v1033_v7 = vmax.f32 %v821_v1, 0.0  ;;  %v1065_v8 = vmax.f32 %v949_v2, 0.0  ;;  %v824_v9 = vadd.f32 %v1672_v13, %v823_v5  ;;  %v952_v10 = vadd.f32 %v1672_v13, %v951_v6  ;;  %v825_v11 = vpop.f32.mrb[31].mxu0  ;;  %v953_v12 = vpop.f32.mrb[31].mxu1 }
 0x146   : > { %1097 = vst [vmem:[%s1681_s23 + $0x70] sm:$0xff] %v1033_v7  ;;  %1129 = vst [vmem:[%s1681_s23 + $0x170] sm:$0xff] %v1065_v8  ;;  %v1034_v14 = vmax.f32 %v824_v9, 0.0  ;;  %v1066_v15 = vmax.f32 %v952_v10, 0.0 }
 0x148   : > { %1098 = vst [vmem:[%s1681_s23 + $0x78] sm:$0xff] %v1034_v14  ;;  %1130 = vst [vmem:[%s1681_s23 + $0x178] sm:$0xff] %v1066_v15 }
 0x149   : > { %v828_v16 = vpop.f32.mrb[32].mxu0  ;;  %v956_v17 = vpop.f32.mrb[32].mxu1 }
 0x14a   : > { %v829_v18 = vadd.f32 %v1672_v13, %v828_v16  ;;  %v957_v19 = vadd.f32 %v1672_v13, %v956_v17  ;;  %v830_v20 = vpop.f32.mrb[33].mxu0  ;;  %v958_v21 = vpop.f32.mrb[33].mxu1 }
 0x14b   : > { %v831_v22 = vpop.f32.mrb[34].mxu0  ;;  %v959_v23 = vpop.f32.mrb[34].mxu1 }
 0x14c   : > { %v1035_v24 = vmax.f32 %v829_v18, 0.0  ;;  %v1067_v25 = vmax.f32 %v957_v19, 0.0  ;;  %v832_v26 = vadd.f32 %v1672_v13, %v831_v22  ;;  %v960_v27 = vadd.f32 %v1672_v13, %v959_v23  ;;  %v833_v28 = vpop.f32.mrb[35].mxu0  ;;  %v961_v29 = vpop.f32.mrb[35].mxu1 }
 0x14e   : > { %1099 = vst [vmem:[%s1681_s23 + $0x80] sm:$0xff] %v1035_v24  ;;  %1131 = vst [vmem:[%s1681_s23 + $0x180] sm:$0xff] %v1067_v25  ;;  %v1036_v30 = vmax.f32 %v832_v26, 0.0  ;;  %v1068_v31 = vmax.f32 %v960_v27, 0.0 }
 0x150   : > { %1100 = vst [vmem:[%s1681_s23 + $0x88] sm:$0xff] %v1036_v30  ;;  %1132 = vst [vmem:[%s1681_s23 + $0x188] sm:$0xff] %v1068_v31 }
 0x151   : > { %v836_v32 = vpop.f32.mrb[36].mxu0  ;;  %v964_v33 = vpop.f32.mrb[36].mxu1 }
 0x152   : > { %v837_v34 = vadd.f32 %v1672_v13, %v836_v32  ;;  %v965_v35 = vadd.f32 %v1672_v13, %v964_v33  ;;  %v838_v36 = vpop.f32.mrb[37].mxu0  ;;  %v966_v37 = vpop.f32.mrb[37].mxu1 }
 0x153   : > { %v839_v38 = vpop.f32.mrb[38].mxu0  ;;  %v967_v39 = vpop.f32.mrb[38].mxu1 }
 0x154   : > { %v1037_v40 = vmax.f32 %v837_v34, 0.0  ;;  %v1069_v41 = vmax.f32 %v965_v35, 0.0  ;;  %v840_v42 = vadd.f32 %v1672_v13, %v839_v38  ;;  %v968_v43 = vadd.f32 %v1672_v13, %v967_v39  ;;  %v841_v44 = vpop.f32.mrb[39].mxu0  ;;  %v969_v45 = vpop.f32.mrb[39].mxu1 }
 0x156   : > { %1101 = vst [vmem:[%s1681_s23 + $0x90] sm:$0xff] %v1037_v40  ;;  %1133 = vst [vmem:[%s1681_s23 + $0x190] sm:$0xff] %v1069_v41  ;;  %v1038_v46 = vmax.f32 %v840_v42, 0.0  ;;  %v1070_v47 = vmax.f32 %v968_v43, 0.0 }
 0x158   : > { %1102 = vst [vmem:[%s1681_s23 + $0x98] sm:$0xff] %v1038_v46  ;;  %1134 = vst [vmem:[%s1681_s23 + $0x198] sm:$0xff] %v1070_v47 }
 0x159   : > { %v844_v48 = vpop.f32.mrb[40].mxu0  ;;  %v972_v49 = vpop.f32.mrb[40].mxu1 }
 0x15a   : > { %v845_v50 = vadd.f32 %v1672_v13, %v844_v48  ;;  %v973_v51 = vadd.f32 %v1672_v13, %v972_v49  ;;  %v846_v52 = vpop.f32.mrb[41].mxu0  ;;  %v974_v53 = vpop.f32.mrb[41].mxu1 }
 0x15b   : > { %v847_v54 = vpop.f32.mrb[42].mxu0  ;;  %v975_v55 = vpop.f32.mrb[42].mxu1 }
 0x15c   : > { %v1039_v56 = vmax.f32 %v845_v50, 0.0  ;;  %v1071_v57 = vmax.f32 %v973_v51, 0.0  ;;  %v848_v58 = vadd.f32 %v1672_v13, %v847_v54  ;;  %v976_v59 = vadd.f32 %v1672_v13, %v975_v55  ;;  %v849_v60 = vpop.f32.mrb[43].mxu0  ;;  %v977_v61 = vpop.f32.mrb[43].mxu1 }
 0x15e   : > { %1103 = vst [vmem:[%s1681_s23 + $0xa0] sm:$0xff] %v1039_v56  ;;  %1135 = vst [vmem:[%s1681_s23 + $0x1a0] sm:$0xff] %v1071_v57  ;;  %v1040_v62 = vmax.f32 %v848_v58, 0.0  ;;  %v1072_v63 = vmax.f32 %v976_v59, 0.0 }
 0x160   : > { %1104 = vst [vmem:[%s1681_s23 + $0xa8] sm:$0xff] %v1040_v62  ;;  %1136 = vst [vmem:[%s1681_s23 + $0x1a8] sm:$0xff] %v1072_v63 }
 0x161   : > { %v852_v0 = vpop.f32.mrb[44].mxu0  ;;  %v980_v1 = vpop.f32.mrb[44].mxu1 }
 0x162   : > { %v853_v2 = vadd.f32 %v1672_v13, %v852_v0  ;;  %v981_v3 = vadd.f32 %v1672_v13, %v980_v1  ;;  %v854_v4 = vpop.f32.mrb[45].mxu0  ;;  %v982_v5 = vpop.f32.mrb[45].mxu1 }
 0x163   : > { %v855_v6 = vpop.f32.mrb[46].mxu0  ;;  %v983_v7 = vpop.f32.mrb[46].mxu1 }
 0x164   : > { %v1041_v8 = vmax.f32 %v853_v2, 0.0  ;;  %v1073_v9 = vmax.f32 %v981_v3, 0.0  ;;  %v856_v10 = vadd.f32 %v1672_v13, %v855_v6  ;;  %v984_v11 = vadd.f32 %v1672_v13, %v983_v7  ;;  %v857_v12 = vpop.f32.mrb[47].mxu0  ;;  %v985_v14 = vpop.f32.mrb[47].mxu1 }
 0x166   : > { %1105 = vst [vmem:[%s1681_s23 + $0xb0] sm:$0xff] %v1041_v8  ;;  %1137 = vst [vmem:[%s1681_s23 + $0x1b0] sm:$0xff] %v1073_v9  ;;  %v1042_v15 = vmax.f32 %v856_v10, 0.0  ;;  %v1074_v16 = vmax.f32 %v984_v11, 0.0 }
 0x168   : > { %1106 = vst [vmem:[%s1681_s23 + $0xb8] sm:$0xff] %v1042_v15  ;;  %1138 = vst [vmem:[%s1681_s23 + $0x1b8] sm:$0xff] %v1074_v16 }
 0x169   : > { %v860_v17 = vpop.f32.mrb[48].mxu0  ;;  %v988_v18 = vpop.f32.mrb[48].mxu1 }
 0x16a   : > { %v861_v19 = vadd.f32 %v1672_v13, %v860_v17  ;;  %v989_v20 = vadd.f32 %v1672_v13, %v988_v18  ;;  %v862_v21 = vpop.f32.mrb[49].mxu0  ;;  %v990_v22 = vpop.f32.mrb[49].mxu1 }
 0x16b   : > { %v863_v23 = vpop.f32.mrb[50].mxu0  ;;  %v991_v24 = vpop.f32.mrb[50].mxu1 }
 0x16c   : > { %v1043_v25 = vmax.f32 %v861_v19, 0.0  ;;  %v1075_v26 = vmax.f32 %v989_v20, 0.0  ;;  %v864_v27 = vadd.f32 %v1672_v13, %v863_v23  ;;  %v992_v28 = vadd.f32 %v1672_v13, %v991_v24  ;;  %v865_v29 = vpop.f32.mrb[51].mxu0  ;;  %v993_v30 = vpop.f32.mrb[51].mxu1 }
 0x16e   : > { %1107 = vst [vmem:[%s1681_s23 + $0xc0] sm:$0xff] %v1043_v25  ;;  %1139 = vst [vmem:[%s1681_s23 + $0x1c0] sm:$0xff] %v1075_v26  ;;  %v1044_v31 = vmax.f32 %v864_v27, 0.0  ;;  %v1076_v32 = vmax.f32 %v992_v28, 0.0 }
 0x170   : > { %1108 = vst [vmem:[%s1681_s23 + $0xc8] sm:$0xff] %v1044_v31  ;;  %1140 = vst [vmem:[%s1681_s23 + $0x1c8] sm:$0xff] %v1076_v32 }
 0x171   : > { %v868_v33 = vpop.f32.mrb[52].mxu0  ;;  %v996_v34 = vpop.f32.mrb[52].mxu1 }
 0x172   : > { %v869_v35 = vadd.f32 %v1672_v13, %v868_v33  ;;  %v997_v36 = vadd.f32 %v1672_v13, %v996_v34  ;;  %v870_v37 = vpop.f32.mrb[53].mxu0  ;;  %v998_v38 = vpop.f32.mrb[53].mxu1 }
 0x173   : > { %v871_v39 = vpop.f32.mrb[54].mxu0  ;;  %v999_v40 = vpop.f32.mrb[54].mxu1 }
 0x174   : > { %v1045_v41 = vmax.f32 %v869_v35, 0.0  ;;  %v1077_v42 = vmax.f32 %v997_v36, 0.0  ;;  %v872_v43 = vadd.f32 %v1672_v13, %v871_v39  ;;  %v1000_v44 = vadd.f32 %v1672_v13, %v999_v40  ;;  %v873_v45 = vpop.f32.mrb[55].mxu0  ;;  %v1001_v46 = vpop.f32.mrb[55].mxu1 }
 0x176   : > { %1109 = vst [vmem:[%s1681_s23 + $0xd0] sm:$0xff] %v1045_v41  ;;  %1141 = vst [vmem:[%s1681_s23 + $0x1d0] sm:$0xff] %v1077_v42  ;;  %v1046_v47 = vmax.f32 %v872_v43, 0.0  ;;  %v1078_v48 = vmax.f32 %v1000_v44, 0.0 }
 0x178   : > { %1110 = vst [vmem:[%s1681_s23 + $0xd8] sm:$0xff] %v1046_v47  ;;  %1142 = vst [vmem:[%s1681_s23 + $0x1d8] sm:$0xff] %v1078_v48 }
 0x179   : > { %v876_v49 = vpop.f32.mrb[56].mxu0  ;;  %v1004_v50 = vpop.f32.mrb[56].mxu1 }
 0x17a   : > { %v877_v51 = vadd.f32 %v1672_v13, %v876_v49  ;;  %v1005_v52 = vadd.f32 %v1672_v13, %v1004_v50  ;;  %v878_v53 = vpop.f32.mrb[57].mxu0  ;;  %v1006_v54 = vpop.f32.mrb[57].mxu1 }
 0x17b   : > { %v879_v55 = vpop.f32.mrb[58].mxu0  ;;  %v1007_v56 = vpop.f32.mrb[58].mxu1 }
 0x17c   : > { %v1047_v57 = vmax.f32 %v877_v51, 0.0  ;;  %v1079_v58 = vmax.f32 %v1005_v52, 0.0  ;;  %v880_v59 = vadd.f32 %v1672_v13, %v879_v55  ;;  %v1008_v60 = vadd.f32 %v1672_v13, %v1007_v56  ;;  %v881_v61 = vpop.f32.mrb[59].mxu0  ;;  %v1009_v62 = vpop.f32.mrb[59].mxu1 }
 0x17e   : > { %1111 = vst [vmem:[%s1681_s23 + $0xe0] sm:$0xff] %v1047_v57  ;;  %1143 = vst [vmem:[%s1681_s23 + $0x1e0] sm:$0xff] %v1079_v58  ;;  %v1048_v63 = vmax.f32 %v880_v59, 0.0  ;;  %v1080_v0 = vmax.f32 %v1008_v60, 0.0 }
 0x180   : > { %1112 = vst [vmem:[%s1681_s23 + $0xe8] sm:$0xff] %v1048_v63  ;;  %1144 = vst [vmem:[%s1681_s23 + $0x1e8] sm:$0xff] %v1080_v0 }
 0x181   : > { %v884_v1 = vpop.f32.mrb[60].mxu0  ;;  %v1012_v2 = vpop.f32.mrb[60].mxu1 }
 0x182   : > { %v885_v3 = vadd.f32 %v1672_v13, %v884_v1  ;;  %v1013_v4 = vadd.f32 %v1672_v13, %v1012_v2  ;;  %v886_v5 = vpop.f32.mrb[61].mxu0  ;;  %v1014_v6 = vpop.f32.mrb[61].mxu1 }
 0x183   : > { %v887_v7 = vpop.f32.mrb[62].mxu0  ;;  %v1015_v8 = vpop.f32.mrb[62].mxu1 }
 0x184   : > { %v1049_v9 = vmax.f32 %v885_v3, 0.0  ;;  %v1081_v10 = vmax.f32 %v1013_v4, 0.0  ;;  %v888_v11 = vadd.f32 %v1672_v13, %v887_v7  ;;  %v1016_v12 = vadd.f32 %v1672_v13, %v1015_v8  ;;  %v889_v14 = vpop.f32.mrb[63].mxu0  ;;  %v1017_v15 = vpop.f32.mrb[63].mxu1 }
 0x186   : > { %1113 = vst [vmem:[%s1681_s23 + $0xf0] sm:$0xff] %v1049_v9  ;;  %1145 = vst [vmem:[%s1681_s23 + $0x1f0] sm:$0xff] %v1081_v10  ;;  %v1050_v16 = vmax.f32 %v888_v11, 0.0  ;;  %v1082_v17 = vmax.f32 %v1016_v12, 0.0 }
 0x188   : > { %1114 = vst [vmem:[%s1681_s23 + $0xf8] sm:$0xff] %v1050_v16  ;;  %1146 = vst [vmem:[%s1681_s23 + $0x1f8] sm:$0xff] %v1082_v17 }
 0x189 PF: > { %s13_s12 = sadd.s32 1, %s1472_s12  }
 0x18a   : > { %p10_p4 = scmp.ge.s32.totalorder %s13_s12, 4  }
 0x18c   :  { %12 = sbr.rel (!%p10_p4) target bundleno = 1 (0x1), region = 62 }

// kernel: cnn_dqn_forward.5
= control target key start
LH: loop header
LB: loop body
LE: loop exit
PB: predicated region body
PF: predicated region fallthrough
CT: control target
= control target key end

     0   :  { %s1512_s1 = inlined_call_operand.vmem [shape: bf16[512,128], index: 1, kind: input, shape index: {}]   ;;  %s1513_s0 = inlined_call_operand.vmem [shape: bf16[176,512], index: 0, kind: input, shape index: {}]   ;;  %s1514_s2 = inlined_call_operand.vmem [shape: f32[1,128], index: 2, kind: input, shape index: {}]   ;;  %s1515_s3 = inlined_call_operand.vmem [shape: f32[176,128], index: 3, kind: output, shape index: {}]  }
   0x1   :  { %v1073_v0 = vld [vmem:[%s1512_s1 + $0x40] sm:$0xff]   ;;  %v1077_v4 = vld [vmem:[%s1512_s1 + $0x48] sm:$0xff]   ;;  %v1081_v8 = vld [vmem:[%s1512_s1 + $0x50] sm:$0xff]  }
   0x2   :  { %v1074_v1 = vld [vmem:[%s1512_s1 + $0xc0] sm:$0xff]   ;;  %909 = vmatprep.subr.bf16.mxu0 %v1073_v0  ;;  %v1078_v5 = vld [vmem:[%s1512_s1 + $0xc8] sm:$0xff]   ;;  %v1082_v9 = vld [vmem:[%s1512_s1 + $0xd0] sm:$0xff]  }
   0x3   :  { %v1075_v2 = vld [vmem:[%s1512_s1] sm:$0xff]   ;;  %991 = vmatprep.subr.bf16.mxu1 %v1074_v1  ;;  %v1079_v6 = vld [vmem:[%s1512_s1 + $0x8] sm:$0xff]   ;;  %v1083_v10 = vld [vmem:[%s1512_s1 + $0x10] sm:$0xff]  }
   0x4   :  { %v1076_v3 = vld [vmem:[%s1512_s1 + $0x80] sm:$0xff]   ;;  %910 = vmatpush3.bf16.msra.mxu0 %v1075_v2  ;;  %v1080_v7 = vld [vmem:[%s1512_s1 + $0x88] sm:$0xff]   ;;  %v1084_v11 = vld [vmem:[%s1512_s1 + $0x90] sm:$0xff]  }
   0x5   :  { %992 = vmatpush3.bf16.msra.mxu1 %v1076_v3  ;;  %911 = vmatprep.subr.bf16.mxu0 %v1077_v4  ;;  %v1085_v12 = vld [vmem:[%s1512_s1 + $0x58] sm:$0xff]   ;;  %v1089_v16 = vld [vmem:[%s1512_s1 + $0x60] sm:$0xff]   ;;  %v1093_v20 = vld [vmem:[%s1512_s1 + $0x68] sm:$0xff]  }
   0x6   :  { %993 = vmatprep.subr.bf16.mxu1 %v1078_v5  ;;  %v1086_v13 = vld [vmem:[%s1512_s1 + $0xd8] sm:$0xff]   ;;  %v1090_v17 = vld [vmem:[%s1512_s1 + $0xe0] sm:$0xff]   ;;  %v1094_v21 = vld [vmem:[%s1512_s1 + $0xe8] sm:$0xff]  }
   0x7   :  { %v1087_v14 = vld [vmem:[%s1512_s1 + $0x18] sm:$0xff]   ;;  %v1091_v18 = vld [vmem:[%s1512_s1 + $0x20] sm:$0xff]   ;;  %v1095_v22 = vld [vmem:[%s1512_s1 + $0x28] sm:$0xff]  }
   0x8   :  { %912 = vmatpush3.bf16.msra.mxu0 %v1079_v6  ;;  %v1088_v15 = vld [vmem:[%s1512_s1 + $0x98] sm:$0xff]   ;;  %v1092_v19 = vld [vmem:[%s1512_s1 + $0xa0] sm:$0xff]   ;;  %v1096_v23 = vld [vmem:[%s1512_s1 + $0xa8] sm:$0xff]  }
   0x9   :  { %994 = vmatpush3.bf16.msra.mxu1 %v1080_v7  ;;  %913 = vmatprep.subr.bf16.mxu0 %v1081_v8  ;;  %v1097_v24 = vld [vmem:[%s1512_s1 + $0x70] sm:$0xff]   ;;  %v1101_v28 = vld [vmem:[%s1512_s1 + $0x78] sm:$0xff]  }
   0xa   :  { %995 = vmatprep.subr.bf16.mxu1 %v1082_v9  ;;  %v1098_v25 = vld [vmem:[%s1512_s1 + $0xf0] sm:$0xff]   ;;  %v1102_v29 = vld [vmem:[%s1512_s1 + $0xf8] sm:$0xff]  }
   0xb   :  { %v1099_v26 = vld [vmem:[%s1512_s1 + $0x30] sm:$0xff]   ;;  %v1103_v30 = vld [vmem:[%s1512_s1 + $0x38] sm:$0xff]  }
   0xc   :  { %914 = vmatpush3.bf16.msra.mxu0 %v1083_v10  ;;  %v1100_v27 = vld [vmem:[%s1512_s1 + $0xb0] sm:$0xff]   ;;  %v1104_v31 = vld [vmem:[%s1512_s1 + $0xb8] sm:$0xff]  }
   0xd   :  { %996 = vmatpush3.bf16.msra.mxu1 %v1084_v11  ;;  %915 = vmatprep.subr.bf16.mxu0 %v1085_v12  ;;  %v1105_v32 = vld [vmem:[%s1513_s0] ss:$16 sps:$4 sm:$0xff]   ;;  %v1107_v33 = vld [vmem:[%s1513_s0 + $0x4] ss:$16 sps:$4 sm:$0xff]   ;;  %v1108_v34 = vld [vmem:[%s1513_s0 + $0x8] ss:$16 sps:$4 sm:$0xff]  }
   0xe   :  { %997 = vmatprep.subr.bf16.mxu1 %v1086_v13  ;;  %v1110_v35 = vld [vmem:[%s1513_s0 + $0xc] ss:$16 sps:$4 sm:$0xff]   ;;  %574 = vmatprep.mubr.bf16.mxu0 %v1107_v33  ;;  %v1111_v36 = vld [vmem:[%s1513_s0 + $0x24] ss:$16 sps:$4 sm:$0xff]   ;;  %v1115_v38 = vld [vmem:[%s1513_s0 + $0x20] ss:$16 sps:$4 sm:$0xff]  }
   0xf   :  { %695 = vmatprep.mubr.bf16.mxu1 %v1110_v35  ;;  %v1113_v37 = vld [vmem:[%s1513_s0 + $0x2c] ss:$16 sps:$4 sm:$0xff]   ;;  %v1116_v39 = vld [vmem:[%s1513_s0 + $0x28] ss:$16 sps:$4 sm:$0xff]   ;;  %v1117_v40 = vld [vmem:[%s1513_s0 + $0x44] ss:$16 sps:$4 sm:$0xff]  }
  0x10   :  { %916 = vmatpush3.bf16.msra.mxu0 %v1087_v14  ;;  %v1119_v41 = vld [vmem:[%s1513_s0 + $0x4c] ss:$16 sps:$4 sm:$0xff]   ;;  %v1121_v42 = vld [vmem:[%s1513_s0 + $0x40] ss:$16 sps:$4 sm:$0xff]   ;;  %v1122_v43 = vld [vmem:[%s1513_s0 + $0x48] ss:$16 sps:$4 sm:$0xff]  }
  0x11   :  { %998 = vmatpush3.bf16.msra.mxu1 %v1088_v15  ;;  %917 = vmatprep.subr.bf16.mxu0 %v1089_v16  ;;  %v1123_v44 = vld [vmem:[%s1513_s0 + $0x64] ss:$16 sps:$4 sm:$0xff]   ;;  %v1125_v45 = vld [vmem:[%s1513_s0 + $0x6c] ss:$16 sps:$4 sm:$0xff]   ;;  %v1127_v46 = vld [vmem:[%s1513_s0 + $0x60] ss:$16 sps:$4 sm:$0xff]  }
  0x12   :  { %999 = vmatprep.subr.bf16.mxu1 %v1090_v17  ;;  %v1128_v47 = vld [vmem:[%s1513_s0 + $0x68] ss:$16 sps:$4 sm:$0xff]   ;;  %v1129_v48 = vld [vmem:[%s1513_s0 + $0x84] ss:$16 sps:$4 sm:$0xff]   ;;  %v1131_v49 = vld [vmem:[%s1513_s0 + $0x8c] ss:$16 sps:$4 sm:$0xff]  }
  0x13   :  { %v1133_v50 = vld [vmem:[%s1513_s0 + $0x80] ss:$16 sps:$4 sm:$0xff]   ;;  %v1134_v51 = vld [vmem:[%s1513_s0 + $0x88] ss:$16 sps:$4 sm:$0xff]   ;;  %v1135_v52 = vld [vmem:[%s1513_s0 + $0xa4] ss:$16 sps:$4 sm:$0xff]  }
  0x14   :  { %918 = vmatpush3.bf16.msra.mxu0 %v1091_v18  ;;  %v1137_v53 = vld [vmem:[%s1513_s0 + $0xac] ss:$16 sps:$4 sm:$0xff]   ;;  %v1139_v54 = vld [vmem:[%s1513_s0 + $0xa0] ss:$16 sps:$4 sm:$0xff]   ;;  %v1140_v55 = vld [vmem:[%s1513_s0 + $0xa8] ss:$16 sps:$4 sm:$0xff]  }
  0x15   :  { %1000 = vmatpush3.bf16.msra.mxu1 %v1092_v19  ;;  %919 = vmatprep.subr.bf16.mxu0 %v1093_v20  ;;  %v1141_v56 = vld [vmem:[%s1513_s0 + $0xc4] ss:$16 sps:$4 sm:$0xff]   ;;  %v1143_v57 = vld [vmem:[%s1513_s0 + $0xcc] ss:$16 sps:$4 sm:$0xff]   ;;  %v1145_v58 = vld [vmem:[%s1513_s0 + $0xc0] ss:$16 sps:$4 sm:$0xff]  }
  0x16   :  { %1001 = vmatprep.subr.bf16.mxu1 %v1094_v21  ;;  %v1146_v59 = vld [vmem:[%s1513_s0 + $0xc8] ss:$16 sps:$4 sm:$0xff]   ;;  %v1147_v60 = vld [vmem:[%s1513_s0 + $0xe4] ss:$16 sps:$4 sm:$0xff]   ;;  %v1149_v61 = vld [vmem:[%s1513_s0 + $0xec] ss:$16 sps:$4 sm:$0xff]  }
  0x17   :  { %v1151_v62 = vld [vmem:[%s1513_s0 + $0xe0] ss:$16 sps:$4 sm:$0xff]   ;;  %v1152_v63 = vld [vmem:[%s1513_s0 + $0xe8] ss:$16 sps:$4 sm:$0xff]   ;;  %v1153_v0 = vld [vmem:[%s1513_s0 + $0x104] ss:$16 sps:$4 sm:$0xff]  }
  0x18   :  { %920 = vmatpush3.bf16.msra.mxu0 %v1095_v22  ;;  %v1155_v1 = vld [vmem:[%s1513_s0 + $0x10c] ss:$16 sps:$4 sm:$0xff]   ;;  %v1157_v2 = vld [vmem:[%s1513_s0 + $0x100] ss:$16 sps:$4 sm:$0xff]   ;;  %v1158_v3 = vld [vmem:[%s1513_s0 + $0x108] ss:$16 sps:$4 sm:$0xff]  }
  0x19   :  { %1002 = vmatpush3.bf16.msra.mxu1 %v1096_v23  ;;  %921 = vmatprep.subr.bf16.mxu0 %v1097_v24  ;;  %v1159_v4 = vld [vmem:[%s1513_s0 + $0x124] ss:$16 sps:$4 sm:$0xff]   ;;  %v1161_v5 = vld [vmem:[%s1513_s0 + $0x12c] ss:$16 sps:$4 sm:$0xff]   ;;  %v1163_v6 = vld [vmem:[%s1513_s0 + $0x120] ss:$16 sps:$4 sm:$0xff]  }
  0x1a   :  { %1003 = vmatprep.subr.bf16.mxu1 %v1098_v25  ;;  %v1164_v7 = vld [vmem:[%s1513_s0 + $0x128] ss:$16 sps:$4 sm:$0xff]   ;;  %v1165_v8 = vld [vmem:[%s1513_s0 + $0x144] ss:$16 sps:$4 sm:$0xff]   ;;  %v1167_v9 = vld [vmem:[%s1513_s0 + $0x14c] ss:$16 sps:$4 sm:$0xff]  }
  0x1b   :  { %v1169_v10 = vld [vmem:[%s1513_s0 + $0x140] ss:$16 sps:$4 sm:$0xff]   ;;  %v1170_v11 = vld [vmem:[%s1513_s0 + $0x148] ss:$16 sps:$4 sm:$0xff]  }
  0x1c   :  { %922 = vmatpush3.bf16.msra.mxu0 %v1099_v26  ;;  %v1422_v14 = vld [vmem:[%s1514_s2] ss:$0 sm:$0xff] }
  0x1d   :  { %1004 = vmatpush3.bf16.msra.mxu1 %v1100_v27  ;;  %923 = vmatprep.subr.bf16.mxu0 %v1101_v28 }
  0x1e   :  { %1005 = vmatprep.subr.bf16.mxu1 %v1102_v29 }
  0x20   :  { %924 = vmatpush3.bf16.msra.mxu0 %v1103_v30 }
  0x21   :  { %1006 = vmatpush3.bf16.msra.mxu1 %v1104_v31 }
  0x23   :  { %575 = vmatmul.mubr.bf16.vlgmr.msra.gmra.mrb[0].mxu0 %v1105_v32 }
  0x24   :  { %696 = vmatmul.mubr.bf16.vlgmr.msra.gmra.mrb[0].mxu1 %v1108_v34  ;;  %582 = vmatprep.mubr.bf16.mxu0 %v1111_v36 }
  0x25   :  { %703 = vmatprep.mubr.bf16.mxu1 %v1113_v37 }
  0x2b   :  { %583 = vmatmul.mubr.bf16.gmra.mrb[4].mxu0 %v1115_v38 }
  0x2c   :  { %704 = vmatmul.mubr.bf16.gmra.mrb[4].mxu1 %v1116_v39  ;;  %590 = vmatprep.mubr.bf16.mxu0 %v1117_v40 }
  0x2d   :  { %711 = vmatprep.mubr.bf16.mxu1 %v1119_v41 }
  0x33   :  { %591 = vmatmul.mubr.bf16.gmra.mrb[8].mxu0 %v1121_v42 }
  0x34   :  { %712 = vmatmul.mubr.bf16.gmra.mrb[8].mxu1 %v1122_v43  ;;  %598 = vmatprep.mubr.bf16.mxu0 %v1123_v44 }
  0x35   :  { %719 = vmatprep.mubr.bf16.mxu1 %v1125_v45 }
  0x3b   :  { %599 = vmatmul.mubr.bf16.gmra.mrb[12].mxu0 %v1127_v46 }
  0x3c   :  { %720 = vmatmul.mubr.bf16.gmra.mrb[12].mxu1 %v1128_v47  ;;  %606 = vmatprep.mubr.bf16.mxu0 %v1129_v48 }
  0x3d   :  { %727 = vmatprep.mubr.bf16.mxu1 %v1131_v49 }
  0x43   :  { %607 = vmatmul.mubr.bf16.gmra.mrb[16].mxu0 %v1133_v50 }
  0x44   :  { %728 = vmatmul.mubr.bf16.gmra.mrb[16].mxu1 %v1134_v51  ;;  %614 = vmatprep.mubr.bf16.mxu0 %v1135_v52 }
  0x45   :  { %735 = vmatprep.mubr.bf16.mxu1 %v1137_v53 }
  0x4b   :  { %615 = vmatmul.mubr.bf16.gmra.mrb[20].mxu0 %v1139_v54 }
  0x4c   :  { %736 = vmatmul.mubr.bf16.gmra.mrb[20].mxu1 %v1140_v55  ;;  %622 = vmatprep.mubr.bf16.mxu0 %v1141_v56 }
  0x4d   :  { %743 = vmatprep.mubr.bf16.mxu1 %v1143_v57 }
  0x53   :  { %623 = vmatmul.mubr.bf16.gmra.mrb[24].mxu0 %v1145_v58 }
  0x54   :  { %744 = vmatmul.mubr.bf16.gmra.mrb[24].mxu1 %v1146_v59  ;;  %630 = vmatprep.mubr.bf16.mxu0 %v1147_v60 }
  0x55   :  { %751 = vmatprep.mubr.bf16.mxu1 %v1149_v61 }
  0x5b   :  { %631 = vmatmul.mubr.bf16.gmra.mrb[28].mxu0 %v1151_v62 }
  0x5c   :  { %752 = vmatmul.mubr.bf16.gmra.mrb[28].mxu1 %v1152_v63  ;;  %638 = vmatprep.mubr.bf16.mxu0 %v1153_v0 }
  0x5d   :  { %759 = vmatprep.mubr.bf16.mxu1 %v1155_v1 }
  0x63   :  { %639 = vmatmul.mubr.bf16.gmra.mrb[32].mxu0 %v1157_v2 }
  0x64   :  { %760 = vmatmul.mubr.bf16.gmra.mrb[32].mxu1 %v1158_v3  ;;  %646 = vmatprep.mubr.bf16.mxu0 %v1159_v4 }
  0x65   :  { %767 = vmatprep.mubr.bf16.mxu1 %v1161_v5 }
  0x6b   :  { %647 = vmatmul.mubr.bf16.gmra.mrb[36].mxu0 %v1163_v6 }
  0x6c   :  { %768 = vmatmul.mubr.bf16.gmra.mrb[36].mxu1 %v1164_v7  ;;  %654 = vmatprep.mubr.bf16.mxu0 %v1165_v8 }
  0x6d   :  { %775 = vmatprep.mubr.bf16.mxu1 %v1167_v9 }
  0x73   :  { %655 = vmatmul.mubr.bf16.gmra.mrb[40].mxu0 %v1169_v10 }
  0x74   :  { %776 = vmatmul.mubr.bf16.gmra.mrb[40].mxu1 %v1170_v11 }
  0xf6   :  { %v925_v12 = vpop.f32.mrb[0].mxu0 }
  0xf7   :  { %v1007_v13 = vpop.f32.mrb[0].mxu1  ;;  %v926_v15 = vpop.f32.mrb[1].mxu0 }
  0xf8   :  { %v927_v16 = vadd.f32 %v926_v15, %v925_v12  ;;  %v1008_v17 = vpop.f32.mrb[1].mxu1  ;;  %v928_v18 = vpop.f32.mrb[2].mxu0 }
  0xf9   :  { %v1009_v19 = vadd.f32 %v1008_v17, %v1007_v13  ;;  %v1010_v20 = vpop.f32.mrb[2].mxu1  ;;  %v929_v21 = vpop.f32.mrb[3].mxu0 }
  0xfa   :  { %v577_v22 = vadd.f32 %v927_v16, %v1422_v14  ;;  %v930_v23 = vadd.f32 %v929_v21, %v928_v18  ;;  %v1011_v24 = vpop.f32.mrb[3].mxu1 }
  0xfb   :  { %v1012_v25 = vadd.f32 %v1011_v24, %v1010_v20 }
  0xfc   :  { %v698_v26 = vadd.f32 %v1009_v19, %v577_v22  ;;  %v580_v27 = vadd.f32 %v930_v23, %v1422_v14 }
  0xfe   :  { %v784_v28 = vmax.f32 %v698_v26, 0.0  ;;  %v701_v29 = vadd.f32 %v1012_v25, %v580_v27  ;;  %v931_v30 = vpop.f32.mrb[4].mxu0 }
  0xff   :  { %v1013_v31 = vpop.f32.mrb[4].mxu1  ;;  %v932_v32 = vpop.f32.mrb[5].mxu0 }
 0x100   :  { %806 = vst [vmem:[%s1515_s3] sm:$0xff] %v784_v28  ;;  %v785_v33 = vmax.f32 %v701_v29, 0.0  ;;  %v933_v34 = vadd.f32 %v932_v32, %v931_v30  ;;  %v1014_v35 = vpop.f32.mrb[5].mxu1  ;;  %v934_v36 = vpop.f32.mrb[6].mxu0 }
 0x101   :  { %v1015_v37 = vadd.f32 %v1014_v35, %v1013_v31  ;;  %v1016_v38 = vpop.f32.mrb[6].mxu1  ;;  %v935_v39 = vpop.f32.mrb[7].mxu0 }
 0x102   :  { %807 = vst [vmem:[%s1515_s3 + $0x8] sm:$0xff] %v785_v33  ;;  %v585_v40 = vadd.f32 %v933_v34, %v1422_v14  ;;  %v936_v41 = vadd.f32 %v935_v39, %v934_v36  ;;  %v1017_v42 = vpop.f32.mrb[7].mxu1 }
 0x103   :  { %v1018_v43 = vadd.f32 %v1017_v42, %v1016_v38 }
 0x104   :  { %v706_v44 = vadd.f32 %v1015_v37, %v585_v40  ;;  %v588_v45 = vadd.f32 %v936_v41, %v1422_v14 }
 0x106   :  { %v786_v46 = vmax.f32 %v706_v44, 0.0  ;;  %v709_v47 = vadd.f32 %v1018_v43, %v588_v45  ;;  %v937_v48 = vpop.f32.mrb[8].mxu0 }
 0x107   :  { %v1019_v49 = vpop.f32.mrb[8].mxu1  ;;  %v938_v50 = vpop.f32.mrb[9].mxu0 }
 0x108   :  { %808 = vst [vmem:[%s1515_s3 + $0x10] sm:$0xff] %v786_v46  ;;  %v787_v51 = vmax.f32 %v709_v47, 0.0  ;;  %v939_v52 = vadd.f32 %v938_v50, %v937_v48  ;;  %v1020_v53 = vpop.f32.mrb[9].mxu1  ;;  %v940_v54 = vpop.f32.mrb[10].mxu0 }
 0x109   :  { %v1021_v55 = vadd.f32 %v1020_v53, %v1019_v49  ;;  %v1022_v56 = vpop.f32.mrb[10].mxu1  ;;  %v941_v57 = vpop.f32.mrb[11].mxu0 }
 0x10a   :  { %809 = vst [vmem:[%s1515_s3 + $0x18] sm:$0xff] %v787_v51  ;;  %v593_v58 = vadd.f32 %v939_v52, %v1422_v14  ;;  %v942_v59 = vadd.f32 %v941_v57, %v940_v54  ;;  %v1023_v60 = vpop.f32.mrb[11].mxu1 }
 0x10b   :  { %v1024_v61 = vadd.f32 %v1023_v60, %v1022_v56 }
 0x10c   :  { %v714_v62 = vadd.f32 %v1021_v55, %v593_v58  ;;  %v596_v63 = vadd.f32 %v942_v59, %v1422_v14 }
 0x10e   :  { %v788_v0 = vmax.f32 %v714_v62, 0.0  ;;  %v717_v1 = vadd.f32 %v1024_v61, %v596_v63  ;;  %v943_v2 = vpop.f32.mrb[12].mxu0 }
 0x10f   :  { %v1025_v3 = vpop.f32.mrb[12].mxu1  ;;  %v944_v4 = vpop.f32.mrb[13].mxu0 }
 0x110   :  { %810 = vst [vmem:[%s1515_s3 + $0x20] sm:$0xff] %v788_v0  ;;  %v789_v5 = vmax.f32 %v717_v1, 0.0  ;;  %v945_v6 = vadd.f32 %v944_v4, %v943_v2  ;;  %v1026_v7 = vpop.f32.mrb[13].mxu1  ;;  %v946_v8 = vpop.f32.mrb[14].mxu0 }
 0x111   :  { %v1027_v9 = vadd.f32 %v1026_v7, %v1025_v3  ;;  %v1028_v10 = vpop.f32.mrb[14].mxu1  ;;  %v947_v11 = vpop.f32.mrb[15].mxu0 }
 0x112   :  { %811 = vst [vmem:[%s1515_s3 + $0x28] sm:$0xff] %v789_v5  ;;  %v601_v12 = vadd.f32 %v945_v6, %v1422_v14  ;;  %v948_v13 = vadd.f32 %v947_v11, %v946_v8  ;;  %v1029_v15 = vpop.f32.mrb[15].mxu1 }
 0x113   :  { %v1030_v16 = vadd.f32 %v1029_v15, %v1028_v10 }
 0x114   :  { %v722_v17 = vadd.f32 %v1027_v9, %v601_v12  ;;  %v604_v18 = vadd.f32 %v948_v13, %v1422_v14 }
 0x116   :  { %v790_v19 = vmax.f32 %v722_v17, 0.0  ;;  %v725_v20 = vadd.f32 %v1030_v16, %v604_v18  ;;  %v949_v21 = vpop.f32.mrb[16].mxu0 }
 0x117   :  { %v1031_v22 = vpop.f32.mrb[16].mxu1  ;;  %v950_v23 = vpop.f32.mrb[17].mxu0 }
 0x118   :  { %812 = vst [vmem:[%s1515_s3 + $0x30] sm:$0xff] %v790_v19  ;;  %v791_v24 = vmax.f32 %v725_v20, 0.0  ;;  %v951_v25 = vadd.f32 %v950_v23, %v949_v21  ;;  %v1032_v26 = vpop.f32.mrb[17].mxu1  ;;  %v952_v27 = vpop.f32.mrb[18].mxu0 }
 0x119   :  { %v1033_v28 = vadd.f32 %v1032_v26, %v1031_v22  ;;  %v1034_v29 = vpop.f32.mrb[18].mxu1  ;;  %v953_v30 = vpop.f32.mrb[19].mxu0 }
 0x11a   :  { %813 = vst [vmem:[%s1515_s3 + $0x38] sm:$0xff] %v791_v24  ;;  %v609_v31 = vadd.f32 %v951_v25, %v1422_v14  ;;  %v954_v32 = vadd.f32 %v953_v30, %v952_v27  ;;  %v1035_v33 = vpop.f32.mrb[19].mxu1 }
 0x11b   :  { %v1036_v34 = vadd.f32 %v1035_v33, %v1034_v29 }
 0x11c   :  { %v730_v35 = vadd.f32 %v1033_v28, %v609_v31  ;;  %v612_v36 = vadd.f32 %v954_v32, %v1422_v14 }
 0x11e   :  { %v792_v37 = vmax.f32 %v730_v35, 0.0  ;;  %v733_v38 = vadd.f32 %v1036_v34, %v612_v36  ;;  %v955_v39 = vpop.f32.mrb[20].mxu0 }
 0x11f   :  { %v1037_v40 = vpop.f32.mrb[20].mxu1  ;;  %v956_v41 = vpop.f32.mrb[21].mxu0 }
 0x120   :  { %814 = vst [vmem:[%s1515_s3 + $0x40] sm:$0xff] %v792_v37  ;;  %v793_v42 = vmax.f32 %v733_v38, 0.0  ;;  %v957_v43 = vadd.f32 %v956_v41, %v955_v39  ;;  %v1038_v44 = vpop.f32.mrb[21].mxu1  ;;  %v958_v45 = vpop.f32.mrb[22].mxu0 }
 0x121   :  { %v1039_v46 = vadd.f32 %v1038_v44, %v1037_v40  ;;  %v1040_v47 = vpop.f32.mrb[22].mxu1  ;;  %v959_v48 = vpop.f32.mrb[23].mxu0 }
 0x122   :  { %815 = vst [vmem:[%s1515_s3 + $0x48] sm:$0xff] %v793_v42  ;;  %v617_v49 = vadd.f32 %v957_v43, %v1422_v14  ;;  %v960_v50 = vadd.f32 %v959_v48, %v958_v45  ;;  %v1041_v51 = vpop.f32.mrb[23].mxu1 }
 0x123   :  { %v1042_v52 = vadd.f32 %v1041_v51, %v1040_v47 }
 0x124   :  { %v738_v53 = vadd.f32 %v1039_v46, %v617_v49  ;;  %v620_v54 = vadd.f32 %v960_v50, %v1422_v14 }
 0x126   :  { %v794_v55 = vmax.f32 %v738_v53, 0.0  ;;  %v741_v56 = vadd.f32 %v1042_v52, %v620_v54  ;;  %v961_v57 = vpop.f32.mrb[24].mxu0 }
 0x127   :  { %v1043_v58 = vpop.f32.mrb[24].mxu1  ;;  %v962_v59 = vpop.f32.mrb[25].mxu0 }
 0x128   :  { %816 = vst [vmem:[%s1515_s3 + $0x50] sm:$0xff] %v794_v55  ;;  %v795_v60 = vmax.f32 %v741_v56, 0.0  ;;  %v963_v61 = vadd.f32 %v962_v59, %v961_v57  ;;  %v1044_v62 = vpop.f32.mrb[25].mxu1  ;;  %v964_v63 = vpop.f32.mrb[26].mxu0 }
 0x129   :  { %v1045_v0 = vadd.f32 %v1044_v62, %v1043_v58  ;;  %v1046_v1 = vpop.f32.mrb[26].mxu1  ;;  %v965_v2 = vpop.f32.mrb[27].mxu0 }
 0x12a   :  { %817 = vst [vmem:[%s1515_s3 + $0x58] sm:$0xff] %v795_v60  ;;  %v625_v3 = vadd.f32 %v963_v61, %v1422_v14  ;;  %v966_v4 = vadd.f32 %v965_v2, %v964_v63  ;;  %v1047_v5 = vpop.f32.mrb[27].mxu1 }
 0x12b   :  { %v1048_v6 = vadd.f32 %v1047_v5, %v1046_v1 }
 0x12c   :  { %v746_v7 = vadd.f32 %v1045_v0, %v625_v3  ;;  %v628_v8 = vadd.f32 %v966_v4, %v1422_v14 }
 0x12e   :  { %v796_v9 = vmax.f32 %v746_v7, 0.0  ;;  %v749_v10 = vadd.f32 %v1048_v6, %v628_v8  ;;  %v967_v11 = vpop.f32.mrb[28].mxu0 }
 0x12f   :  { %v1049_v12 = vpop.f32.mrb[28].mxu1  ;;  %v968_v13 = vpop.f32.mrb[29].mxu0 }
 0x130   :  { %818 = vst [vmem:[%s1515_s3 + $0x60] sm:$0xff] %v796_v9  ;;  %v797_v15 = vmax.f32 %v749_v10, 0.0  ;;  %v969_v16 = vadd.f32 %v968_v13, %v967_v11  ;;  %v1050_v17 = vpop.f32.mrb[29].mxu1  ;;  %v970_v18 = vpop.f32.mrb[30].mxu0 }
 0x131   :  { %v1051_v19 = vadd.f32 %v1050_v17, %v1049_v12  ;;  %v1052_v20 = vpop.f32.mrb[30].mxu1  ;;  %v971_v21 = vpop.f32.mrb[31].mxu0 }
 0x132   :  { %819 = vst [vmem:[%s1515_s3 + $0x68] sm:$0xff] %v797_v15  ;;  %v633_v22 = vadd.f32 %v969_v16, %v1422_v14  ;;  %v972_v23 = vadd.f32 %v971_v21, %v970_v18  ;;  %v1053_v24 = vpop.f32.mrb[31].mxu1 }
 0x133   :  { %v1054_v25 = vadd.f32 %v1053_v24, %v1052_v20 }
 0x134   :  { %v754_v26 = vadd.f32 %v1051_v19, %v633_v22  ;;  %v636_v27 = vadd.f32 %v972_v23, %v1422_v14 }
 0x136   :  { %v798_v28 = vmax.f32 %v754_v26, 0.0  ;;  %v757_v29 = vadd.f32 %v1054_v25, %v636_v27  ;;  %v973_v30 = vpop.f32.mrb[32].mxu0 }
 0x137   :  { %v1055_v31 = vpop.f32.mrb[32].mxu1  ;;  %v974_v32 = vpop.f32.mrb[33].mxu0 }
 0x138   :  { %820 = vst [vmem:[%s1515_s3 + $0x70] sm:$0xff] %v798_v28  ;;  %v799_v33 = vmax.f32 %v757_v29, 0.0  ;;  %v975_v34 = vadd.f32 %v974_v32, %v973_v30  ;;  %v1056_v35 = vpop.f32.mrb[33].mxu1  ;;  %v976_v36 = vpop.f32.mrb[34].mxu0 }
 0x139   :  { %v1057_v37 = vadd.f32 %v1056_v35, %v1055_v31  ;;  %v1058_v38 = vpop.f32.mrb[34].mxu1  ;;  %v977_v39 = vpop.f32.mrb[35].mxu0 }
 0x13a   :  { %821 = vst [vmem:[%s1515_s3 + $0x78] sm:$0xff] %v799_v33  ;;  %v641_v40 = vadd.f32 %v975_v34, %v1422_v14  ;;  %v978_v41 = vadd.f32 %v977_v39, %v976_v36  ;;  %v1059_v42 = vpop.f32.mrb[35].mxu1 }
 0x13b   :  { %v1060_v43 = vadd.f32 %v1059_v42, %v1058_v38 }
 0x13c   :  { %v762_v44 = vadd.f32 %v1057_v37, %v641_v40  ;;  %v644_v45 = vadd.f32 %v978_v41, %v1422_v14 }
 0x13e   :  { %v800_v46 = vmax.f32 %v762_v44, 0.0  ;;  %v765_v47 = vadd.f32 %v1060_v43, %v644_v45  ;;  %v979_v48 = vpop.f32.mrb[36].mxu0 }
 0x13f   :  { %v1061_v49 = vpop.f32.mrb[36].mxu1  ;;  %v980_v50 = vpop.f32.mrb[37].mxu0 }
 0x140   :  { %822 = vst [vmem:[%s1515_s3 + $0x80] sm:$0xff] %v800_v46  ;;  %v801_v51 = vmax.f32 %v765_v47, 0.0  ;;  %v981_v52 = vadd.f32 %v980_v50, %v979_v48  ;;  %v1062_v53 = vpop.f32.mrb[37].mxu1  ;;  %v982_v54 = vpop.f32.mrb[38].mxu0 }
 0x141   :  { %v1063_v55 = vadd.f32 %v1062_v53, %v1061_v49  ;;  %v1064_v56 = vpop.f32.mrb[38].mxu1  ;;  %v983_v57 = vpop.f32.mrb[39].mxu0 }
 0x142   :  { %823 = vst [vmem:[%s1515_s3 + $0x88] sm:$0xff] %v801_v51  ;;  %v649_v58 = vadd.f32 %v981_v52, %v1422_v14  ;;  %v984_v59 = vadd.f32 %v983_v57, %v982_v54  ;;  %v1065_v60 = vpop.f32.mrb[39].mxu1 }
 0x143   :  { %v1066_v61 = vadd.f32 %v1065_v60, %v1064_v56 }
 0x144   :  { %v770_v62 = vadd.f32 %v1063_v55, %v649_v58  ;;  %v652_v63 = vadd.f32 %v984_v59, %v1422_v14 }
 0x146   :  { %v802_v0 = vmax.f32 %v770_v62, 0.0  ;;  %v773_v1 = vadd.f32 %v1066_v61, %v652_v63  ;;  %v985_v2 = vpop.f32.mrb[40].mxu0 }
 0x147   :  { %v1067_v3 = vpop.f32.mrb[40].mxu1  ;;  %v986_v4 = vpop.f32.mrb[41].mxu0 }
 0x148   :  { %824 = vst [vmem:[%s1515_s3 + $0x90] sm:$0xff] %v802_v0  ;;  %v803_v5 = vmax.f32 %v773_v1, 0.0  ;;  %v987_v6 = vadd.f32 %v986_v4, %v985_v2  ;;  %v1068_v7 = vpop.f32.mrb[41].mxu1  ;;  %v988_v8 = vpop.f32.mrb[42].mxu0 }
 0x149   :  { %v1069_v9 = vadd.f32 %v1068_v7, %v1067_v3  ;;  %v1070_v10 = vpop.f32.mrb[42].mxu1  ;;  %v989_v11 = vpop.f32.mrb[43].mxu0 }
 0x14a   :  { %825 = vst [vmem:[%s1515_s3 + $0x98] sm:$0xff] %v803_v5  ;;  %v657_v12 = vadd.f32 %v987_v6, %v1422_v14  ;;  %v990_v13 = vadd.f32 %v989_v11, %v988_v8  ;;  %v1071_v15 = vpop.f32.mrb[43].mxu1 }
 0x14b   :  { %v1072_v16 = vadd.f32 %v1071_v15, %v1070_v10 }
 0x14c   :  { %v778_v17 = vadd.f32 %v1069_v9, %v657_v12  ;;  %v660_v18 = vadd.f32 %v990_v13, %v1422_v14 }
 0x14e   :  { %v804_v19 = vmax.f32 %v778_v17, 0.0  ;;  %v781_v20 = vadd.f32 %v1072_v16, %v660_v18 }
 0x150   :  { %826 = vst [vmem:[%s1515_s3 + $0xa0] sm:$0xff] %v804_v19  ;;  %v805_v21 = vmax.f32 %v781_v20, 0.0 }
 0x152   :  { %827 = vst [vmem:[%s1515_s3 + $0xa8] sm:$0xff] %v805_v21 }

// kernel: cnn_dqn_forward.6
= control target key start
LH: loop header
LB: loop body
LE: loop exit
PB: predicated region body
PF: predicated region fallthrough
CT: control target
= control target key end

     0   :  { %v1185_v34 = vmov 0.0   ;;  %vm1186_vm0 = vmmov 0   ;;  %vm527_vm1 = vcmask 523264   ;;  %s1534_s1 = inlined_call_operand.vmem [shape: bf16[576,128], index: 1, kind: input, shape index: {}]   ;;  %s1535_s0 = inlined_call_operand.vmem [shape: bf16[112,576], index: 0, kind: input, shape index: {}]   ;;  %s1536_s2 = inlined_call_operand.vmem [shape: f32[1,128], index: 2, kind: input, shape index: {}]   ;;  %s1537_s3 = inlined_call_operand.vmem [shape: f32[112,128], index: 3, kind: output, shape index: {}]  }
   0x1   :  { %v1100_v0 = vld [vmem:[%s1534_s1 + $0x40] sm:$0xff]   ;;  %v1104_v4 = vld [vmem:[%s1534_s1 + $0x48] sm:$0xff]   ;;  %v1108_v8 = vld [vmem:[%s1534_s1 + $0x50] sm:$0xff]  }
   0x2   :  { %v1101_v1 = vld [vmem:[%s1534_s1 + $0xc0] sm:$0xff]   ;;  %927 = vmatprep.subr.bf16.mxu0 %v1100_v0  ;;  %v1105_v5 = vld [vmem:[%s1534_s1 + $0xc8] sm:$0xff]   ;;  %v1109_v9 = vld [vmem:[%s1534_s1 + $0xd0] sm:$0xff]  }
   0x3   :  { %v1102_v2 = vld [vmem:[%s1534_s1] sm:$0xff]   ;;  %985 = vmatprep.subr.bf16.mxu1 %v1101_v1  ;;  %v1106_v6 = vld [vmem:[%s1534_s1 + $0x8] sm:$0xff]   ;;  %v1110_v10 = vld [vmem:[%s1534_s1 + $0x10] sm:$0xff]  }
   0x4   :  { %v1103_v3 = vld [vmem:[%s1534_s1 + $0x80] sm:$0xff]   ;;  %928 = vmatpush3.bf16.msra.mxu0 %v1102_v2  ;;  %v1107_v7 = vld [vmem:[%s1534_s1 + $0x88] sm:$0xff]   ;;  %v1111_v11 = vld [vmem:[%s1534_s1 + $0x90] sm:$0xff]  }
   0x5   :  { %986 = vmatpush3.bf16.msra.mxu1 %v1103_v3  ;;  %929 = vmatprep.subr.bf16.mxu0 %v1104_v4  ;;  %v1112_v12 = vld [vmem:[%s1534_s1 + $0x58] sm:$0xff]   ;;  %v1116_v16 = vld [vmem:[%s1534_s1 + $0x60] sm:$0xff]   ;;  %v1120_v20 = vld [vmem:[%s1534_s1 + $0x68] sm:$0xff]  }
   0x6   :  { %987 = vmatprep.subr.bf16.mxu1 %v1105_v5  ;;  %v1113_v13 = vld [vmem:[%s1534_s1 + $0xd8] sm:$0xff]   ;;  %v1117_v17 = vld [vmem:[%s1534_s1 + $0xe0] sm:$0xff]   ;;  %v1121_v21 = vld [vmem:[%s1534_s1 + $0xe8] sm:$0xff]  }
   0x7   :  { %v1114_v14 = vld [vmem:[%s1534_s1 + $0x18] sm:$0xff]   ;;  %v1118_v18 = vld [vmem:[%s1534_s1 + $0x20] sm:$0xff]   ;;  %v1122_v22 = vld [vmem:[%s1534_s1 + $0x28] sm:$0xff]  }
   0x8   :  { %930 = vmatpush3.bf16.msra.mxu0 %v1106_v6  ;;  %v1115_v15 = vld [vmem:[%s1534_s1 + $0x98] sm:$0xff]   ;;  %v1119_v19 = vld [vmem:[%s1534_s1 + $0xa0] sm:$0xff]   ;;  %v1123_v23 = vld [vmem:[%s1534_s1 + $0xa8] sm:$0xff]  }
   0x9   :  { %988 = vmatpush3.bf16.msra.mxu1 %v1107_v7  ;;  %931 = vmatprep.subr.bf16.mxu0 %v1108_v8  ;;  %v1124_v24 = vld [vmem:[%s1534_s1 + $0x70] sm:$0xff]   ;;  %v1128_v28 = vld [vmem:[%s1534_s1 + $0x78] sm:$0xff]   ;;  %v1137_v36 = vld [vmem:[%s1535_s0 + $0xc] ss:$20 sps:$4 sm:$0xff]  }
   0xa   :  { %989 = vmatprep.subr.bf16.mxu1 %v1109_v9  ;;  %v1125_v25 = vld [vmem:[%s1534_s1 + $0xf0] sm:$0xff]   ;;  %v1129_v29 = vld [vmem:[%s1534_s1 + $0xf8] sm:$0xff]   ;;  %v1138_v37 = vld [vmem:[%s1534_s1 + $0x100] sm:$0xff]   ;;  %670 = vmatprep.mubr.bf16.mxu1 %v1137_v36 }
   0xb   :  { %v1126_v26 = vld [vmem:[%s1534_s1 + $0x30] sm:$0xff]   ;;  %v1130_v30 = vld [vmem:[%s1534_s1 + $0x38] sm:$0xff]   ;;  %v1139_v38 = vld [vmem:[%s1535_s0 + $0x2c] ss:$20 sps:$4 sm:$0xff]  }
   0xc   :  { %932 = vmatpush3.bf16.msra.mxu0 %v1110_v10  ;;  %v1127_v27 = vld [vmem:[%s1534_s1 + $0xb0] sm:$0xff]   ;;  %v1131_v31 = vld [vmem:[%s1534_s1 + $0xb8] sm:$0xff]   ;;  %v1149_v43 = vld [vmem:[%s1534_s1 + $0x108] sm:$0xff]  }
   0xd   :  { %990 = vmatpush3.bf16.msra.mxu1 %v1111_v11  ;;  %933 = vmatprep.subr.bf16.mxu0 %v1112_v12  ;;  %v1132_v32 = vld [vmem:[%s1535_s0] ss:$20 sps:$4 sm:$0xff]   ;;  %v1134_v33 = vld [vmem:[%s1535_s0 + $0x4] ss:$20 sps:$4 sm:$0xff]   ;;  %v1135_v35 = vld [vmem:[%s1535_s0 + $0x8] ss:$20 sps:$4 sm:$0xff]  }
   0xe   :  { %991 = vmatprep.subr.bf16.mxu1 %v1113_v13  ;;  %581 = vmatprep.mubr.bf16.mxu0 %v1134_v33  ;;  %v1141_v39 = vld [vmem:[%s1535_s0 + $0x34] ss:$20 sps:$4 sm:$0xff]   ;;  %v1144_v41 = vld [vmem:[%s1535_s0 + $0x30] ss:$20 sps:$4 sm:$0xff]   ;;  %v1151_v47 = vld [vmem:[%s1535_s0 + $0x58] ss:$20 sps:$4 sm:$0xff]  }
   0xf   :  { %v1143_v40 = vld [vmem:[%s1535_s0 + $0x28] ss:$20 sps:$4 sm:$0xff]   ;;  %v1158_v45 = vld [vmem:[%s1534_s1 + $0x110] sm:$0xff]   ;;  %v1154_v49 = vld [vmem:[%s1535_s0 + $0x84] ss:$20 sps:$4 sm:$0xff]  }
  0x10   :  { %934 = vmatpush3.bf16.msra.mxu0 %v1114_v14  ;;  %v1145_v42 = vld [vmem:[%s1535_s0 + $0x54] ss:$20 sps:$4 sm:$0xff]   ;;  %v1147_v44 = vld [vmem:[%s1535_s0 + $0x5c] ss:$20 sps:$4 sm:$0xff]   ;;  %v1156_v51 = vld [vmem:[%s1535_s0 + $0x78] ss:$20 sps:$4 sm:$0xff]  }
  0x11   :  { %992 = vmatpush3.bf16.msra.mxu1 %v1115_v15  ;;  %935 = vmatprep.subr.bf16.mxu0 %v1116_v16  ;;  %v1150_v46 = vld [vmem:[%s1535_s0 + $0x50] ss:$20 sps:$4 sm:$0xff]   ;;  %v1171_v50 = vld [vmem:[%s1534_s1 + $0x118] sm:$0xff]   ;;  %v1157_v52 = vld [vmem:[%s1535_s0 + $0x80] ss:$20 sps:$4 sm:$0xff]  }
  0x12   :  { %993 = vmatprep.subr.bf16.mxu1 %v1117_v17  ;;  %v1152_v48 = vld [vmem:[%s1535_s0 + $0x7c] ss:$20 sps:$4 sm:$0xff]   ;;  %v1159_v53 = vld [vmem:[%s1535_s0 + $0xa4] ss:$20 sps:$4 sm:$0xff]   ;;  %v1161_v54 = vld [vmem:[%s1535_s0 + $0xac] ss:$20 sps:$4 sm:$0xff]  }
  0x13   :  { %v1163_v55 = vld [vmem:[%s1535_s0 + $0xa0] ss:$20 sps:$4 sm:$0xff]   ;;  %v1164_v56 = vld [vmem:[%s1535_s0 + $0xa8] ss:$20 sps:$4 sm:$0xff]   ;;  %v1170_v60 = vld [vmem:[%s1535_s0 + $0xd0] ss:$20 sps:$4 sm:$0xff]  }
  0x14   :  { %936 = vmatpush3.bf16.msra.mxu0 %v1118_v18  ;;  %v1165_v57 = vld [vmem:[%s1535_s0 + $0xcc] ss:$20 sps:$4 sm:$0xff]   ;;  %v1167_v58 = vld [vmem:[%s1535_s0 + $0xd4] ss:$20 sps:$4 sm:$0xff]   ;;  %v1174_v62 = vld [vmem:[%s1535_s0 + $0xfc] ss:$20 sps:$4 sm:$0xff]  }
  0x15   :  { %994 = vmatpush3.bf16.msra.mxu1 %v1119_v19  ;;  %937 = vmatprep.subr.bf16.mxu0 %v1120_v20  ;;  %v1169_v59 = vld [vmem:[%s1535_s0 + $0xc8] ss:$20 sps:$4 sm:$0xff]   ;;  %v1176_v63 = vld [vmem:[%s1535_s0 + $0xf0] ss:$20 sps:$4 sm:$0xff]   ;;  %v1177_v0 = vld [vmem:[%s1535_s0 + $0xf8] ss:$20 sps:$4 sm:$0xff]  }
  0x16   :  { %995 = vmatprep.subr.bf16.mxu1 %v1121_v21  ;;  %v1172_v61 = vld [vmem:[%s1535_s0 + $0xf4] ss:$20 sps:$4 sm:$0xff]   ;;  %v1178_v1 = vld [vmem:[%s1535_s0 + $0x10] ss:$20 sps:$4 sm:$0xff]   ;;  %v1180_v3 = vld [vmem:[%s1535_s0 + $0x38] ss:$20 sps:$4 sm:$0xff]  }
  0x17   :  { %v1179_v2 = vld [vmem:[%s1535_s0 + $0xb0] ss:$20 sps:$4 sm:$0xff]   ;;  %v1181_v4 = vld [vmem:[%s1535_s0 + $0xd8] ss:$20 sps:$4 sm:$0xff]   ;;  %v1182_v5 = vld [vmem:[%s1535_s0 + $0x60] ss:$20 sps:$4 sm:$0xff]  }
  0x18   :  { %938 = vmatpush3.bf16.msra.mxu0 %v1122_v22  ;;  %v1183_v6 = vld [vmem:[%s1535_s0 + $0x100] ss:$20 sps:$4 sm:$0xff]   ;;  %v1184_v7 = vld [vmem:[%s1535_s0 + $0x88] ss:$20 sps:$4 sm:$0xff]  }
  0x19   :  { %996 = vmatpush3.bf16.msra.mxu1 %v1123_v23  ;;  %939 = vmatprep.subr.bf16.mxu0 %v1124_v24  ;;  %v1452_v9 = vld [vmem:[%s1536_s2] ss:$0 sm:$0xff] }
  0x1a   :  { %997 = vmatprep.subr.bf16.mxu1 %v1125_v25 }
  0x1c   :  { %940 = vmatpush3.bf16.msra.mxu0 %v1126_v26 }
  0x1d   :  { %998 = vmatpush3.bf16.msra.mxu1 %v1127_v27  ;;  %941 = vmatprep.subr.bf16.mxu0 %v1128_v28 }
  0x1e   :  { %999 = vmatprep.subr.bf16.mxu1 %v1129_v29 }
  0x20   :  { %942 = vmatpush3.bf16.msra.mxu0 %v1130_v30 }
  0x21   :  { %1000 = vmatpush3.bf16.msra.mxu1 %v1131_v31  ;;  %1054 = vmatprep.subr.bf16.mxu0 %v1185_v34 }
  0x22   :  { %1090 = vmatprep.subr.bf16.mxu1 %v1185_v34 }
  0x23   :  { %582 = vmatmul.mubr.bf16.vlgmr.msra.gmra.mrb[0].mxu0 %v1132_v32 }
  0x24   :  { %671 = vmatmul.mubr.bf16.vlgmr.msra.gmra.mrb[0].mxu1 %v1135_v35  ;;  %1055 = vmatpush3.bf16.msra.mxu0 %v1138_v37 }
  0x25   :  { %589 = vmatprep.mubr.bf16.mxu0 %v1139_v38  ;;  %1094 = vmatpush3.bf16.msra.mxu1 %v1138_v37 }
  0x26   :  { %678 = vmatprep.mubr.bf16.mxu1 %v1141_v39  ;;  %1056 = vmatprep.subr.bf16.mxu0 %v1185_v34 }
  0x27   :  { %1091 = vmatprep.subr.bf16.mxu1 %v1185_v34 }
  0x28   :  { %1057 = vmatpush3.bf16.msra.mxu0 %v1149_v43 }
  0x29   :  { %1095 = vmatpush3.bf16.msra.mxu1 %v1149_v43  ;;  %1058 = vmatprep.subr.bf16.mxu0 %v1185_v34 }
  0x2a   :  { %1092 = vmatprep.subr.bf16.mxu1 %v1185_v34 }
  0x2b   :  { %590 = vmatmul.mubr.bf16.gmra.mrb[4].mxu0 %v1143_v40 }
  0x2c   :  { %679 = vmatmul.mubr.bf16.gmra.mrb[4].mxu1 %v1144_v41  ;;  %597 = vmatprep.mubr.bf16.mxu0 %v1145_v42 }
  0x2d   :  { %686 = vmatprep.mubr.bf16.mxu1 %v1147_v44  ;;  %1059 = vmatpush3.bf16.msra.mxu0 %v1158_v45 }
  0x2e   :  { %1096 = vmatpush3.bf16.msra.mxu1 %v1158_v45  ;;  %1060 = vmatprep.subr.bf16.mxu0 %v1185_v34 }
  0x2f   :  { %1093 = vmatprep.subr.bf16.mxu1 %v1185_v34 }
  0x31   :  { %1061 = vmatpush3.bf16.msra.mxu0 %v1171_v50 }
  0x32   :  { %1097 = vmatpush3.bf16.msra.mxu1 %v1171_v50 }
  0x33   :  { %598 = vmatmul.mubr.bf16.gmra.mrb[8].mxu0 %v1150_v46 }
  0x34   :  { %687 = vmatmul.mubr.bf16.gmra.mrb[8].mxu1 %v1151_v47  ;;  %605 = vmatprep.mubr.bf16.mxu0 %v1152_v48 }
  0x35   :  { %694 = vmatprep.mubr.bf16.mxu1 %v1154_v49 }
  0x3b   :  { %606 = vmatmul.mubr.bf16.gmra.mrb[12].mxu0 %v1156_v51 }
  0x3c   :  { %695 = vmatmul.mubr.bf16.gmra.mrb[12].mxu1 %v1157_v52  ;;  %613 = vmatprep.mubr.bf16.mxu0 %v1159_v53 }
  0x3d   :  { %702 = vmatprep.mubr.bf16.mxu1 %v1161_v54 }
  0x43   :  { %614 = vmatmul.mubr.bf16.gmra.mrb[16].mxu0 %v1163_v55 }
  0x44   :  { %703 = vmatmul.mubr.bf16.gmra.mrb[16].mxu1 %v1164_v56  ;;  %621 = vmatprep.mubr.bf16.mxu0 %v1165_v57 }
  0x45   :  { %710 = vmatprep.mubr.bf16.mxu1 %v1167_v58 }
  0x4b   :  { %622 = vmatmul.mubr.bf16.gmra.mrb[20].mxu0 %v1169_v59 }
  0x4c   :  { %711 = vmatmul.mubr.bf16.gmra.mrb[20].mxu1 %v1170_v60  ;;  %629 = vmatprep.mubr.bf16.mxu0 %v1172_v61 }
  0x4d   :  { %718 = vmatprep.mubr.bf16.mxu1 %v1174_v62 }
  0x53   :  { %630 = vmatmul.mubr.bf16.gmra.mrb[24].mxu0 %v1176_v63 }
  0x54   :  { %719 = vmatmul.mubr.bf16.gmra.mrb[24].mxu1 %v1177_v0  ;;  %1062 = vmatprep.mubr.msk.bf16.mxu0 %vm1186_vm0, %v1185_v34 }
  0x55   :  { %1078 = vmatprep.mubr.msk.bf16.mxu1 %vm1186_vm0, %v1185_v34 }
  0x5b   :  { %1063 = vmatmul.mubr.msk.bf16.vlgmr.msra.gmra.mrb[28].mxu0 %vm527_vm1, %v1178_v1 }
  0x5c   :  { %1079 = vmatmul.mubr.msk.bf16.vlgmr.msra.gmra.mrb[28].mxu1 %vm527_vm1, %v1179_v2  ;;  %1066 = vmatprep.mubr.msk.bf16.mxu0 %vm1186_vm0, %v1185_v34 }
  0x5d   :  { %1082 = vmatprep.mubr.msk.bf16.mxu1 %vm1186_vm0, %v1185_v34 }
  0x63   :  { %1067 = vmatmul.mubr.msk.bf16.gmra.mrb[32].mxu0 %vm527_vm1, %v1180_v3 }
  0x64   :  { %1083 = vmatmul.mubr.msk.bf16.gmra.mrb[32].mxu1 %vm527_vm1, %v1181_v4  ;;  %1070 = vmatprep.mubr.msk.bf16.mxu0 %vm1186_vm0, %v1185_v34 }
  0x65   :  { %1086 = vmatprep.mubr.msk.bf16.mxu1 %vm1186_vm0, %v1185_v34 }
  0x6b   :  { %1071 = vmatmul.mubr.msk.bf16.gmra.mrb[36].mxu0 %vm527_vm1, %v1182_v5 }
  0x6c   :  { %1087 = vmatmul.mubr.msk.bf16.gmra.mrb[36].mxu1 %vm527_vm1, %v1183_v6  ;;  %1074 = vmatprep.mubr.msk.bf16.mxu0 %vm1186_vm0, %v1185_v34 }
  0x73   :  { %1075 = vmatmul.mubr.msk.bf16.gmra.mrb[40].mxu0 %vm527_vm1, %v1184_v7 }
  0xf6   :  { %v943_v8 = vpop.f32.mrb[0].mxu0 }
  0xf7   :  { %v944_v10 = vpop.f32.mrb[1].mxu0  ;;  %v1001_v11 = vpop.f32.mrb[0].mxu1 }
  0xf8   :  { %v945_v12 = vadd.f32 %v944_v10, %v943_v8  ;;  %v946_v13 = vpop.f32.mrb[2].mxu0  ;;  %v1002_v14 = vpop.f32.mrb[1].mxu1 }
  0xf9   :  { %v947_v15 = vpop.f32.mrb[3].mxu0  ;;  %v1003_v16 = vadd.f32 %v1002_v14, %v1001_v11  ;;  %v1004_v17 = vpop.f32.mrb[2].mxu1 }
  0xfa   :  { %v584_v18 = vadd.f32 %v945_v12, %v1452_v9  ;;  %v948_v19 = vadd.f32 %v947_v15, %v946_v13  ;;  %v1005_v20 = vpop.f32.mrb[3].mxu1 }
  0xfb   :  { %v1006_v21 = vadd.f32 %v1005_v20, %v1004_v17 }
  0xfc   :  { %v587_v22 = vadd.f32 %v948_v19, %v1452_v9  ;;  %v1456_v23 = vadd.f32 %v1003_v16, %v584_v18 }
  0xfe   :  { %v949_v24 = vpop.f32.mrb[4].mxu0  ;;  %v1458_v25 = vadd.f32 %v1006_v21, %v587_v22 }
  0xff   :  { %v950_v26 = vpop.f32.mrb[5].mxu0  ;;  %v1007_v27 = vpop.f32.mrb[4].mxu1 }
 0x100   :  { %v951_v28 = vadd.f32 %v950_v26, %v949_v24  ;;  %v952_v29 = vpop.f32.mrb[6].mxu0  ;;  %v1008_v30 = vpop.f32.mrb[5].mxu1 }
 0x101   :  { %v953_v31 = vpop.f32.mrb[7].mxu0  ;;  %v1009_v32 = vadd.f32 %v1008_v30, %v1007_v27  ;;  %v1010_v33 = vpop.f32.mrb[6].mxu1 }
 0x102   :  { %v592_v34 = vadd.f32 %v951_v28, %v1452_v9  ;;  %v954_v35 = vadd.f32 %v953_v31, %v952_v29  ;;  %v1011_v36 = vpop.f32.mrb[7].mxu1 }
 0x103   :  { %v1012_v37 = vadd.f32 %v1011_v36, %v1010_v33 }
 0x104   :  { %v595_v38 = vadd.f32 %v954_v35, %v1452_v9  ;;  %v1462_v39 = vadd.f32 %v1009_v32, %v592_v34 }
 0x106   :  { %v955_v40 = vpop.f32.mrb[8].mxu0  ;;  %v1464_v41 = vadd.f32 %v1012_v37, %v595_v38 }
 0x107   :  { %v956_v42 = vpop.f32.mrb[9].mxu0  ;;  %v1013_v43 = vpop.f32.mrb[8].mxu1 }
 0x108   :  { %v957_v44 = vadd.f32 %v956_v42, %v955_v40  ;;  %v958_v45 = vpop.f32.mrb[10].mxu0  ;;  %v1014_v46 = vpop.f32.mrb[9].mxu1 }
 0x109   :  { %v959_v47 = vpop.f32.mrb[11].mxu0  ;;  %v1015_v48 = vadd.f32 %v1014_v46, %v1013_v43  ;;  %v1016_v49 = vpop.f32.mrb[10].mxu1 }
 0x10a   :  { %v600_v50 = vadd.f32 %v957_v44, %v1452_v9  ;;  %v960_v51 = vadd.f32 %v959_v47, %v958_v45  ;;  %v1017_v52 = vpop.f32.mrb[11].mxu1 }
 0x10b   :  { %v1018_v53 = vadd.f32 %v1017_v52, %v1016_v49 }
 0x10c   :  { %v603_v54 = vadd.f32 %v960_v51, %v1452_v9  ;;  %v1468_v55 = vadd.f32 %v1015_v48, %v600_v50 }
 0x10e   :  { %v961_v56 = vpop.f32.mrb[12].mxu0  ;;  %v1470_v57 = vadd.f32 %v1018_v53, %v603_v54 }
 0x10f   :  { %v962_v58 = vpop.f32.mrb[13].mxu0  ;;  %v1019_v59 = vpop.f32.mrb[12].mxu1 }
 0x110   :  { %v963_v60 = vadd.f32 %v962_v58, %v961_v56  ;;  %v964_v61 = vpop.f32.mrb[14].mxu0  ;;  %v1020_v62 = vpop.f32.mrb[13].mxu1 }
 0x111   :  { %v965_v63 = vpop.f32.mrb[15].mxu0  ;;  %v1021_v0 = vadd.f32 %v1020_v62, %v1019_v59  ;;  %v1022_v1 = vpop.f32.mrb[14].mxu1 }
 0x112   :  { %v608_v2 = vadd.f32 %v963_v60, %v1452_v9  ;;  %v966_v3 = vadd.f32 %v965_v63, %v964_v61  ;;  %v1023_v4 = vpop.f32.mrb[15].mxu1 }
 0x113   :  { %v1024_v5 = vadd.f32 %v1023_v4, %v1022_v1 }
 0x114   :  { %v611_v6 = vadd.f32 %v966_v3, %v1452_v9  ;;  %v1474_v7 = vadd.f32 %v1021_v0, %v608_v2 }
 0x116   :  { %v967_v8 = vpop.f32.mrb[16].mxu0  ;;  %v1476_v10 = vadd.f32 %v1024_v5, %v611_v6 }
 0x117   :  { %v968_v11 = vpop.f32.mrb[17].mxu0  ;;  %v1025_v12 = vpop.f32.mrb[16].mxu1 }
 0x118   :  { %v969_v13 = vadd.f32 %v968_v11, %v967_v8  ;;  %v970_v14 = vpop.f32.mrb[18].mxu0  ;;  %v1026_v15 = vpop.f32.mrb[17].mxu1 }
 0x119   :  { %v971_v16 = vpop.f32.mrb[19].mxu0  ;;  %v1027_v17 = vadd.f32 %v1026_v15, %v1025_v12  ;;  %v1028_v18 = vpop.f32.mrb[18].mxu1 }
 0x11a   :  { %v616_v19 = vadd.f32 %v969_v13, %v1452_v9  ;;  %v972_v20 = vadd.f32 %v971_v16, %v970_v14  ;;  %v1029_v21 = vpop.f32.mrb[19].mxu1 }
 0x11b   :  { %v1030_v22 = vadd.f32 %v1029_v21, %v1028_v18 }
 0x11c   :  { %v619_v24 = vadd.f32 %v972_v20, %v1452_v9  ;;  %v705_v26 = vadd.f32 %v1027_v17, %v616_v19 }
 0x11e   :  { %v973_v27 = vpop.f32.mrb[20].mxu0  ;;  %v708_v28 = vadd.f32 %v1030_v22, %v619_v24 }
 0x11f   :  { %v974_v29 = vpop.f32.mrb[21].mxu0  ;;  %v1031_v30 = vpop.f32.mrb[20].mxu1 }
 0x120   :  { %v975_v31 = vadd.f32 %v974_v29, %v973_v27  ;;  %v976_v32 = vpop.f32.mrb[22].mxu0  ;;  %v1032_v33 = vpop.f32.mrb[21].mxu1 }
 0x121   :  { %v977_v34 = vpop.f32.mrb[23].mxu0  ;;  %v1033_v35 = vadd.f32 %v1032_v33, %v1031_v30  ;;  %v1034_v36 = vpop.f32.mrb[22].mxu1 }
 0x122   :  { %v624_v37 = vadd.f32 %v975_v31, %v1452_v9  ;;  %v978_v38 = vadd.f32 %v977_v34, %v976_v32  ;;  %v1035_v40 = vpop.f32.mrb[23].mxu1 }
 0x123   :  { %v1036_v42 = vadd.f32 %v1035_v40, %v1034_v36 }
 0x124   :  { %v627_v43 = vadd.f32 %v978_v38, %v1452_v9  ;;  %v713_v44 = vadd.f32 %v1033_v35, %v624_v37 }
 0x126   :  { %v979_v45 = vpop.f32.mrb[24].mxu0  ;;  %v716_v46 = vadd.f32 %v1036_v42, %v627_v43 }
 0x127   :  { %v980_v47 = vpop.f32.mrb[25].mxu0  ;;  %v1037_v48 = vpop.f32.mrb[24].mxu1 }
 0x128   :  { %v981_v49 = vadd.f32 %v980_v47, %v979_v45  ;;  %v982_v50 = vpop.f32.mrb[26].mxu0  ;;  %v1038_v51 = vpop.f32.mrb[25].mxu1 }
 0x129   :  { %v983_v52 = vpop.f32.mrb[27].mxu0  ;;  %v1039_v53 = vadd.f32 %v1038_v51, %v1037_v48  ;;  %v1040_v54 = vpop.f32.mrb[26].mxu1 }
 0x12a   :  { %v632_v56 = vadd.f32 %v981_v49, %v1452_v9  ;;  %v984_v58 = vadd.f32 %v983_v52, %v982_v50  ;;  %v1041_v59 = vpop.f32.mrb[27].mxu1 }
 0x12b   :  { %v1042_v60 = vadd.f32 %v1041_v59, %v1040_v54 }
 0x12c   :  { %v635_v61 = vadd.f32 %v984_v58, %v1452_v9  ;;  %v721_v62 = vadd.f32 %v1039_v53, %v632_v56 }
 0x12e   :  { %v761_v63 = vpop.f32.mrb[28].mxu0  ;;  %v724_v0 = vadd.f32 %v1042_v60, %v635_v61 }
 0x12f   :  { %v762_v1 = vadd.f32 %v761_v63, %v1456_v23  ;;  %v793_v2 = vpop.f32.mrb[28].mxu1  ;;  %v1064_v3 = vpop.f32.mrb[29].mxu0 }
 0x130   :  { %v794_v4 = vadd.f32 %v793_v2, %v705_v26  ;;  %v1080_v5 = vpop.f32.mrb[29].mxu1  ;;  %v764_v6 = vpop.f32.mrb[30].mxu0 }
 0x131   :  { %v816_v8 = vmax.f32 %v762_v1, 0.0  ;;  %v765_v11 = vadd.f32 %v764_v6, %v1458_v25  ;;  %v796_v12 = vpop.f32.mrb[30].mxu1  ;;  %v1065_v13 = vpop.f32.mrb[31].mxu0 }
 0x132   :  { %v824_v14 = vmax.f32 %v794_v4, 0.0  ;;  %v797_v15 = vadd.f32 %v796_v12, %v708_v28  ;;  %v1081_v16 = vpop.f32.mrb[31].mxu1 }
 0x133   :  { %830 = vst [vmem:[%s1537_s3] sm:$0xff] %v816_v8  ;;  %v817_v9 = vmax.f32 %v765_v11, 0.0 }
 0x134   :  { %838 = vst [vmem:[%s1537_s3 + $0x40] sm:$0xff] %v824_v14  ;;  %v825_v23 = vmax.f32 %v797_v15, 0.0 }
 0x135   :  { %831 = vst [vmem:[%s1537_s3 + $0x8] sm:$0xff] %v817_v9 }
 0x136   :  { %839 = vst [vmem:[%s1537_s3 + $0x48] sm:$0xff] %v825_v23  ;;  %v769_v25 = vpop.f32.mrb[32].mxu0 }
 0x137   :  { %v770_v17 = vadd.f32 %v769_v25, %v1462_v39  ;;  %v801_v18 = vpop.f32.mrb[32].mxu1  ;;  %v1068_v19 = vpop.f32.mrb[33].mxu0 }
 0x138   :  { %v802_v20 = vadd.f32 %v801_v18, %v713_v44  ;;  %v1084_v21 = vpop.f32.mrb[33].mxu1  ;;  %v772_v22 = vpop.f32.mrb[34].mxu0 }
 0x139   :  { %v818_v24 = vmax.f32 %v770_v17, 0.0  ;;  %v773_v26 = vadd.f32 %v772_v22, %v1464_v41  ;;  %v804_v27 = vpop.f32.mrb[34].mxu1  ;;  %v1069_v28 = vpop.f32.mrb[35].mxu0 }
 0x13a   :  { %v826_v29 = vmax.f32 %v802_v20, 0.0  ;;  %v805_v30 = vadd.f32 %v804_v27, %v716_v46  ;;  %v1085_v31 = vpop.f32.mrb[35].mxu1 }
 0x13b   :  { %832 = vst [vmem:[%s1537_s3 + $0x10] sm:$0xff] %v818_v24  ;;  %v819_v32 = vmax.f32 %v773_v26, 0.0 }
 0x13c   :  { %840 = vst [vmem:[%s1537_s3 + $0x50] sm:$0xff] %v826_v29  ;;  %v827_v39 = vmax.f32 %v805_v30, 0.0 }
 0x13d   :  { %833 = vst [vmem:[%s1537_s3 + $0x18] sm:$0xff] %v819_v32 }
 0x13e   :  { %841 = vst [vmem:[%s1537_s3 + $0x58] sm:$0xff] %v827_v39  ;;  %v777_v41 = vpop.f32.mrb[36].mxu0 }
 0x13f   :  { %v778_v33 = vadd.f32 %v777_v41, %v1468_v55  ;;  %v809_v34 = vpop.f32.mrb[36].mxu1  ;;  %v1072_v35 = vpop.f32.mrb[37].mxu0 }
 0x140   :  { %v810_v36 = vadd.f32 %v809_v34, %v721_v62  ;;  %v1088_v37 = vpop.f32.mrb[37].mxu1  ;;  %v780_v38 = vpop.f32.mrb[38].mxu0 }
 0x141   :  { %v820_v40 = vmax.f32 %v778_v33, 0.0  ;;  %v781_v42 = vadd.f32 %v780_v38, %v1470_v57  ;;  %v812_v43 = vpop.f32.mrb[38].mxu1  ;;  %v1073_v44 = vpop.f32.mrb[39].mxu0 }
 0x142   :  { %v828_v45 = vmax.f32 %v810_v36, 0.0  ;;  %v813_v46 = vadd.f32 %v812_v43, %v724_v0  ;;  %v1089_v47 = vpop.f32.mrb[39].mxu1 }
 0x143   :  { %834 = vst [vmem:[%s1537_s3 + $0x20] sm:$0xff] %v820_v40  ;;  %v821_v48 = vmax.f32 %v781_v42, 0.0 }
 0x144   :  { %842 = vst [vmem:[%s1537_s3 + $0x60] sm:$0xff] %v828_v45  ;;  %v829_v55 = vmax.f32 %v813_v46, 0.0 }
 0x145   :  { %835 = vst [vmem:[%s1537_s3 + $0x28] sm:$0xff] %v821_v48 }
 0x146   :  { %843 = vst [vmem:[%s1537_s3 + $0x68] sm:$0xff] %v829_v55  ;;  %v785_v57 = vpop.f32.mrb[40].mxu0 }
 0x147   :  { %v786_v49 = vadd.f32 %v785_v57, %v1474_v7  ;;  %v1076_v50 = vpop.f32.mrb[41].mxu0 }
 0x148   :  { %v788_v51 = vpop.f32.mrb[42].mxu0 }
 0x149   :  { %v822_v52 = vmax.f32 %v786_v49, 0.0  ;;  %v789_v53 = vadd.f32 %v788_v51, %v1476_v10  ;;  %v1077_v54 = vpop.f32.mrb[43].mxu0 }
 0x14b   :  { %836 = vst [vmem:[%s1537_s3 + $0x30] sm:$0xff] %v822_v52  ;;  %v823_v56 = vmax.f32 %v789_v53, 0.0 }
 0x14d   :  { %837 = vst [vmem:[%s1537_s3 + $0x38] sm:$0xff] %v823_v56 }

// kernel: cnn_dqn_forward.7
= control target key start
LH: loop header
LB: loop body
LE: loop exit
PB: predicated region body
PF: predicated region fallthrough
CT: control target
= control target key end

     0   :  { %vm4904_vm0 = vcmask 523264   ;;  %s12926_s1 = inlined_call_operand.vmem [shape: bf16[3136,512], index: 1, kind: input, shape index: {}]   ;;  %s12927_s0 = inlined_call_operand.vmem [shape: bf16[16,3136], index: 0, kind: input, shape index: {}]   ;;  %s12928_s3 = inlined_call_operand.vmem [shape: bf16[512,512], index: 3, kind: input, shape index: {}]   ;;  %s12929_s5 = inlined_call_operand.vmem [shape: bf16[512,128], index: 5, kind: input, shape index: {}]   ;;  %s12930_s2 = inlined_call_operand.vmem [shape: f32[1,512], index: 2, kind: input, shape index: {}]   ;;  %s12931_s4 = inlined_call_operand.vmem [shape: f32[1,512], index: 4, kind: input, shape index: {}]   ;;  %s12932_s6 = inlined_call_operand.vmem [shape: f32[1,128], index: 6, kind: input, shape index: {}]   ;;  %s12933_s7 = inlined_call_operand.vmem [shape: f32[16,128], index: 7, kind: output, shape index: {}]  }
   0x1   :  { %v8500_v0 = vld [vmem:[%s12926_s1 + $0x4] ss:$16 sps:$4 sm:$0xff]   ;;  %v8502_v1 = vld [vmem:[%s12926_s1 + $0xc] ss:$16 sps:$4 sm:$0xff]   ;;  %v8504_v2 = vld [vmem:[%s12926_s1] ss:$16 sps:$4 sm:$0xff]  }
   0x2   :  { %4908 = vmatprep.subr.bf16.mxu0 %v8500_v0  ;;  %v8505_v3 = vld [vmem:[%s12926_s1 + $0x8] ss:$16 sps:$4 sm:$0xff]   ;;  %5467 = vmatprep.subr.bf16.mxu1 %v8502_v1  ;;  %v8506_v4 = vld [vmem:[%s12926_s1 + $0x24] ss:$16 sps:$4 sm:$0xff]   ;;  %v8508_v5 = vld [vmem:[%s12926_s1 + $0x2c] ss:$16 sps:$4 sm:$0xff]  }
   0x3   :  { %4909 = vmatpush1.bf16.msra.mxu0 %v8504_v2  ;;  %5468 = vmatpush1.bf16.msra.mxu1 %v8505_v3  ;;  %v8510_v6 = vld [vmem:[%s12926_s1 + $0x20] ss:$16 sps:$4 sm:$0xff]   ;;  %v8511_v7 = vld [vmem:[%s12926_s1 + $0x28] ss:$16 sps:$4 sm:$0xff]   ;;  %v8512_v8 = vld [vmem:[%s12926_s1 + $0x44] ss:$16 sps:$4 sm:$0xff]  }
   0x4   :  { %4910 = vmatprep.subr.bf16.mxu0 %v8506_v4  ;;  %5469 = vmatprep.subr.bf16.mxu1 %v8508_v5  ;;  %v8514_v9 = vld [vmem:[%s12926_s1 + $0x4c] ss:$16 sps:$4 sm:$0xff]   ;;  %v8516_v10 = vld [vmem:[%s12926_s1 + $0x40] ss:$16 sps:$4 sm:$0xff]   ;;  %v8517_v11 = vld [vmem:[%s12926_s1 + $0x48] ss:$16 sps:$4 sm:$0xff]  }
   0x5   :  { %v8518_v12 = vld [vmem:[%s12926_s1 + $0x64] ss:$16 sps:$4 sm:$0xff]   ;;  %v8520_v13 = vld [vmem:[%s12926_s1 + $0x6c] ss:$16 sps:$4 sm:$0xff]   ;;  %v8522_v14 = vld [vmem:[%s12926_s1 + $0x60] ss:$16 sps:$4 sm:$0xff]  }
   0x6   :  { %v8523_v15 = vld [vmem:[%s12926_s1 + $0x68] ss:$16 sps:$4 sm:$0xff]   ;;  %v8524_v16 = vld [vmem:[%s12926_s1 + $0x84] ss:$16 sps:$4 sm:$0xff]   ;;  %v8526_v17 = vld [vmem:[%s12926_s1 + $0x8c] ss:$16 sps:$4 sm:$0xff]  }
   0x7   :  { %4911 = vmatpush1.bf16.msra.mxu0 %v8510_v6  ;;  %5470 = vmatpush1.bf16.msra.mxu1 %v8511_v7  ;;  %v8528_v18 = vld [vmem:[%s12926_s1 + $0x80] ss:$16 sps:$4 sm:$0xff]   ;;  %v8529_v19 = vld [vmem:[%s12926_s1 + $0x88] ss:$16 sps:$4 sm:$0xff]   ;;  %v8530_v20 = vld [vmem:[%s12926_s1 + $0xa4] ss:$16 sps:$4 sm:$0xff]  }
   0x8   :  { %4912 = vmatprep.subr.bf16.mxu0 %v8512_v8  ;;  %5471 = vmatprep.subr.bf16.mxu1 %v8514_v9  ;;  %v8532_v21 = vld [vmem:[%s12926_s1 + $0xac] ss:$16 sps:$4 sm:$0xff]   ;;  %v8534_v22 = vld [vmem:[%s12926_s1 + $0xa0] ss:$16 sps:$4 sm:$0xff]   ;;  %v8535_v23 = vld [vmem:[%s12926_s1 + $0xa8] ss:$16 sps:$4 sm:$0xff]  }
   0x9   :  { %v8536_v24 = vld [vmem:[%s12926_s1 + $0xc4] ss:$16 sps:$4 sm:$0xff]   ;;  %v8538_v25 = vld [vmem:[%s12926_s1 + $0xcc] ss:$16 sps:$4 sm:$0xff]   ;;  %v8540_v26 = vld [vmem:[%s12926_s1 + $0xc0] ss:$16 sps:$4 sm:$0xff]  }
   0xa   :  { %v8541_v27 = vld [vmem:[%s12926_s1 + $0xc8] ss:$16 sps:$4 sm:$0xff]   ;;  %v8542_v28 = vld [vmem:[%s12926_s1 + $0xe4] ss:$16 sps:$4 sm:$0xff]   ;;  %v8544_v29 = vld [vmem:[%s12926_s1 + $0xec] ss:$16 sps:$4 sm:$0xff]  }
   0xb   :  { %4913 = vmatpush1.bf16.msra.mxu0 %v8516_v10  ;;  %5472 = vmatpush1.bf16.msra.mxu1 %v8517_v11  ;;  %v8546_v30 = vld [vmem:[%s12926_s1 + $0xe0] ss:$16 sps:$4 sm:$0xff]   ;;  %v8547_v31 = vld [vmem:[%s12926_s1 + $0xe8] ss:$16 sps:$4 sm:$0xff]   ;;  %v8548_v32 = vld [vmem:[%s12926_s1 + $0x104] ss:$16 sps:$4 sm:$0xff]  }
   0xc   :  { %4914 = vmatprep.subr.bf16.mxu0 %v8518_v12  ;;  %5473 = vmatprep.subr.bf16.mxu1 %v8520_v13  ;;  %v8550_v33 = vld [vmem:[%s12926_s1 + $0x10c] ss:$16 sps:$4 sm:$0xff]   ;;  %v8552_v34 = vld [vmem:[%s12926_s1 + $0x100] ss:$16 sps:$4 sm:$0xff]   ;;  %v8553_v35 = vld [vmem:[%s12926_s1 + $0x108] ss:$16 sps:$4 sm:$0xff]  }
   0xd   :  { %v8554_v36 = vld [vmem:[%s12926_s1 + $0x124] ss:$16 sps:$4 sm:$0xff]   ;;  %v8556_v37 = vld [vmem:[%s12926_s1 + $0x12c] ss:$16 sps:$4 sm:$0xff]   ;;  %v8558_v38 = vld [vmem:[%s12926_s1 + $0x120] ss:$16 sps:$4 sm:$0xff]  }
   0xe   :  { %v8559_v39 = vld [vmem:[%s12926_s1 + $0x128] ss:$16 sps:$4 sm:$0xff]   ;;  %v8560_v40 = vld [vmem:[%s12926_s1 + $0x144] ss:$16 sps:$4 sm:$0xff]   ;;  %v8562_v41 = vld [vmem:[%s12926_s1 + $0x14c] ss:$16 sps:$4 sm:$0xff]  }
   0xf   :  { %4915 = vmatpush1.bf16.msra.mxu0 %v8522_v14  ;;  %5474 = vmatpush1.bf16.msra.mxu1 %v8523_v15  ;;  %v8564_v42 = vld [vmem:[%s12926_s1 + $0x140] ss:$16 sps:$4 sm:$0xff]   ;;  %v8565_v43 = vld [vmem:[%s12926_s1 + $0x148] ss:$16 sps:$4 sm:$0xff]   ;;  %v8566_v44 = vld [vmem:[%s12926_s1 + $0x164] ss:$16 sps:$4 sm:$0xff]  }
  0x10   :  { %4916 = vmatprep.subr.bf16.mxu0 %v8524_v16  ;;  %5475 = vmatprep.subr.bf16.mxu1 %v8526_v17  ;;  %v8568_v45 = vld [vmem:[%s12926_s1 + $0x16c] ss:$16 sps:$4 sm:$0xff]   ;;  %v8570_v46 = vld [vmem:[%s12926_s1 + $0x160] ss:$16 sps:$4 sm:$0xff]   ;;  %v8571_v47 = vld [vmem:[%s12926_s1 + $0x168] ss:$16 sps:$4 sm:$0xff]  }
  0x11   :  { %v8598_v48 = vld [vmem:[%s12927_s0 + $0x4] ss:$100 sps:$4 sm:$0xff]   ;;  %v8574_v50 = vld [vmem:[%s12926_s1 + $0x18c] ss:$16 sps:$4 sm:$0xff]   ;;  %v8576_v51 = vld [vmem:[%s12926_s1 + $0x180] ss:$16 sps:$4 sm:$0xff]  }
  0x12   :  { %v8572_v49 = vld [vmem:[%s12926_s1 + $0x184] ss:$16 sps:$4 sm:$0xff]   ;;  %4940 = vmatprep.mubr.bf16.mxu0 %v8598_v48  ;;  %5499 = vmatprep.mubr.bf16.mxu1 %v8598_v48  ;;  %v8577_v52 = vld [vmem:[%s12926_s1 + $0x188] ss:$16 sps:$4 sm:$0xff]   ;;  %v8580_v54 = vld [vmem:[%s12926_s1 + $0x1ac] ss:$16 sps:$4 sm:$0xff]  }
  0x13   :  { %4917 = vmatpush1.bf16.msra.mxu0 %v8528_v18  ;;  %5476 = vmatpush1.bf16.msra.mxu1 %v8529_v19  ;;  %v8578_v53 = vld [vmem:[%s12926_s1 + $0x1a4] ss:$16 sps:$4 sm:$0xff]   ;;  %v8582_v55 = vld [vmem:[%s12926_s1 + $0x1a0] ss:$16 sps:$4 sm:$0xff]   ;;  %v8583_v56 = vld [vmem:[%s12926_s1 + $0x1a8] ss:$16 sps:$4 sm:$0xff]  }
  0x14   :  { %4918 = vmatprep.subr.bf16.mxu0 %v8530_v20  ;;  %5477 = vmatprep.subr.bf16.mxu1 %v8532_v21  ;;  %v8584_v57 = vld [vmem:[%s12926_s1 + $0x1c4] ss:$16 sps:$4 sm:$0xff]   ;;  %v8586_v58 = vld [vmem:[%s12926_s1 + $0x1cc] ss:$16 sps:$4 sm:$0xff]   ;;  %v8588_v59 = vld [vmem:[%s12926_s1 + $0x1c0] ss:$16 sps:$4 sm:$0xff]  }
  0x15   :  { %v8589_v60 = vld [vmem:[%s12926_s1 + $0x1c8] ss:$16 sps:$4 sm:$0xff]   ;;  %v8590_v61 = vld [vmem:[%s12926_s1 + $0x1e4] ss:$16 sps:$4 sm:$0xff]   ;;  %v8592_v62 = vld [vmem:[%s12926_s1 + $0x1ec] ss:$16 sps:$4 sm:$0xff]  }
  0x16   :  { %v8594_v63 = vld [vmem:[%s12926_s1 + $0x1e0] ss:$16 sps:$4 sm:$0xff]   ;;  %v8595_v0 = vld [vmem:[%s12926_s1 + $0x1e8] ss:$16 sps:$4 sm:$0xff]   ;;  %v8601_v1 = vld [vmem:[%s12926_s1 + $0x204] ss:$16 sps:$4 sm:$0xff]  }
  0x17   :  { %4919 = vmatpush1.bf16.msra.mxu0 %v8534_v22  ;;  %5478 = vmatpush1.bf16.msra.mxu1 %v8535_v23  ;;  %v8604_v2 = vld [vmem:[%s12926_s1 + $0x20c] ss:$16 sps:$4 sm:$0xff]   ;;  %v8596_v3 = vld [vmem:[%s12927_s0] ss:$100 sps:$4 sm:$0xff]   ;;  %v8602_v5 = vld [vmem:[%s12926_s1 + $0x208] ss:$16 sps:$4 sm:$0xff]  }
  0x18   :  { %4920 = vmatprep.subr.bf16.mxu0 %v8536_v24  ;;  %5479 = vmatprep.subr.bf16.mxu1 %v8538_v25  ;;  %v8599_v4 = vld [vmem:[%s12926_s1 + $0x200] ss:$16 sps:$4 sm:$0xff]   ;;  %v8607_v6 = vld [vmem:[%s12926_s1 + $0x224] ss:$16 sps:$4 sm:$0xff]   ;;  %v8610_v7 = vld [vmem:[%s12926_s1 + $0x22c] ss:$16 sps:$4 sm:$0xff]  }
  0x19   :  { %v8605_v8 = vld [vmem:[%s12926_s1 + $0x220] ss:$16 sps:$4 sm:$0xff]   ;;  %v8608_v9 = vld [vmem:[%s12926_s1 + $0x228] ss:$16 sps:$4 sm:$0xff]   ;;  %v8613_v10 = vld [vmem:[%s12926_s1 + $0x244] ss:$16 sps:$4 sm:$0xff]  }
  0x1a   :  { %v8616_v11 = vld [vmem:[%s12926_s1 + $0x24c] ss:$16 sps:$4 sm:$0xff]   ;;  %v8611_v12 = vld [vmem:[%s12926_s1 + $0x240] ss:$16 sps:$4 sm:$0xff]   ;;  %v8614_v13 = vld [vmem:[%s12926_s1 + $0x248] ss:$16 sps:$4 sm:$0xff]  }
  0x1b   :  { %4921 = vmatpush1.bf16.msra.mxu0 %v8540_v26  ;;  %5480 = vmatpush1.bf16.msra.mxu1 %v8541_v27  ;;  %v8619_v14 = vld [vmem:[%s12926_s1 + $0x264] ss:$16 sps:$4 sm:$0xff]   ;;  %v8622_v15 = vld [vmem:[%s12926_s1 + $0x26c] ss:$16 sps:$4 sm:$0xff]   ;;  %v8617_v16 = vld [vmem:[%s12926_s1 + $0x260] ss:$16 sps:$4 sm:$0xff]  }
  0x1c   :  { %4922 = vmatprep.subr.bf16.mxu0 %v8542_v28  ;;  %5481 = vmatprep.subr.bf16.mxu1 %v8544_v29  ;;  %v8620_v17 = vld [vmem:[%s12926_s1 + $0x268] ss:$16 sps:$4 sm:$0xff]   ;;  %v8625_v18 = vld [vmem:[%s12926_s1 + $0x284] ss:$16 sps:$4 sm:$0xff]   ;;  %v8628_v19 = vld [vmem:[%s12926_s1 + $0x28c] ss:$16 sps:$4 sm:$0xff]  }
  0x1d   :  { %v8623_v20 = vld [vmem:[%s12926_s1 + $0x280] ss:$16 sps:$4 sm:$0xff]   ;;  %v8626_v21 = vld [vmem:[%s12926_s1 + $0x288] ss:$16 sps:$4 sm:$0xff]   ;;  %v8631_v22 = vld [vmem:[%s12926_s1 + $0x2a4] ss:$16 sps:$4 sm:$0xff]  }
  0x1e   :  { %v8634_v23 = vld [vmem:[%s12926_s1 + $0x2ac] ss:$16 sps:$4 sm:$0xff]   ;;  %v8629_v24 = vld [vmem:[%s12926_s1 + $0x2a0] ss:$16 sps:$4 sm:$0xff]   ;;  %v8632_v25 = vld [vmem:[%s12926_s1 + $0x2a8] ss:$16 sps:$4 sm:$0xff]  }
  0x1f   :  { %4923 = vmatpush1.bf16.msra.mxu0 %v8546_v30  ;;  %5482 = vmatpush1.bf16.msra.mxu1 %v8547_v31  ;;  %v8637_v26 = vld [vmem:[%s12926_s1 + $0x2c4] ss:$16 sps:$4 sm:$0xff]   ;;  %v8640_v27 = vld [vmem:[%s12926_s1 + $0x2cc] ss:$16 sps:$4 sm:$0xff]   ;;  %v8635_v28 = vld [vmem:[%s12926_s1 + $0x2c0] ss:$16 sps:$4 sm:$0xff]  }
  0x20   :  { %4924 = vmatprep.subr.bf16.mxu0 %v8548_v32  ;;  %5483 = vmatprep.subr.bf16.mxu1 %v8550_v33  ;;  %v8638_v29 = vld [vmem:[%s12926_s1 + $0x2c8] ss:$16 sps:$4 sm:$0xff]   ;;  %v8697_v30 = vld [vmem:[%s12927_s0 + $0xc] ss:$100 sps:$4 sm:$0xff]   ;;  %v8643_v31 = vld [vmem:[%s12926_s1 + $0x2e4] ss:$16 sps:$4 sm:$0xff]  }
  0x21   :  { %v8646_v32 = vld [vmem:[%s12926_s1 + $0x2ec] ss:$16 sps:$4 sm:$0xff]   ;;  %v8641_v33 = vld [vmem:[%s12926_s1 + $0x2e0] ss:$16 sps:$4 sm:$0xff]  }
  0x22   :  { %v8670_v48 = vld [vmem:[%s12926_s1 + $0x36c] ss:$16 sps:$4 sm:$0xff]  }
  0x23   :  { %4925 = vmatpush1.bf16.msra.mxu0 %v8552_v34  ;;  %5484 = vmatpush1.bf16.msra.mxu1 %v8553_v35  ;;  %v8644_v34 = vld [vmem:[%s12926_s1 + $0x2e8] ss:$16 sps:$4 sm:$0xff]   ;;  %v8649_v35 = vld [vmem:[%s12926_s1 + $0x304] ss:$16 sps:$4 sm:$0xff]  }
  0x24   :  { %4926 = vmatprep.subr.bf16.mxu0 %v8554_v36  ;;  %5485 = vmatprep.subr.bf16.mxu1 %v8556_v37  ;;  %v8652_v36 = vld [vmem:[%s12926_s1 + $0x30c] ss:$16 sps:$4 sm:$0xff]   ;;  %v8647_v37 = vld [vmem:[%s12926_s1 + $0x300] ss:$16 sps:$4 sm:$0xff]  }
  0x27   :  { %4927 = vmatpush1.bf16.msra.mxu0 %v8558_v38  ;;  %5486 = vmatpush1.bf16.msra.mxu1 %v8559_v39  ;;  %v8650_v38 = vld [vmem:[%s12926_s1 + $0x308] ss:$16 sps:$4 sm:$0xff]   ;;  %v8655_v39 = vld [vmem:[%s12926_s1 + $0x324] ss:$16 sps:$4 sm:$0xff]  }
  0x28   :  { %4928 = vmatprep.subr.bf16.mxu0 %v8560_v40  ;;  %5487 = vmatprep.subr.bf16.mxu1 %v8562_v41  ;;  %v8658_v40 = vld [vmem:[%s12926_s1 + $0x32c] ss:$16 sps:$4 sm:$0xff]   ;;  %v8653_v41 = vld [vmem:[%s12926_s1 + $0x320] ss:$16 sps:$4 sm:$0xff]  }
  0x2b   :  { %4929 = vmatpush1.bf16.msra.mxu0 %v8564_v42  ;;  %5488 = vmatpush1.bf16.msra.mxu1 %v8565_v43  ;;  %v8656_v42 = vld [vmem:[%s12926_s1 + $0x328] ss:$16 sps:$4 sm:$0xff]   ;;  %v8661_v43 = vld [vmem:[%s12926_s1 + $0x344] ss:$16 sps:$4 sm:$0xff]  }
  0x2c   :  { %4930 = vmatprep.subr.bf16.mxu0 %v8566_v44  ;;  %5489 = vmatprep.subr.bf16.mxu1 %v8568_v45  ;;  %v8664_v44 = vld [vmem:[%s12926_s1 + $0x34c] ss:$16 sps:$4 sm:$0xff]   ;;  %v8659_v45 = vld [vmem:[%s12926_s1 + $0x340] ss:$16 sps:$4 sm:$0xff]  }
  0x2f   :  { %4931 = vmatpush1.bf16.msra.mxu0 %v8570_v46  ;;  %5490 = vmatpush1.bf16.msra.mxu1 %v8571_v47  ;;  %v8662_v46 = vld [vmem:[%s12926_s1 + $0x348] ss:$16 sps:$4 sm:$0xff]   ;;  %v8667_v47 = vld [vmem:[%s12926_s1 + $0x364] ss:$16 sps:$4 sm:$0xff]  }
  0x30   :  { %4932 = vmatprep.subr.bf16.mxu0 %v8572_v49  ;;  %5491 = vmatprep.subr.bf16.mxu1 %v8574_v50  ;;  %v8665_v49 = vld [vmem:[%s12926_s1 + $0x360] ss:$16 sps:$4 sm:$0xff]   ;;  %v8668_v50 = vld [vmem:[%s12926_s1 + $0x368] ss:$16 sps:$4 sm:$0xff]  }
  0x33   :  { %4933 = vmatpush1.bf16.msra.mxu0 %v8576_v51  ;;  %5492 = vmatpush1.bf16.msra.mxu1 %v8577_v52  ;;  %v8673_v51 = vld [vmem:[%s12926_s1 + $0x384] ss:$16 sps:$4 sm:$0xff]   ;;  %v8676_v52 = vld [vmem:[%s12926_s1 + $0x38c] ss:$16 sps:$4 sm:$0xff]  }
  0x34   :  { %4934 = vmatprep.subr.bf16.mxu0 %v8578_v53  ;;  %5493 = vmatprep.subr.bf16.mxu1 %v8580_v54  ;;  %v8671_v53 = vld [vmem:[%s12926_s1 + $0x380] ss:$16 sps:$4 sm:$0xff]   ;;  %v8674_v54 = vld [vmem:[%s12926_s1 + $0x388] ss:$16 sps:$4 sm:$0xff]  }
  0x37   :  { %4935 = vmatpush1.bf16.msra.mxu0 %v8582_v55  ;;  %5494 = vmatpush1.bf16.msra.mxu1 %v8583_v56  ;;  %v8679_v55 = vld [vmem:[%s12926_s1 + $0x3a4] ss:$16 sps:$4 sm:$0xff]   ;;  %v8682_v56 = vld [vmem:[%s12926_s1 + $0x3ac] ss:$16 sps:$4 sm:$0xff]  }
  0x38   :  { %4936 = vmatprep.subr.bf16.mxu0 %v8584_v57  ;;  %5495 = vmatprep.subr.bf16.mxu1 %v8586_v58  ;;  %v8677_v57 = vld [vmem:[%s12926_s1 + $0x3a0] ss:$16 sps:$4 sm:$0xff]   ;;  %v8680_v58 = vld [vmem:[%s12926_s1 + $0x3a8] ss:$16 sps:$4 sm:$0xff]  }
  0x3b   :  { %4937 = vmatpush1.bf16.msra.mxu0 %v8588_v59  ;;  %5496 = vmatpush1.bf16.msra.mxu1 %v8589_v60  ;;  %v8685_v59 = vld [vmem:[%s12926_s1 + $0x3c4] ss:$16 sps:$4 sm:$0xff]   ;;  %v8688_v60 = vld [vmem:[%s12926_s1 + $0x3cc] ss:$16 sps:$4 sm:$0xff]  }
  0x3c   :  { %4938 = vmatprep.subr.bf16.mxu0 %v8590_v61  ;;  %5497 = vmatprep.subr.bf16.mxu1 %v8592_v62  ;;  %v8683_v61 = vld [vmem:[%s12926_s1 + $0x3c0] ss:$16 sps:$4 sm:$0xff]   ;;  %v8686_v62 = vld [vmem:[%s12926_s1 + $0x3c8] ss:$16 sps:$4 sm:$0xff]  }
  0x3f   :  { %4939 = vmatpush1.bf16.msra.mxu0 %v8594_v63  ;;  %5498 = vmatpush1.bf16.msra.mxu1 %v8595_v0  ;;  %v8691_v63 = vld [vmem:[%s12926_s1 + $0x3e4] ss:$16 sps:$4 sm:$0xff]   ;;  %v8694_v0 = vld [vmem:[%s12926_s1 + $0x3ec] ss:$16 sps:$4 sm:$0xff]  }
  0x40   :  { %4951 = vmatprep.subr.bf16.mxu0 %v8601_v1  ;;  %5510 = vmatprep.subr.bf16.mxu1 %v8604_v2  ;;  %v8689_v1 = vld [vmem:[%s12926_s1 + $0x3e0] ss:$16 sps:$4 sm:$0xff]   ;;  %v8692_v2 = vld [vmem:[%s12926_s1 + $0x3e8] ss:$16 sps:$4 sm:$0xff]  }
  0x42   :  { %4941 = vmatmul.mubr.bf16.vlgmr.msra.gmra.mrb[0].mxu0 %v8596_v3  ;;  %5500 = vmatmul.mubr.bf16.vlgmr.msra.gmra.mrb[0].mxu1 %v8596_v3  ;;  %v8700_v3 = vld [vmem:[%s12926_s1 + $0x404] ss:$16 sps:$4 sm:$0xff]  }
  0x43   :  { %4952 = vmatpush1.bf16.msra.mxu0 %v8599_v4  ;;  %5511 = vmatpush1.bf16.msra.mxu1 %v8602_v5  ;;  %v8703_v4 = vld [vmem:[%s12926_s1 + $0x40c] ss:$16 sps:$4 sm:$0xff]  }
  0x44   :  { %4953 = vmatprep.subr.bf16.mxu0 %v8607_v6  ;;  %5512 = vmatprep.subr.bf16.mxu1 %v8610_v7  ;;  %v8695_v5 = vld [vmem:[%s12927_s0 + $0x8] ss:$100 sps:$4 sm:$0xff]   ;;  %v8698_v6 = vld [vmem:[%s12926_s1 + $0x400] ss:$16 sps:$4 sm:$0xff]  }
  0x45   :  { %4983 = vmatprep.mubr.bf16.mxu0 %v8697_v30  ;;  %5542 = vmatprep.mubr.bf16.mxu1 %v8697_v30  ;;  %v8701_v7 = vld [vmem:[%s12926_s1 + $0x408] ss:$16 sps:$4 sm:$0xff]   ;;  %v8739_v30 = vld [vmem:[%s12926_s1 + $0x4cc] ss:$16 sps:$4 sm:$0xff]  }
  0x47   :  { %4954 = vmatpush1.bf16.msra.mxu0 %v8605_v8  ;;  %5513 = vmatpush1.bf16.msra.mxu1 %v8608_v9  ;;  %v8706_v8 = vld [vmem:[%s12926_s1 + $0x424] ss:$16 sps:$4 sm:$0xff]   ;;  %v8709_v9 = vld [vmem:[%s12926_s1 + $0x42c] ss:$16 sps:$4 sm:$0xff]  }
  0x48   :  { %4955 = vmatprep.subr.bf16.mxu0 %v8613_v10  ;;  %5514 = vmatprep.subr.bf16.mxu1 %v8616_v11  ;;  %v8704_v10 = vld [vmem:[%s12926_s1 + $0x420] ss:$16 sps:$4 sm:$0xff]   ;;  %v8707_v11 = vld [vmem:[%s12926_s1 + $0x428] ss:$16 sps:$4 sm:$0xff]  }
  0x4b   :  { %4956 = vmatpush1.bf16.msra.mxu0 %v8611_v12  ;;  %5515 = vmatpush1.bf16.msra.mxu1 %v8614_v13  ;;  %v8796_v12 = vld [vmem:[%s12927_s0 + $0x14] ss:$100 sps:$4 sm:$0xff]  }
  0x4c   :  { %4957 = vmatprep.subr.bf16.mxu0 %v8619_v14  ;;  %5516 = vmatprep.subr.bf16.mxu1 %v8622_v15  ;;  %v8712_v13 = vld [vmem:[%s12926_s1 + $0x444] ss:$16 sps:$4 sm:$0xff]   ;;  %v8715_v14 = vld [vmem:[%s12926_s1 + $0x44c] ss:$16 sps:$4 sm:$0xff]   ;;  %v8710_v15 = vld [vmem:[%s12926_s1 + $0x440] ss:$16 sps:$4 sm:$0xff]  }
  0x4f   :  { %4958 = vmatpush1.bf16.msra.mxu0 %v8617_v16  ;;  %5517 = vmatpush1.bf16.msra.mxu1 %v8620_v17  ;;  %v8713_v16 = vld [vmem:[%s12926_s1 + $0x448] ss:$16 sps:$4 sm:$0xff]   ;;  %v8718_v17 = vld [vmem:[%s12926_s1 + $0x464] ss:$16 sps:$4 sm:$0xff]  }
  0x50   :  { %4959 = vmatprep.subr.bf16.mxu0 %v8625_v18  ;;  %5518 = vmatprep.subr.bf16.mxu1 %v8628_v19  ;;  %v8721_v18 = vld [vmem:[%s12926_s1 + $0x46c] ss:$16 sps:$4 sm:$0xff]   ;;  %v8716_v19 = vld [vmem:[%s12926_s1 + $0x460] ss:$16 sps:$4 sm:$0xff]  }
  0x53   :  { %4960 = vmatpush1.bf16.msra.mxu0 %v8623_v20  ;;  %5519 = vmatpush1.bf16.msra.mxu1 %v8626_v21  ;;  %v8719_v20 = vld [vmem:[%s12926_s1 + $0x468] ss:$16 sps:$4 sm:$0xff]   ;;  %v8724_v21 = vld [vmem:[%s12926_s1 + $0x484] ss:$16 sps:$4 sm:$0xff]  }
  0x54   :  { %4961 = vmatprep.subr.bf16.mxu0 %v8631_v22  ;;  %5520 = vmatprep.subr.bf16.mxu1 %v8634_v23  ;;  %v8727_v22 = vld [vmem:[%s12926_s1 + $0x48c] ss:$16 sps:$4 sm:$0xff]   ;;  %v8722_v23 = vld [vmem:[%s12926_s1 + $0x480] ss:$16 sps:$4 sm:$0xff]  }
  0x57   :  { %4962 = vmatpush1.bf16.msra.mxu0 %v8629_v24  ;;  %5521 = vmatpush1.bf16.msra.mxu1 %v8632_v25  ;;  %v8725_v24 = vld [vmem:[%s12926_s1 + $0x488] ss:$16 sps:$4 sm:$0xff]   ;;  %v8730_v25 = vld [vmem:[%s12926_s1 + $0x4a4] ss:$16 sps:$4 sm:$0xff]  }
  0x58   :  { %4963 = vmatprep.subr.bf16.mxu0 %v8637_v26  ;;  %5522 = vmatprep.subr.bf16.mxu1 %v8640_v27  ;;  %v8733_v26 = vld [vmem:[%s12926_s1 + $0x4ac] ss:$16 sps:$4 sm:$0xff]   ;;  %v8728_v27 = vld [vmem:[%s12926_s1 + $0x4a0] ss:$16 sps:$4 sm:$0xff]  }
  0x5b   :  { %4964 = vmatpush1.bf16.msra.mxu0 %v8635_v28  ;;  %5523 = vmatpush1.bf16.msra.mxu1 %v8638_v29  ;;  %v8731_v28 = vld [vmem:[%s12926_s1 + $0x4a8] ss:$16 sps:$4 sm:$0xff]   ;;  %v8736_v29 = vld [vmem:[%s12926_s1 + $0x4c4] ss:$16 sps:$4 sm:$0xff]  }
  0x5c   :  { %4965 = vmatprep.subr.bf16.mxu0 %v8643_v31  ;;  %5524 = vmatprep.subr.bf16.mxu1 %v8646_v32  ;;  %v8734_v31 = vld [vmem:[%s12926_s1 + $0x4c0] ss:$16 sps:$4 sm:$0xff]   ;;  %v8737_v32 = vld [vmem:[%s12926_s1 + $0x4c8] ss:$16 sps:$4 sm:$0xff]  }
  0x5f   :  { %4966 = vmatpush1.bf16.msra.mxu0 %v8641_v33  ;;  %5525 = vmatpush1.bf16.msra.mxu1 %v8644_v34  ;;  %v8742_v33 = vld [vmem:[%s12926_s1 + $0x4e4] ss:$16 sps:$4 sm:$0xff]   ;;  %v8745_v34 = vld [vmem:[%s12926_s1 + $0x4ec] ss:$16 sps:$4 sm:$0xff]  }
  0x60   :  { %4967 = vmatprep.subr.bf16.mxu0 %v8649_v35  ;;  %5526 = vmatprep.subr.bf16.mxu1 %v8652_v36  ;;  %v8740_v35 = vld [vmem:[%s12926_s1 + $0x4e0] ss:$16 sps:$4 sm:$0xff]   ;;  %v8743_v36 = vld [vmem:[%s12926_s1 + $0x4e8] ss:$16 sps:$4 sm:$0xff]  }
  0x63   :  { %4968 = vmatpush1.bf16.msra.mxu0 %v8647_v37  ;;  %5527 = vmatpush1.bf16.msra.mxu1 %v8650_v38  ;;  %v8748_v37 = vld [vmem:[%s12926_s1 + $0x504] ss:$16 sps:$4 sm:$0xff]   ;;  %v8751_v38 = vld [vmem:[%s12926_s1 + $0x50c] ss:$16 sps:$4 sm:$0xff]  }
  0x64   :  { %4969 = vmatprep.subr.bf16.mxu0 %v8655_v39  ;;  %5528 = vmatprep.subr.bf16.mxu1 %v8658_v40  ;;  %v8746_v39 = vld [vmem:[%s12926_s1 + $0x500] ss:$16 sps:$4 sm:$0xff]   ;;  %v8749_v40 = vld [vmem:[%s12926_s1 + $0x508] ss:$16 sps:$4 sm:$0xff]  }
  0x67   :  { %4970 = vmatpush1.bf16.msra.mxu0 %v8653_v41  ;;  %5529 = vmatpush1.bf16.msra.mxu1 %v8656_v42  ;;  %v8754_v41 = vld [vmem:[%s12926_s1 + $0x524] ss:$16 sps:$4 sm:$0xff]   ;;  %v8757_v42 = vld [vmem:[%s12926_s1 + $0x52c] ss:$16 sps:$4 sm:$0xff]  }
  0x68   :  { %4971 = vmatprep.subr.bf16.mxu0 %v8661_v43  ;;  %5530 = vmatprep.subr.bf16.mxu1 %v8664_v44  ;;  %v8752_v43 = vld [vmem:[%s12926_s1 + $0x520] ss:$16 sps:$4 sm:$0xff]   ;;  %v8755_v44 = vld [vmem:[%s12926_s1 + $0x528] ss:$16 sps:$4 sm:$0xff]  }
  0x6b   :  { %4972 = vmatpush1.bf16.msra.mxu0 %v8659_v45  ;;  %5531 = vmatpush1.bf16.msra.mxu1 %v8662_v46  ;;  %v8760_v45 = vld [vmem:[%s12926_s1 + $0x544] ss:$16 sps:$4 sm:$0xff]   ;;  %v8763_v46 = vld [vmem:[%s12926_s1 + $0x54c] ss:$16 sps:$4 sm:$0xff]  }
  0x6c   :  { %4973 = vmatprep.subr.bf16.mxu0 %v8667_v47  ;;  %5532 = vmatprep.subr.bf16.mxu1 %v8670_v48  ;;  %v8758_v47 = vld [vmem:[%s12926_s1 + $0x540] ss:$16 sps:$4 sm:$0xff]   ;;  %v8761_v48 = vld [vmem:[%s12926_s1 + $0x548] ss:$16 sps:$4 sm:$0xff]  }
  0x6f   :  { %4974 = vmatpush1.bf16.msra.mxu0 %v8665_v49  ;;  %5533 = vmatpush1.bf16.msra.mxu1 %v8668_v50  ;;  %v8766_v49 = vld [vmem:[%s12926_s1 + $0x564] ss:$16 sps:$4 sm:$0xff]   ;;  %v8769_v50 = vld [vmem:[%s12926_s1 + $0x56c] ss:$16 sps:$4 sm:$0xff]  }
  0x70   :  { %4975 = vmatprep.subr.bf16.mxu0 %v8673_v51  ;;  %5534 = vmatprep.subr.bf16.mxu1 %v8676_v52  ;;  %v8764_v51 = vld [vmem:[%s12926_s1 + $0x560] ss:$16 sps:$4 sm:$0xff]   ;;  %v8767_v52 = vld [vmem:[%s12926_s1 + $0x568] ss:$16 sps:$4 sm:$0xff]  }
  0x73   :  { %4976 = vmatpush1.bf16.msra.mxu0 %v8671_v53  ;;  %5535 = vmatpush1.bf16.msra.mxu1 %v8674_v54  ;;  %v8772_v53 = vld [vmem:[%s12926_s1 + $0x584] ss:$16 sps:$4 sm:$0xff]   ;;  %v8775_v54 = vld [vmem:[%s12926_s1 + $0x58c] ss:$16 sps:$4 sm:$0xff]  }
  0x74   :  { %4977 = vmatprep.subr.bf16.mxu0 %v8679_v55  ;;  %5536 = vmatprep.subr.bf16.mxu1 %v8682_v56  ;;  %v8770_v55 = vld [vmem:[%s12926_s1 + $0x580] ss:$16 sps:$4 sm:$0xff]   ;;  %v8773_v56 = vld [vmem:[%s12926_s1 + $0x588] ss:$16 sps:$4 sm:$0xff]  }
  0x77   :  { %4978 = vmatpush1.bf16.msra.mxu0 %v8677_v57  ;;  %5537 = vmatpush1.bf16.msra.mxu1 %v8680_v58  ;;  %v8778_v57 = vld [vmem:[%s12926_s1 + $0x5a4] ss:$16 sps:$4 sm:$0xff]   ;;  %v8781_v58 = vld [vmem:[%s12926_s1 + $0x5ac] ss:$16 sps:$4 sm:$0xff]  }
  0x78   :  { %4979 = vmatprep.subr.bf16.mxu0 %v8685_v59  ;;  %5538 = vmatprep.subr.bf16.mxu1 %v8688_v60  ;;  %v8776_v59 = vld [vmem:[%s12926_s1 + $0x5a0] ss:$16 sps:$4 sm:$0xff]   ;;  %v8779_v60 = vld [vmem:[%s12926_s1 + $0x5a8] ss:$16 sps:$4 sm:$0xff]  }
  0x7b   :  { %4980 = vmatpush1.bf16.msra.mxu0 %v8683_v61  ;;  %5539 = vmatpush1.bf16.msra.mxu1 %v8686_v62  ;;  %v8784_v61 = vld [vmem:[%s12926_s1 + $0x5c4] ss:$16 sps:$4 sm:$0xff]   ;;  %v8787_v62 = vld [vmem:[%s12926_s1 + $0x5cc] ss:$16 sps:$4 sm:$0xff]  }
  0x7c   :  { %4981 = vmatprep.subr.bf16.mxu0 %v8691_v63  ;;  %5540 = vmatprep.subr.bf16.mxu1 %v8694_v0  ;;  %v8782_v63 = vld [vmem:[%s12926_s1 + $0x5c0] ss:$16 sps:$4 sm:$0xff]   ;;  %v8785_v0 = vld [vmem:[%s12926_s1 + $0x5c8] ss:$16 sps:$4 sm:$0xff]  }
  0x7f   :  { %4982 = vmatpush1.bf16.msra.mxu0 %v8689_v1  ;;  %5541 = vmatpush1.bf16.msra.mxu1 %v8692_v2  ;;  %v8790_v1 = vld [vmem:[%s12926_s1 + $0x5e4] ss:$16 sps:$4 sm:$0xff]   ;;  %v8793_v2 = vld [vmem:[%s12926_s1 + $0x5ec] ss:$16 sps:$4 sm:$0xff]  }
  0x80   :  { %4994 = vmatprep.subr.bf16.mxu0 %v8700_v3  ;;  %5553 = vmatprep.subr.bf16.mxu1 %v8703_v4  ;;  %v8788_v3 = vld [vmem:[%s12926_s1 + $0x5e0] ss:$16 sps:$4 sm:$0xff]   ;;  %v8791_v4 = vld [vmem:[%s12926_s1 + $0x5e8] ss:$16 sps:$4 sm:$0xff]  }
  0x82   :  { %4984 = vmatmul.mubr.bf16.vlgmr.msra.gmra.mrb[0].mxu0 %v8695_v5  ;;  %5543 = vmatmul.mubr.bf16.vlgmr.msra.gmra.mrb[0].mxu1 %v8695_v5  ;;  %v8799_v5 = vld [vmem:[%s12926_s1 + $0x604] ss:$16 sps:$4 sm:$0xff]  }
  0x83   :  { %4995 = vmatpush1.bf16.msra.mxu0 %v8698_v6  ;;  %5554 = vmatpush1.bf16.msra.mxu1 %v8701_v7  ;;  %v8802_v6 = vld [vmem:[%s12926_s1 + $0x60c] ss:$16 sps:$4 sm:$0xff]   ;;  %v8794_v7 = vld [vmem:[%s12927_s0 + $0x10] ss:$100 sps:$4 sm:$0xff]  }
  0x84   :  { %4996 = vmatprep.subr.bf16.mxu0 %v8706_v8  ;;  %5555 = vmatprep.subr.bf16.mxu1 %v8709_v9  ;;  %v8797_v8 = vld [vmem:[%s12926_s1 + $0x600] ss:$16 sps:$4 sm:$0xff]   ;;  %v8800_v9 = vld [vmem:[%s12926_s1 + $0x608] ss:$16 sps:$4 sm:$0xff]  }
  0x85   :  { %5026 = vmatprep.mubr.bf16.mxu0 %v8796_v12  ;;  %5585 = vmatprep.mubr.bf16.mxu1 %v8796_v12  ;;  %v8895_v12 = vld [vmem:[%s12927_s0 + $0x1c] ss:$100 sps:$4 sm:$0xff]  }
  0x87   :  { %4997 = vmatpush1.bf16.msra.mxu0 %v8704_v10  ;;  %5556 = vmatpush1.bf16.msra.mxu1 %v8707_v11  ;;  %v8805_v10 = vld [vmem:[%s12926_s1 + $0x624] ss:$16 sps:$4 sm:$0xff]   ;;  %v8808_v11 = vld [vmem:[%s12926_s1 + $0x62c] ss:$16 sps:$4 sm:$0xff]  }
  0x88   :  { %4998 = vmatprep.subr.bf16.mxu0 %v8712_v13  ;;  %5557 = vmatprep.subr.bf16.mxu1 %v8715_v14  ;;  %v8803_v13 = vld [vmem:[%s12926_s1 + $0x620] ss:$16 sps:$4 sm:$0xff]   ;;  %v8806_v14 = vld [vmem:[%s12926_s1 + $0x628] ss:$16 sps:$4 sm:$0xff]  }
  0x8b   :  { %4999 = vmatpush1.bf16.msra.mxu0 %v8710_v15  ;;  %5558 = vmatpush1.bf16.msra.mxu1 %v8713_v16  ;;  %v8811_v15 = vld [vmem:[%s12926_s1 + $0x644] ss:$16 sps:$4 sm:$0xff]   ;;  %v8814_v16 = vld [vmem:[%s12926_s1 + $0x64c] ss:$16 sps:$4 sm:$0xff]  }
  0x8c   :  { %5000 = vmatprep.subr.bf16.mxu0 %v8718_v17  ;;  %5559 = vmatprep.subr.bf16.mxu1 %v8721_v18  ;;  %v8809_v17 = vld [vmem:[%s12926_s1 + $0x640] ss:$16 sps:$4 sm:$0xff]   ;;  %v8812_v18 = vld [vmem:[%s12926_s1 + $0x648] ss:$16 sps:$4 sm:$0xff]  }
  0x8f   :  { %5001 = vmatpush1.bf16.msra.mxu0 %v8716_v19  ;;  %5560 = vmatpush1.bf16.msra.mxu1 %v8719_v20  ;;  %v8817_v19 = vld [vmem:[%s12926_s1 + $0x664] ss:$16 sps:$4 sm:$0xff]   ;;  %v8820_v20 = vld [vmem:[%s12926_s1 + $0x66c] ss:$16 sps:$4 sm:$0xff]  }
  0x90   :  { %5002 = vmatprep.subr.bf16.mxu0 %v8724_v21  ;;  %5561 = vmatprep.subr.bf16.mxu1 %v8727_v22  ;;  %v8815_v21 = vld [vmem:[%s12926_s1 + $0x660] ss:$16 sps:$4 sm:$0xff]   ;;  %v8818_v22 = vld [vmem:[%s12926_s1 + $0x668] ss:$16 sps:$4 sm:$0xff]  }
  0x93   :  { %5003 = vmatpush1.bf16.msra.mxu0 %v8722_v23  ;;  %5562 = vmatpush1.bf16.msra.mxu1 %v8725_v24  ;;  %v8823_v23 = vld [vmem:[%s12926_s1 + $0x684] ss:$16 sps:$4 sm:$0xff]   ;;  %v8826_v24 = vld [vmem:[%s12926_s1 + $0x68c] ss:$16 sps:$4 sm:$0xff]  }
  0x94   :  { %5004 = vmatprep.subr.bf16.mxu0 %v8730_v25  ;;  %5563 = vmatprep.subr.bf16.mxu1 %v8733_v26  ;;  %v8821_v25 = vld [vmem:[%s12926_s1 + $0x680] ss:$16 sps:$4 sm:$0xff]   ;;  %v8824_v26 = vld [vmem:[%s12926_s1 + $0x688] ss:$16 sps:$4 sm:$0xff]  }
  0x97   :  { %5005 = vmatpush1.bf16.msra.mxu0 %v8728_v27  ;;  %5564 = vmatpush1.bf16.msra.mxu1 %v8731_v28  ;;  %v8829_v27 = vld [vmem:[%s12926_s1 + $0x6a4] ss:$16 sps:$4 sm:$0xff]   ;;  %v8832_v28 = vld [vmem:[%s12926_s1 + $0x6ac] ss:$16 sps:$4 sm:$0xff]  }
  0x98   :  { %5006 = vmatprep.subr.bf16.mxu0 %v8736_v29  ;;  %5565 = vmatprep.subr.bf16.mxu1 %v8739_v30  ;;  %v8827_v29 = vld [vmem:[%s12926_s1 + $0x6a0] ss:$16 sps:$4 sm:$0xff]   ;;  %v8830_v30 = vld [vmem:[%s12926_s1 + $0x6a8] ss:$16 sps:$4 sm:$0xff]  }
  0x9b   :  { %5007 = vmatpush1.bf16.msra.mxu0 %v8734_v31  ;;  %5566 = vmatpush1.bf16.msra.mxu1 %v8737_v32  ;;  %v8835_v31 = vld [vmem:[%s12926_s1 + $0x6c4] ss:$16 sps:$4 sm:$0xff]   ;;  %v8838_v32 = vld [vmem:[%s12926_s1 + $0x6cc] ss:$16 sps:$4 sm:$0xff]  }
  0x9c   :  { %5008 = vmatprep.subr.bf16.mxu0 %v8742_v33  ;;  %5567 = vmatprep.subr.bf16.mxu1 %v8745_v34  ;;  %v8833_v33 = vld [vmem:[%s12926_s1 + $0x6c0] ss:$16 sps:$4 sm:$0xff]   ;;  %v8836_v34 = vld [vmem:[%s12926_s1 + $0x6c8] ss:$16 sps:$4 sm:$0xff]  }
  0x9f   :  { %5009 = vmatpush1.bf16.msra.mxu0 %v8740_v35  ;;  %5568 = vmatpush1.bf16.msra.mxu1 %v8743_v36  ;;  %v8841_v35 = vld [vmem:[%s12926_s1 + $0x6e4] ss:$16 sps:$4 sm:$0xff]   ;;  %v8844_v36 = vld [vmem:[%s12926_s1 + $0x6ec] ss:$16 sps:$4 sm:$0xff]  }
  0xa0   :  { %5010 = vmatprep.subr.bf16.mxu0 %v8748_v37  ;;  %5569 = vmatprep.subr.bf16.mxu1 %v8751_v38  ;;  %v8839_v37 = vld [vmem:[%s12926_s1 + $0x6e0] ss:$16 sps:$4 sm:$0xff]   ;;  %v8842_v38 = vld [vmem:[%s12926_s1 + $0x6e8] ss:$16 sps:$4 sm:$0xff]  }
  0xa3   :  { %5011 = vmatpush1.bf16.msra.mxu0 %v8746_v39  ;;  %5570 = vmatpush1.bf16.msra.mxu1 %v8749_v40  ;;  %v8847_v39 = vld [vmem:[%s12926_s1 + $0x704] ss:$16 sps:$4 sm:$0xff]   ;;  %v8850_v40 = vld [vmem:[%s12926_s1 + $0x70c] ss:$16 sps:$4 sm:$0xff]  }
  0xa4   :  { %5012 = vmatprep.subr.bf16.mxu0 %v8754_v41  ;;  %5571 = vmatprep.subr.bf16.mxu1 %v8757_v42  ;;  %v8845_v41 = vld [vmem:[%s12926_s1 + $0x700] ss:$16 sps:$4 sm:$0xff]   ;;  %v8848_v42 = vld [vmem:[%s12926_s1 + $0x708] ss:$16 sps:$4 sm:$0xff]  }
  0xa7   :  { %5013 = vmatpush1.bf16.msra.mxu0 %v8752_v43  ;;  %5572 = vmatpush1.bf16.msra.mxu1 %v8755_v44  ;;  %v8853_v43 = vld [vmem:[%s12926_s1 + $0x724] ss:$16 sps:$4 sm:$0xff]   ;;  %v8856_v44 = vld [vmem:[%s12926_s1 + $0x72c] ss:$16 sps:$4 sm:$0xff]  }
  0xa8   :  { %5014 = vmatprep.subr.bf16.mxu0 %v8760_v45  ;;  %5573 = vmatprep.subr.bf16.mxu1 %v8763_v46  ;;  %v8851_v45 = vld [vmem:[%s12926_s1 + $0x720] ss:$16 sps:$4 sm:$0xff]   ;;  %v8854_v46 = vld [vmem:[%s12926_s1 + $0x728] ss:$16 sps:$4 sm:$0xff]  }
  0xab   :  { %5015 = vmatpush1.bf16.msra.mxu0 %v8758_v47  ;;  %5574 = vmatpush1.bf16.msra.mxu1 %v8761_v48  ;;  %v8859_v47 = vld [vmem:[%s12926_s1 + $0x744] ss:$16 sps:$4 sm:$0xff]   ;;  %v8862_v48 = vld [vmem:[%s12926_s1 + $0x74c] ss:$16 sps:$4 sm:$0xff]  }
  0xac   :  { %5016 = vmatprep.subr.bf16.mxu0 %v8766_v49  ;;  %5575 = vmatprep.subr.bf16.mxu1 %v8769_v50  ;;  %v8857_v49 = vld [vmem:[%s12926_s1 + $0x740] ss:$16 sps:$4 sm:$0xff]   ;;  %v8860_v50 = vld [vmem:[%s12926_s1 + $0x748] ss:$16 sps:$4 sm:$0xff]  }
  0xaf   :  { %5017 = vmatpush1.bf16.msra.mxu0 %v8764_v51  ;;  %5576 = vmatpush1.bf16.msra.mxu1 %v8767_v52  ;;  %v8865_v51 = vld [vmem:[%s12926_s1 + $0x764] ss:$16 sps:$4 sm:$0xff]   ;;  %v8868_v52 = vld [vmem:[%s12926_s1 + $0x76c] ss:$16 sps:$4 sm:$0xff]  }
  0xb0   :  { %5018 = vmatprep.subr.bf16.mxu0 %v8772_v53  ;;  %5577 = vmatprep.subr.bf16.mxu1 %v8775_v54  ;;  %v8863_v53 = vld [vmem:[%s12926_s1 + $0x760] ss:$16 sps:$4 sm:$0xff]   ;;  %v8866_v54 = vld [vmem:[%s12926_s1 + $0x768] ss:$16 sps:$4 sm:$0xff]  }
  0xb3   :  { %5019 = vmatpush1.bf16.msra.mxu0 %v8770_v55  ;;  %5578 = vmatpush1.bf16.msra.mxu1 %v8773_v56  ;;  %v8871_v55 = vld [vmem:[%s12926_s1 + $0x784] ss:$16 sps:$4 sm:$0xff]   ;;  %v8874_v56 = vld [vmem:[%s12926_s1 + $0x78c] ss:$16 sps:$4 sm:$0xff]  }
  0xb4   :  { %5020 = vmatprep.subr.bf16.mxu0 %v8778_v57  ;;  %5579 = vmatprep.subr.bf16.mxu1 %v8781_v58  ;;  %v8869_v57 = vld [vmem:[%s12926_s1 + $0x780] ss:$16 sps:$4 sm:$0xff]   ;;  %v8872_v58 = vld [vmem:[%s12926_s1 + $0x788] ss:$16 sps:$4 sm:$0xff]  }
  0xb7   :  { %5021 = vmatpush1.bf16.msra.mxu0 %v8776_v59  ;;  %5580 = vmatpush1.bf16.msra.mxu1 %v8779_v60  ;;  %v8877_v59 = vld [vmem:[%s12926_s1 + $0x7a4] ss:$16 sps:$4 sm:$0xff]   ;;  %v8880_v60 = vld [vmem:[%s12926_s1 + $0x7ac] ss:$16 sps:$4 sm:$0xff]  }
  0xb8   :  { %5022 = vmatprep.subr.bf16.mxu0 %v8784_v61  ;;  %5581 = vmatprep.subr.bf16.mxu1 %v8787_v62  ;;  %v8875_v61 = vld [vmem:[%s12926_s1 + $0x7a0] ss:$16 sps:$4 sm:$0xff]   ;;  %v8878_v62 = vld [vmem:[%s12926_s1 + $0x7a8] ss:$16 sps:$4 sm:$0xff]  }
  0xbb   :  { %5023 = vmatpush1.bf16.msra.mxu0 %v8782_v63  ;;  %5582 = vmatpush1.bf16.msra.mxu1 %v8785_v0  ;;  %v8883_v63 = vld [vmem:[%s12926_s1 + $0x7c4] ss:$16 sps:$4 sm:$0xff]   ;;  %v8886_v0 = vld [vmem:[%s12926_s1 + $0x7cc] ss:$16 sps:$4 sm:$0xff]  }
  0xbc   :  { %5024 = vmatprep.subr.bf16.mxu0 %v8790_v1  ;;  %5583 = vmatprep.subr.bf16.mxu1 %v8793_v2  ;;  %v8881_v1 = vld [vmem:[%s12926_s1 + $0x7c0] ss:$16 sps:$4 sm:$0xff]   ;;  %v8884_v2 = vld [vmem:[%s12926_s1 + $0x7c8] ss:$16 sps:$4 sm:$0xff]  }
  0xbf   :  { %5025 = vmatpush1.bf16.msra.mxu0 %v8788_v3  ;;  %5584 = vmatpush1.bf16.msra.mxu1 %v8791_v4  ;;  %v8889_v3 = vld [vmem:[%s12926_s1 + $0x7e4] ss:$16 sps:$4 sm:$0xff]   ;;  %v8892_v4 = vld [vmem:[%s12926_s1 + $0x7ec] ss:$16 sps:$4 sm:$0xff]  }
  0xc0   :  { %5037 = vmatprep.subr.bf16.mxu0 %v8799_v5  ;;  %5596 = vmatprep.subr.bf16.mxu1 %v8802_v6  ;;  %v8887_v5 = vld [vmem:[%s12926_s1 + $0x7e0] ss:$16 sps:$4 sm:$0xff]   ;;  %v8890_v6 = vld [vmem:[%s12926_s1 + $0x7e8] ss:$16 sps:$4 sm:$0xff]  }
  0xc2   :  { %5027 = vmatmul.mubr.bf16.vlgmr.msra.gmra.mrb[0].mxu0 %v8794_v7  ;;  %5586 = vmatmul.mubr.bf16.vlgmr.msra.gmra.mrb[0].mxu1 %v8794_v7  ;;  %v8898_v7 = vld [vmem:[%s12926_s1 + $0x804] ss:$16 sps:$4 sm:$0xff]  }
  0xc3   :  { %5038 = vmatpush1.bf16.msra.mxu0 %v8797_v8  ;;  %5597 = vmatpush1.bf16.msra.mxu1 %v8800_v9  ;;  %v8901_v8 = vld [vmem:[%s12926_s1 + $0x80c] ss:$16 sps:$4 sm:$0xff]  }
  0xc4   :  { %5039 = vmatprep.subr.bf16.mxu0 %v8805_v10  ;;  %5598 = vmatprep.subr.bf16.mxu1 %v8808_v11  ;;  %v8893_v9 = vld [vmem:[%s12927_s0 + $0x18] ss:$100 sps:$4 sm:$0xff]   ;;  %v8896_v10 = vld [vmem:[%s12926_s1 + $0x800] ss:$16 sps:$4 sm:$0xff]  }
  0xc5   :  { %5069 = vmatprep.mubr.bf16.mxu0 %v8895_v12  ;;  %5628 = vmatprep.mubr.bf16.mxu1 %v8895_v12  ;;  %v8899_v11 = vld [vmem:[%s12926_s1 + $0x808] ss:$16 sps:$4 sm:$0xff]   ;;  %v8904_v12 = vld [vmem:[%s12926_s1 + $0x824] ss:$16 sps:$4 sm:$0xff]  }
  0xc7   :  { %5040 = vmatpush1.bf16.msra.mxu0 %v8803_v13  ;;  %5599 = vmatpush1.bf16.msra.mxu1 %v8806_v14  ;;  %v8907_v13 = vld [vmem:[%s12926_s1 + $0x82c] ss:$16 sps:$4 sm:$0xff]   ;;  %v8994_v14 = vld [vmem:[%s12927_s0 + $0x24] ss:$100 sps:$4 sm:$0xff]  }
  0xc8   :  { %5041 = vmatprep.subr.bf16.mxu0 %v8811_v15  ;;  %5600 = vmatprep.subr.bf16.mxu1 %v8814_v16  ;;  %v8902_v15 = vld [vmem:[%s12926_s1 + $0x820] ss:$16 sps:$4 sm:$0xff]   ;;  %v8905_v16 = vld [vmem:[%s12926_s1 + $0x828] ss:$16 sps:$4 sm:$0xff]  }
  0xcb   :  { %5042 = vmatpush1.bf16.msra.mxu0 %v8809_v17  ;;  %5601 = vmatpush1.bf16.msra.mxu1 %v8812_v18  ;;  %v8910_v17 = vld [vmem:[%s12926_s1 + $0x844] ss:$16 sps:$4 sm:$0xff]   ;;  %v8913_v18 = vld [vmem:[%s12926_s1 + $0x84c] ss:$16 sps:$4 sm:$0xff]  }
  0xcc   :  { %5043 = vmatprep.subr.bf16.mxu0 %v8817_v19  ;;  %5602 = vmatprep.subr.bf16.mxu1 %v8820_v20  ;;  %v8908_v19 = vld [vmem:[%s12926_s1 + $0x840] ss:$16 sps:$4 sm:$0xff]   ;;  %v8911_v20 = vld [vmem:[%s12926_s1 + $0x848] ss:$16 sps:$4 sm:$0xff]  }
  0xcf   :  { %5044 = vmatpush1.bf16.msra.mxu0 %v8815_v21  ;;  %5603 = vmatpush1.bf16.msra.mxu1 %v8818_v22  ;;  %v8916_v21 = vld [vmem:[%s12926_s1 + $0x864] ss:$16 sps:$4 sm:$0xff]   ;;  %v8919_v22 = vld [vmem:[%s12926_s1 + $0x86c] ss:$16 sps:$4 sm:$0xff]  }
  0xd0   :  { %5045 = vmatprep.subr.bf16.mxu0 %v8823_v23  ;;  %5604 = vmatprep.subr.bf16.mxu1 %v8826_v24  ;;  %v8914_v23 = vld [vmem:[%s12926_s1 + $0x860] ss:$16 sps:$4 sm:$0xff]   ;;  %v8917_v24 = vld [vmem:[%s12926_s1 + $0x868] ss:$16 sps:$4 sm:$0xff]  }
  0xd3   :  { %5046 = vmatpush1.bf16.msra.mxu0 %v8821_v25  ;;  %5605 = vmatpush1.bf16.msra.mxu1 %v8824_v26  ;;  %v8922_v25 = vld [vmem:[%s12926_s1 + $0x884] ss:$16 sps:$4 sm:$0xff]   ;;  %v8925_v26 = vld [vmem:[%s12926_s1 + $0x88c] ss:$16 sps:$4 sm:$0xff]  }
  0xd4   :  { %5047 = vmatprep.subr.bf16.mxu0 %v8829_v27  ;;  %5606 = vmatprep.subr.bf16.mxu1 %v8832_v28  ;;  %v8920_v27 = vld [vmem:[%s12926_s1 + $0x880] ss:$16 sps:$4 sm:$0xff]   ;;  %v8923_v28 = vld [vmem:[%s12926_s1 + $0x888] ss:$16 sps:$4 sm:$0xff]  }
  0xd7   :  { %5048 = vmatpush1.bf16.msra.mxu0 %v8827_v29  ;;  %5607 = vmatpush1.bf16.msra.mxu1 %v8830_v30  ;;  %v8928_v29 = vld [vmem:[%s12926_s1 + $0x8a4] ss:$16 sps:$4 sm:$0xff]   ;;  %v8931_v30 = vld [vmem:[%s12926_s1 + $0x8ac] ss:$16 sps:$4 sm:$0xff]  }
  0xd8   :  { %5049 = vmatprep.subr.bf16.mxu0 %v8835_v31  ;;  %5608 = vmatprep.subr.bf16.mxu1 %v8838_v32  ;;  %v8926_v31 = vld [vmem:[%s12926_s1 + $0x8a0] ss:$16 sps:$4 sm:$0xff]   ;;  %v8929_v32 = vld [vmem:[%s12926_s1 + $0x8a8] ss:$16 sps:$4 sm:$0xff]  }
  0xdb   :  { %5050 = vmatpush1.bf16.msra.mxu0 %v8833_v33  ;;  %5609 = vmatpush1.bf16.msra.mxu1 %v8836_v34  ;;  %v8934_v33 = vld [vmem:[%s12926_s1 + $0x8c4] ss:$16 sps:$4 sm:$0xff]   ;;  %v8937_v34 = vld [vmem:[%s12926_s1 + $0x8cc] ss:$16 sps:$4 sm:$0xff]  }
  0xdc   :  { %5051 = vmatprep.subr.bf16.mxu0 %v8841_v35  ;;  %5610 = vmatprep.subr.bf16.mxu1 %v8844_v36  ;;  %v8932_v35 = vld [vmem:[%s12926_s1 + $0x8c0] ss:$16 sps:$4 sm:$0xff]   ;;  %v8935_v36 = vld [vmem:[%s12926_s1 + $0x8c8] ss:$16 sps:$4 sm:$0xff]  }
  0xdf   :  { %5052 = vmatpush1.bf16.msra.mxu0 %v8839_v37  ;;  %5611 = vmatpush1.bf16.msra.mxu1 %v8842_v38  ;;  %v8940_v37 = vld [vmem:[%s12926_s1 + $0x8e4] ss:$16 sps:$4 sm:$0xff]   ;;  %v8943_v38 = vld [vmem:[%s12926_s1 + $0x8ec] ss:$16 sps:$4 sm:$0xff]  }
  0xe0   :  { %5053 = vmatprep.subr.bf16.mxu0 %v8847_v39  ;;  %5612 = vmatprep.subr.bf16.mxu1 %v8850_v40  ;;  %v8938_v39 = vld [vmem:[%s12926_s1 + $0x8e0] ss:$16 sps:$4 sm:$0xff]   ;;  %v8941_v40 = vld [vmem:[%s12926_s1 + $0x8e8] ss:$16 sps:$4 sm:$0xff]  }
  0xe3   :  { %5054 = vmatpush1.bf16.msra.mxu0 %v8845_v41  ;;  %5613 = vmatpush1.bf16.msra.mxu1 %v8848_v42  ;;  %v8946_v41 = vld [vmem:[%s12926_s1 + $0x904] ss:$16 sps:$4 sm:$0xff]   ;;  %v8949_v42 = vld [vmem:[%s12926_s1 + $0x90c] ss:$16 sps:$4 sm:$0xff]  }
  0xe4   :  { %5055 = vmatprep.subr.bf16.mxu0 %v8853_v43  ;;  %5614 = vmatprep.subr.bf16.mxu1 %v8856_v44  ;;  %v8944_v43 = vld [vmem:[%s12926_s1 + $0x900] ss:$16 sps:$4 sm:$0xff]   ;;  %v8947_v44 = vld [vmem:[%s12926_s1 + $0x908] ss:$16 sps:$4 sm:$0xff]  }
  0xe7   :  { %5056 = vmatpush1.bf16.msra.mxu0 %v8851_v45  ;;  %5615 = vmatpush1.bf16.msra.mxu1 %v8854_v46  ;;  %v8952_v45 = vld [vmem:[%s12926_s1 + $0x924] ss:$16 sps:$4 sm:$0xff]   ;;  %v8955_v46 = vld [vmem:[%s12926_s1 + $0x92c] ss:$16 sps:$4 sm:$0xff]  }
  0xe8   :  { %5057 = vmatprep.subr.bf16.mxu0 %v8859_v47  ;;  %5616 = vmatprep.subr.bf16.mxu1 %v8862_v48  ;;  %v8950_v47 = vld [vmem:[%s12926_s1 + $0x920] ss:$16 sps:$4 sm:$0xff]   ;;  %v8953_v48 = vld [vmem:[%s12926_s1 + $0x928] ss:$16 sps:$4 sm:$0xff]  }
  0xeb   :  { %5058 = vmatpush1.bf16.msra.mxu0 %v8857_v49  ;;  %5617 = vmatpush1.bf16.msra.mxu1 %v8860_v50  ;;  %v8958_v49 = vld [vmem:[%s12926_s1 + $0x944] ss:$16 sps:$4 sm:$0xff]   ;;  %v8961_v50 = vld [vmem:[%s12926_s1 + $0x94c] ss:$16 sps:$4 sm:$0xff]  }
  0xec   :  { %5059 = vmatprep.subr.bf16.mxu0 %v8865_v51  ;;  %5618 = vmatprep.subr.bf16.mxu1 %v8868_v52  ;;  %v8956_v51 = vld [vmem:[%s12926_s1 + $0x940] ss:$16 sps:$4 sm:$0xff]   ;;  %v8959_v52 = vld [vmem:[%s12926_s1 + $0x948] ss:$16 sps:$4 sm:$0xff]  }
  0xef   :  { %5060 = vmatpush1.bf16.msra.mxu0 %v8863_v53  ;;  %5619 = vmatpush1.bf16.msra.mxu1 %v8866_v54  ;;  %v8964_v53 = vld [vmem:[%s12926_s1 + $0x964] ss:$16 sps:$4 sm:$0xff]   ;;  %v8967_v54 = vld [vmem:[%s12926_s1 + $0x96c] ss:$16 sps:$4 sm:$0xff]  }
  0xf0   :  { %5061 = vmatprep.subr.bf16.mxu0 %v8871_v55  ;;  %5620 = vmatprep.subr.bf16.mxu1 %v8874_v56  ;;  %v8962_v55 = vld [vmem:[%s12926_s1 + $0x960] ss:$16 sps:$4 sm:$0xff]   ;;  %v8965_v56 = vld [vmem:[%s12926_s1 + $0x968] ss:$16 sps:$4 sm:$0xff]  }
  0xf3   :  { %5062 = vmatpush1.bf16.msra.mxu0 %v8869_v57  ;;  %5621 = vmatpush1.bf16.msra.mxu1 %v8872_v58  ;;  %v8970_v57 = vld [vmem:[%s12926_s1 + $0x984] ss:$16 sps:$4 sm:$0xff]   ;;  %v8973_v58 = vld [vmem:[%s12926_s1 + $0x98c] ss:$16 sps:$4 sm:$0xff]  }
  0xf4   :  { %5063 = vmatprep.subr.bf16.mxu0 %v8877_v59  ;;  %5622 = vmatprep.subr.bf16.mxu1 %v8880_v60  ;;  %v8968_v59 = vld [vmem:[%s12926_s1 + $0x980] ss:$16 sps:$4 sm:$0xff]   ;;  %v8971_v60 = vld [vmem:[%s12926_s1 + $0x988] ss:$16 sps:$4 sm:$0xff]  }
  0xf7   :  { %5064 = vmatpush1.bf16.msra.mxu0 %v8875_v61  ;;  %5623 = vmatpush1.bf16.msra.mxu1 %v8878_v62  ;;  %v8976_v61 = vld [vmem:[%s12926_s1 + $0x9a4] ss:$16 sps:$4 sm:$0xff]   ;;  %v8979_v62 = vld [vmem:[%s12926_s1 + $0x9ac] ss:$16 sps:$4 sm:$0xff]  }
  0xf8   :  { %5065 = vmatprep.subr.bf16.mxu0 %v8883_v63  ;;  %5624 = vmatprep.subr.bf16.mxu1 %v8886_v0  ;;  %v8974_v63 = vld [vmem:[%s12926_s1 + $0x9a0] ss:$16 sps:$4 sm:$0xff]   ;;  %v8977_v0 = vld [vmem:[%s12926_s1 + $0x9a8] ss:$16 sps:$4 sm:$0xff]  }
  0xfb   :  { %5066 = vmatpush1.bf16.msra.mxu0 %v8881_v1  ;;  %5625 = vmatpush1.bf16.msra.mxu1 %v8884_v2  ;;  %v8982_v1 = vld [vmem:[%s12926_s1 + $0x9c4] ss:$16 sps:$4 sm:$0xff]   ;;  %v8985_v2 = vld [vmem:[%s12926_s1 + $0x9cc] ss:$16 sps:$4 sm:$0xff]  }
  0xfc   :  { %5067 = vmatprep.subr.bf16.mxu0 %v8889_v3  ;;  %5626 = vmatprep.subr.bf16.mxu1 %v8892_v4  ;;  %v8980_v3 = vld [vmem:[%s12926_s1 + $0x9c0] ss:$16 sps:$4 sm:$0xff]   ;;  %v8983_v4 = vld [vmem:[%s12926_s1 + $0x9c8] ss:$16 sps:$4 sm:$0xff]  }
  0xff   :  { %5068 = vmatpush1.bf16.msra.mxu0 %v8887_v5  ;;  %5627 = vmatpush1.bf16.msra.mxu1 %v8890_v6  ;;  %v8988_v5 = vld [vmem:[%s12926_s1 + $0x9e4] ss:$16 sps:$4 sm:$0xff]   ;;  %v8991_v6 = vld [vmem:[%s12926_s1 + $0x9ec] ss:$16 sps:$4 sm:$0xff]  }
 0x100   :  { %5080 = vmatprep.subr.bf16.mxu0 %v8898_v7  ;;  %5639 = vmatprep.subr.bf16.mxu1 %v8901_v8  ;;  %v8986_v7 = vld [vmem:[%s12926_s1 + $0x9e0] ss:$16 sps:$4 sm:$0xff]   ;;  %v8989_v8 = vld [vmem:[%s12926_s1 + $0x9e8] ss:$16 sps:$4 sm:$0xff]  }
 0x102   :  { %5070 = vmatmul.mubr.bf16.vlgmr.msra.gmra.mrb[0].mxu0 %v8893_v9  ;;  %5629 = vmatmul.mubr.bf16.vlgmr.msra.gmra.mrb[0].mxu1 %v8893_v9  ;;  %v8992_v9 = vld [vmem:[%s12927_s0 + $0x20] ss:$100 sps:$4 sm:$0xff]  }
 0x103   :  { %5081 = vmatpush1.bf16.msra.mxu0 %v8896_v10  ;;  %5640 = vmatpush1.bf16.msra.mxu1 %v8899_v11  ;;  %v8997_v10 = vld [vmem:[%s12926_s1 + $0xa04] ss:$16 sps:$4 sm:$0xff]   ;;  %v9000_v11 = vld [vmem:[%s12926_s1 + $0xa0c] ss:$16 sps:$4 sm:$0xff]  }
 0x104   :  { %5082 = vmatprep.subr.bf16.mxu0 %v8904_v12  ;;  %5641 = vmatprep.subr.bf16.mxu1 %v8907_v13  ;;  %v8995_v12 = vld [vmem:[%s12926_s1 + $0xa00] ss:$16 sps:$4 sm:$0xff]   ;;  %v8998_v13 = vld [vmem:[%s12926_s1 + $0xa08] ss:$16 sps:$4 sm:$0xff]  }
 0x105   :  { %5112 = vmatprep.mubr.bf16.mxu0 %v8994_v14  ;;  %5671 = vmatprep.mubr.bf16.mxu1 %v8994_v14  ;;  %v9003_v14 = vld [vmem:[%s12926_s1 + $0xa24] ss:$16 sps:$4 sm:$0xff]  }
 0x107   :  { %5083 = vmatpush1.bf16.msra.mxu0 %v8902_v15  ;;  %5642 = vmatpush1.bf16.msra.mxu1 %v8905_v16  ;;  %v9006_v15 = vld [vmem:[%s12926_s1 + $0xa2c] ss:$16 sps:$4 sm:$0xff]  }
 0x108   :  { %5084 = vmatprep.subr.bf16.mxu0 %v8910_v17  ;;  %5643 = vmatprep.subr.bf16.mxu1 %v8913_v18  ;;  %v9093_v16 = vld [vmem:[%s12927_s0 + $0x2c] ss:$100 sps:$4 sm:$0xff]   ;;  %v9004_v18 = vld [vmem:[%s12926_s1 + $0xa28] ss:$16 sps:$4 sm:$0xff]  }
 0x109   :  { %v9001_v17 = vld [vmem:[%s12926_s1 + $0xa20] ss:$16 sps:$4 sm:$0xff]  }
 0x10b   :  { %5085 = vmatpush1.bf16.msra.mxu0 %v8908_v19  ;;  %5644 = vmatpush1.bf16.msra.mxu1 %v8911_v20  ;;  %v9009_v19 = vld [vmem:[%s12926_s1 + $0xa44] ss:$16 sps:$4 sm:$0xff]   ;;  %v9012_v20 = vld [vmem:[%s12926_s1 + $0xa4c] ss:$16 sps:$4 sm:$0xff]  }
 0x10c   :  { %5086 = vmatprep.subr.bf16.mxu0 %v8916_v21  ;;  %5645 = vmatprep.subr.bf16.mxu1 %v8919_v22  ;;  %v9007_v21 = vld [vmem:[%s12926_s1 + $0xa40] ss:$16 sps:$4 sm:$0xff]   ;;  %v9010_v22 = vld [vmem:[%s12926_s1 + $0xa48] ss:$16 sps:$4 sm:$0xff]  }
 0x10f   :  { %5087 = vmatpush1.bf16.msra.mxu0 %v8914_v23  ;;  %5646 = vmatpush1.bf16.msra.mxu1 %v8917_v24  ;;  %v9015_v23 = vld [vmem:[%s12926_s1 + $0xa64] ss:$16 sps:$4 sm:$0xff]   ;;  %v9018_v24 = vld [vmem:[%s12926_s1 + $0xa6c] ss:$16 sps:$4 sm:$0xff]  }
 0x110   :  { %5088 = vmatprep.subr.bf16.mxu0 %v8922_v25  ;;  %5647 = vmatprep.subr.bf16.mxu1 %v8925_v26  ;;  %v9013_v25 = vld [vmem:[%s12926_s1 + $0xa60] ss:$16 sps:$4 sm:$0xff]   ;;  %v9016_v26 = vld [vmem:[%s12926_s1 + $0xa68] ss:$16 sps:$4 sm:$0xff]  }
 0x113   :  { %5089 = vmatpush1.bf16.msra.mxu0 %v8920_v27  ;;  %5648 = vmatpush1.bf16.msra.mxu1 %v8923_v28  ;;  %v9021_v27 = vld [vmem:[%s12926_s1 + $0xa84] ss:$16 sps:$4 sm:$0xff]   ;;  %v9024_v28 = vld [vmem:[%s12926_s1 + $0xa8c] ss:$16 sps:$4 sm:$0xff]  }
 0x114   :  { %5090 = vmatprep.subr.bf16.mxu0 %v8928_v29  ;;  %5649 = vmatprep.subr.bf16.mxu1 %v8931_v30  ;;  %v9019_v29 = vld [vmem:[%s12926_s1 + $0xa80] ss:$16 sps:$4 sm:$0xff]   ;;  %v9022_v30 = vld [vmem:[%s12926_s1 + $0xa88] ss:$16 sps:$4 sm:$0xff]  }
 0x117   :  { %5091 = vmatpush1.bf16.msra.mxu0 %v8926_v31  ;;  %5650 = vmatpush1.bf16.msra.mxu1 %v8929_v32  ;;  %v9027_v31 = vld [vmem:[%s12926_s1 + $0xaa4] ss:$16 sps:$4 sm:$0xff]   ;;  %v9030_v32 = vld [vmem:[%s12926_s1 + $0xaac] ss:$16 sps:$4 sm:$0xff]  }
 0x118   :  { %5092 = vmatprep.subr.bf16.mxu0 %v8934_v33  ;;  %5651 = vmatprep.subr.bf16.mxu1 %v8937_v34  ;;  %v9025_v33 = vld [vmem:[%s12926_s1 + $0xaa0] ss:$16 sps:$4 sm:$0xff]   ;;  %v9028_v34 = vld [vmem:[%s12926_s1 + $0xaa8] ss:$16 sps:$4 sm:$0xff]  }
 0x11b   :  { %5093 = vmatpush1.bf16.msra.mxu0 %v8932_v35  ;;  %5652 = vmatpush1.bf16.msra.mxu1 %v8935_v36  ;;  %v9033_v35 = vld [vmem:[%s12926_s1 + $0xac4] ss:$16 sps:$4 sm:$0xff]   ;;  %v9036_v36 = vld [vmem:[%s12926_s1 + $0xacc] ss:$16 sps:$4 sm:$0xff]  }
 0x11c   :  { %5094 = vmatprep.subr.bf16.mxu0 %v8940_v37  ;;  %5653 = vmatprep.subr.bf16.mxu1 %v8943_v38  ;;  %v9031_v37 = vld [vmem:[%s12926_s1 + $0xac0] ss:$16 sps:$4 sm:$0xff]   ;;  %v9034_v38 = vld [vmem:[%s12926_s1 + $0xac8] ss:$16 sps:$4 sm:$0xff]  }
 0x11f   :  { %5095 = vmatpush1.bf16.msra.mxu0 %v8938_v39  ;;  %5654 = vmatpush1.bf16.msra.mxu1 %v8941_v40  ;;  %v9039_v39 = vld [vmem:[%s12926_s1 + $0xae4] ss:$16 sps:$4 sm:$0xff]   ;;  %v9042_v40 = vld [vmem:[%s12926_s1 + $0xaec] ss:$16 sps:$4 sm:$0xff]  }
 0x120   :  { %5096 = vmatprep.subr.bf16.mxu0 %v8946_v41  ;;  %5655 = vmatprep.subr.bf16.mxu1 %v8949_v42  ;;  %v9037_v41 = vld [vmem:[%s12926_s1 + $0xae0] ss:$16 sps:$4 sm:$0xff]   ;;  %v9040_v42 = vld [vmem:[%s12926_s1 + $0xae8] ss:$16 sps:$4 sm:$0xff]  }
 0x123   :  { %5097 = vmatpush1.bf16.msra.mxu0 %v8944_v43  ;;  %5656 = vmatpush1.bf16.msra.mxu1 %v8947_v44  ;;  %v9045_v43 = vld [vmem:[%s12926_s1 + $0xb04] ss:$16 sps:$4 sm:$0xff]   ;;  %v9048_v44 = vld [vmem:[%s12926_s1 + $0xb0c] ss:$16 sps:$4 sm:$0xff]  }
 0x124   :  { %5098 = vmatprep.subr.bf16.mxu0 %v8952_v45  ;;  %5657 = vmatprep.subr.bf16.mxu1 %v8955_v46  ;;  %v9043_v45 = vld [vmem:[%s12926_s1 + $0xb00] ss:$16 sps:$4 sm:$0xff]   ;;  %v9046_v46 = vld [vmem:[%s12926_s1 + $0xb08] ss:$16 sps:$4 sm:$0xff]  }
 0x127   :  { %5099 = vmatpush1.bf16.msra.mxu0 %v8950_v47  ;;  %5658 = vmatpush1.bf16.msra.mxu1 %v8953_v48  ;;  %v9051_v47 = vld [vmem:[%s12926_s1 + $0xb24] ss:$16 sps:$4 sm:$0xff]   ;;  %v9054_v48 = vld [vmem:[%s12926_s1 + $0xb2c] ss:$16 sps:$4 sm:$0xff]  }
 0x128   :  { %5100 = vmatprep.subr.bf16.mxu0 %v8958_v49  ;;  %5659 = vmatprep.subr.bf16.mxu1 %v8961_v50  ;;  %v9049_v49 = vld [vmem:[%s12926_s1 + $0xb20] ss:$16 sps:$4 sm:$0xff]   ;;  %v9052_v50 = vld [vmem:[%s12926_s1 + $0xb28] ss:$16 sps:$4 sm:$0xff]  }
 0x12b   :  { %5101 = vmatpush1.bf16.msra.mxu0 %v8956_v51  ;;  %5660 = vmatpush1.bf16.msra.mxu1 %v8959_v52  ;;  %v9057_v51 = vld [vmem:[%s12926_s1 + $0xb44] ss:$16 sps:$4 sm:$0xff]   ;;  %v9060_v52 = vld [vmem:[%s12926_s1 + $0xb4c] ss:$16 sps:$4 sm:$0xff]  }
 0x12c   :  { %5102 = vmatprep.subr.bf16.mxu0 %v8964_v53  ;;  %5661 = vmatprep.subr.bf16.mxu1 %v8967_v54  ;;  %v9055_v53 = vld [vmem:[%s12926_s1 + $0xb40] ss:$16 sps:$4 sm:$0xff]   ;;  %v9058_v54 = vld [vmem:[%s12926_s1 + $0xb48] ss:$16 sps:$4 sm:$0xff]  }
 0x12f   :  { %5103 = vmatpush1.bf16.msra.mxu0 %v8962_v55  ;;  %5662 = vmatpush1.bf16.msra.mxu1 %v8965_v56  ;;  %v9063_v55 = vld [vmem:[%s12926_s1 + $0xb64] ss:$16 sps:$4 sm:$0xff]   ;;  %v9066_v56 = vld [vmem:[%s12926_s1 + $0xb6c] ss:$16 sps:$4 sm:$0xff]  }
 0x130   :  { %5104 = vmatprep.subr.bf16.mxu0 %v8970_v57  ;;  %5663 = vmatprep.subr.bf16.mxu1 %v8973_v58  ;;  %v9061_v57 = vld [vmem:[%s12926_s1 + $0xb60] ss:$16 sps:$4 sm:$0xff]   ;;  %v9064_v58 = vld [vmem:[%s12926_s1 + $0xb68] ss:$16 sps:$4 sm:$0xff]  }
 0x133   :  { %5105 = vmatpush1.bf16.msra.mxu0 %v8968_v59  ;;  %5664 = vmatpush1.bf16.msra.mxu1 %v8971_v60  ;;  %v9069_v59 = vld [vmem:[%s12926_s1 + $0xb84] ss:$16 sps:$4 sm:$0xff]   ;;  %v9072_v60 = vld [vmem:[%s12926_s1 + $0xb8c] ss:$16 sps:$4 sm:$0xff]  }
 0x134   :  { %5106 = vmatprep.subr.bf16.mxu0 %v8976_v61  ;;  %5665 = vmatprep.subr.bf16.mxu1 %v8979_v62  ;;  %v9067_v61 = vld [vmem:[%s12926_s1 + $0xb80] ss:$16 sps:$4 sm:$0xff]   ;;  %v9070_v62 = vld [vmem:[%s12926_s1 + $0xb88] ss:$16 sps:$4 sm:$0xff]  }
 0x137   :  { %5107 = vmatpush1.bf16.msra.mxu0 %v8974_v63  ;;  %5666 = vmatpush1.bf16.msra.mxu1 %v8977_v0  ;;  %v9075_v63 = vld [vmem:[%s12926_s1 + $0xba4] ss:$16 sps:$4 sm:$0xff]   ;;  %v9078_v0 = vld [vmem:[%s12926_s1 + $0xbac] ss:$16 sps:$4 sm:$0xff]  }
 0x138   :  { %5108 = vmatprep.subr.bf16.mxu0 %v8982_v1  ;;  %5667 = vmatprep.subr.bf16.mxu1 %v8985_v2  ;;  %v9073_v1 = vld [vmem:[%s12926_s1 + $0xba0] ss:$16 sps:$4 sm:$0xff]   ;;  %v9076_v2 = vld [vmem:[%s12926_s1 + $0xba8] ss:$16 sps:$4 sm:$0xff]  }
 0x13b   :  { %5109 = vmatpush1.bf16.msra.mxu0 %v8980_v3  ;;  %5668 = vmatpush1.bf16.msra.mxu1 %v8983_v4  ;;  %v9081_v3 = vld [vmem:[%s12926_s1 + $0xbc4] ss:$16 sps:$4 sm:$0xff]   ;;  %v9084_v4 = vld [vmem:[%s12926_s1 + $0xbcc] ss:$16 sps:$4 sm:$0xff]  }
 0x13c   :  { %5110 = vmatprep.subr.bf16.mxu0 %v8988_v5  ;;  %5669 = vmatprep.subr.bf16.mxu1 %v8991_v6  ;;  %v9079_v5 = vld [vmem:[%s12926_s1 + $0xbc0] ss:$16 sps:$4 sm:$0xff]   ;;  %v9082_v6 = vld [vmem:[%s12926_s1 + $0xbc8] ss:$16 sps:$4 sm:$0xff]  }
 0x13f   :  { %5111 = vmatpush1.bf16.msra.mxu0 %v8986_v7  ;;  %5670 = vmatpush1.bf16.msra.mxu1 %v8989_v8  ;;  %v9087_v7 = vld [vmem:[%s12926_s1 + $0xbe4] ss:$16 sps:$4 sm:$0xff]   ;;  %v9090_v8 = vld [vmem:[%s12926_s1 + $0xbec] ss:$16 sps:$4 sm:$0xff]  }
 0x140   :  { %5123 = vmatprep.subr.bf16.mxu0 %v8997_v10  ;;  %5682 = vmatprep.subr.bf16.mxu1 %v9000_v11  ;;  %v9088_v10 = vld [vmem:[%s12926_s1 + $0xbe8] ss:$16 sps:$4 sm:$0xff]  }
 0x141   :  { %v9091_v11 = vld [vmem:[%s12927_s0 + $0x28] ss:$100 sps:$4 sm:$0xff]  }
 0x142   :  { %5113 = vmatmul.mubr.bf16.vlgmr.msra.gmra.mrb[0].mxu0 %v8992_v9  ;;  %5672 = vmatmul.mubr.bf16.vlgmr.msra.gmra.mrb[0].mxu1 %v8992_v9  ;;  %v9085_v9 = vld [vmem:[%s12926_s1 + $0xbe0] ss:$16 sps:$4 sm:$0xff]  }
 0x143   :  { %5124 = vmatpush1.bf16.msra.mxu0 %v8995_v12  ;;  %5683 = vmatpush1.bf16.msra.mxu1 %v8998_v13  ;;  %v9096_v12 = vld [vmem:[%s12926_s1 + $0xc04] ss:$16 sps:$4 sm:$0xff]   ;;  %v9099_v13 = vld [vmem:[%s12926_s1 + $0xc0c] ss:$16 sps:$4 sm:$0xff]  }
 0x144   :  { %5125 = vmatprep.subr.bf16.mxu0 %v9003_v14  ;;  %5684 = vmatprep.subr.bf16.mxu1 %v9006_v15  ;;  %v9094_v14 = vld [vmem:[%s12926_s1 + $0xc00] ss:$16 sps:$4 sm:$0xff]   ;;  %v9097_v15 = vld [vmem:[%s12926_s1 + $0xc08] ss:$16 sps:$4 sm:$0xff]  }
 0x145   :  { %5155 = vmatprep.mubr.bf16.mxu0 %v9093_v16  ;;  %5714 = vmatprep.mubr.bf16.mxu1 %v9093_v16  ;;  %v9102_v16 = vld [vmem:[%s12926_s1 + $0xc24] ss:$16 sps:$4 sm:$0xff]  }
 0x147   :  { %5126 = vmatpush1.bf16.msra.mxu0 %v9001_v17  ;;  %5685 = vmatpush1.bf16.msra.mxu1 %v9004_v18  ;;  %v9105_v17 = vld [vmem:[%s12926_s1 + $0xc2c] ss:$16 sps:$4 sm:$0xff]   ;;  %v9192_v18 = vld [vmem:[%s12927_s0 + $0x34] ss:$100 sps:$4 sm:$0xff]  }
 0x148   :  { %5127 = vmatprep.subr.bf16.mxu0 %v9009_v19  ;;  %5686 = vmatprep.subr.bf16.mxu1 %v9012_v20  ;;  %v9100_v19 = vld [vmem:[%s12926_s1 + $0xc20] ss:$16 sps:$4 sm:$0xff]   ;;  %v9103_v20 = vld [vmem:[%s12926_s1 + $0xc28] ss:$16 sps:$4 sm:$0xff]  }
 0x14b   :  { %5128 = vmatpush1.bf16.msra.mxu0 %v9007_v21  ;;  %5687 = vmatpush1.bf16.msra.mxu1 %v9010_v22  ;;  %v9108_v21 = vld [vmem:[%s12926_s1 + $0xc44] ss:$16 sps:$4 sm:$0xff]   ;;  %v9111_v22 = vld [vmem:[%s12926_s1 + $0xc4c] ss:$16 sps:$4 sm:$0xff]  }
 0x14c   :  { %5129 = vmatprep.subr.bf16.mxu0 %v9015_v23  ;;  %5688 = vmatprep.subr.bf16.mxu1 %v9018_v24  ;;  %v9106_v23 = vld [vmem:[%s12926_s1 + $0xc40] ss:$16 sps:$4 sm:$0xff]   ;;  %v9109_v24 = vld [vmem:[%s12926_s1 + $0xc48] ss:$16 sps:$4 sm:$0xff]  }
 0x14f   :  { %5130 = vmatpush1.bf16.msra.mxu0 %v9013_v25  ;;  %5689 = vmatpush1.bf16.msra.mxu1 %v9016_v26  ;;  %v9114_v25 = vld [vmem:[%s12926_s1 + $0xc64] ss:$16 sps:$4 sm:$0xff]   ;;  %v9117_v26 = vld [vmem:[%s12926_s1 + $0xc6c] ss:$16 sps:$4 sm:$0xff]  }
 0x150   :  { %5131 = vmatprep.subr.bf16.mxu0 %v9021_v27  ;;  %5690 = vmatprep.subr.bf16.mxu1 %v9024_v28  ;;  %v9112_v27 = vld [vmem:[%s12926_s1 + $0xc60] ss:$16 sps:$4 sm:$0xff]   ;;  %v9115_v28 = vld [vmem:[%s12926_s1 + $0xc68] ss:$16 sps:$4 sm:$0xff]  }
 0x153   :  { %5132 = vmatpush1.bf16.msra.mxu0 %v9019_v29  ;;  %5691 = vmatpush1.bf16.msra.mxu1 %v9022_v30  ;;  %v9120_v29 = vld [vmem:[%s12926_s1 + $0xc84] ss:$16 sps:$4 sm:$0xff]   ;;  %v9123_v30 = vld [vmem:[%s12926_s1 + $0xc8c] ss:$16 sps:$4 sm:$0xff]  }
 0x154   :  { %5133 = vmatprep.subr.bf16.mxu0 %v9027_v31  ;;  %5692 = vmatprep.subr.bf16.mxu1 %v9030_v32  ;;  %v9118_v31 = vld [vmem:[%s12926_s1 + $0xc80] ss:$16 sps:$4 sm:$0xff]   ;;  %v9121_v32 = vld [vmem:[%s12926_s1 + $0xc88] ss:$16 sps:$4 sm:$0xff]  }
 0x157   :  { %5134 = vmatpush1.bf16.msra.mxu0 %v9025_v33  ;;  %5693 = vmatpush1.bf16.msra.mxu1 %v9028_v34  ;;  %v9126_v33 = vld [vmem:[%s12926_s1 + $0xca4] ss:$16 sps:$4 sm:$0xff]   ;;  %v9129_v34 = vld [vmem:[%s12926_s1 + $0xcac] ss:$16 sps:$4 sm:$0xff]  }
 0x158   :  { %5135 = vmatprep.subr.bf16.mxu0 %v9033_v35  ;;  %5694 = vmatprep.subr.bf16.mxu1 %v9036_v36  ;;  %v9124_v35 = vld [vmem:[%s12926_s1 + $0xca0] ss:$16 sps:$4 sm:$0xff]   ;;  %v9127_v36 = vld [vmem:[%s12926_s1 + $0xca8] ss:$16 sps:$4 sm:$0xff]  }
 0x15b   :  { %5136 = vmatpush1.bf16.msra.mxu0 %v9031_v37  ;;  %5695 = vmatpush1.bf16.msra.mxu1 %v9034_v38  ;;  %v9132_v37 = vld [vmem:[%s12926_s1 + $0xcc4] ss:$16 sps:$4 sm:$0xff]   ;;  %v9135_v38 = vld [vmem:[%s12926_s1 + $0xccc] ss:$16 sps:$4 sm:$0xff]  }
 0x15c   :  { %5137 = vmatprep.subr.bf16.mxu0 %v9039_v39  ;;  %5696 = vmatprep.subr.bf16.mxu1 %v9042_v40  ;;  %v9130_v39 = vld [vmem:[%s12926_s1 + $0xcc0] ss:$16 sps:$4 sm:$0xff]   ;;  %v9133_v40 = vld [vmem:[%s12926_s1 + $0xcc8] ss:$16 sps:$4 sm:$0xff]  }
 0x15f   :  { %5138 = vmatpush1.bf16.msra.mxu0 %v9037_v41  ;;  %5697 = vmatpush1.bf16.msra.mxu1 %v9040_v42  ;;  %v9138_v41 = vld [vmem:[%s12926_s1 + $0xce4] ss:$16 sps:$4 sm:$0xff]   ;;  %v9141_v42 = vld [vmem:[%s12926_s1 + $0xcec] ss:$16 sps:$4 sm:$0xff]  }
 0x160   :  { %5139 = vmatprep.subr.bf16.mxu0 %v9045_v43  ;;  %5698 = vmatprep.subr.bf16.mxu1 %v9048_v44  ;;  %v9136_v43 = vld [vmem:[%s12926_s1 + $0xce0] ss:$16 sps:$4 sm:$0xff]   ;;  %v9139_v44 = vld [vmem:[%s12926_s1 + $0xce8] ss:$16 sps:$4 sm:$0xff]  }
 0x163   :  { %5140 = vmatpush1.bf16.msra.mxu0 %v9043_v45  ;;  %5699 = vmatpush1.bf16.msra.mxu1 %v9046_v46  ;;  %v9144_v45 = vld [vmem:[%s12926_s1 + $0xd04] ss:$16 sps:$4 sm:$0xff]   ;;  %v9147_v46 = vld [vmem:[%s12926_s1 + $0xd0c] ss:$16 sps:$4 sm:$0xff]  }
 0x164   :  { %5141 = vmatprep.subr.bf16.mxu0 %v9051_v47  ;;  %5700 = vmatprep.subr.bf16.mxu1 %v9054_v48  ;;  %v9142_v47 = vld [vmem:[%s12926_s1 + $0xd00] ss:$16 sps:$4 sm:$0xff]   ;;  %v9145_v48 = vld [vmem:[%s12926_s1 + $0xd08] ss:$16 sps:$4 sm:$0xff]  }
 0x167   :  { %5142 = vmatpush1.bf16.msra.mxu0 %v9049_v49  ;;  %5701 = vmatpush1.bf16.msra.mxu1 %v9052_v50  ;;  %v9150_v49 = vld [vmem:[%s12926_s1 + $0xd24] ss:$16 sps:$4 sm:$0xff]   ;;  %v9153_v50 = vld [vmem:[%s12926_s1 + $0xd2c] ss:$16 sps:$4 sm:$0xff]  }
 0x168   :  { %5143 = vmatprep.subr.bf16.mxu0 %v9057_v51  ;;  %5702 = vmatprep.subr.bf16.mxu1 %v9060_v52  ;;  %v9148_v51 = vld [vmem:[%s12926_s1 + $0xd20] ss:$16 sps:$4 sm:$0xff]   ;;  %v9151_v52 = vld [vmem:[%s12926_s1 + $0xd28] ss:$16 sps:$4 sm:$0xff]  }
 0x16b   :  { %5144 = vmatpush1.bf16.msra.mxu0 %v9055_v53  ;;  %5703 = vmatpush1.bf16.msra.mxu1 %v9058_v54  ;;  %v9156_v53 = vld [vmem:[%s12926_s1 + $0xd44] ss:$16 sps:$4 sm:$0xff]   ;;  %v9159_v54 = vld [vmem:[%s12926_s1 + $0xd4c] ss:$16 sps:$4 sm:$0xff]  }
 0x16c   :  { %5145 = vmatprep.subr.bf16.mxu0 %v9063_v55  ;;  %5704 = vmatprep.subr.bf16.mxu1 %v9066_v56  ;;  %v9154_v55 = vld [vmem:[%s12926_s1 + $0xd40] ss:$16 sps:$4 sm:$0xff]   ;;  %v9157_v56 = vld [vmem:[%s12926_s1 + $0xd48] ss:$16 sps:$4 sm:$0xff]  }
 0x16f   :  { %5146 = vmatpush1.bf16.msra.mxu0 %v9061_v57  ;;  %5705 = vmatpush1.bf16.msra.mxu1 %v9064_v58  ;;  %v9162_v57 = vld [vmem:[%s12926_s1 + $0xd64] ss:$16 sps:$4 sm:$0xff]   ;;  %v9165_v58 = vld [vmem:[%s12926_s1 + $0xd6c] ss:$16 sps:$4 sm:$0xff]  }
 0x170   :  { %5147 = vmatprep.subr.bf16.mxu0 %v9069_v59  ;;  %5706 = vmatprep.subr.bf16.mxu1 %v9072_v60  ;;  %v9160_v59 = vld [vmem:[%s12926_s1 + $0xd60] ss:$16 sps:$4 sm:$0xff]   ;;  %v9163_v60 = vld [vmem:[%s12926_s1 + $0xd68] ss:$16 sps:$4 sm:$0xff]  }
 0x173   :  { %5148 = vmatpush1.bf16.msra.mxu0 %v9067_v61  ;;  %5707 = vmatpush1.bf16.msra.mxu1 %v9070_v62  ;;  %v9168_v61 = vld [vmem:[%s12926_s1 + $0xd84] ss:$16 sps:$4 sm:$0xff]   ;;  %v9171_v62 = vld [vmem:[%s12926_s1 + $0xd8c] ss:$16 sps:$4 sm:$0xff]  }
 0x174   :  { %5149 = vmatprep.subr.bf16.mxu0 %v9075_v63  ;;  %5708 = vmatprep.subr.bf16.mxu1 %v9078_v0  ;;  %v9166_v63 = vld [vmem:[%s12926_s1 + $0xd80] ss:$16 sps:$4 sm:$0xff]   ;;  %v9169_v0 = vld [vmem:[%s12926_s1 + $0xd88] ss:$16 sps:$4 sm:$0xff]  }
 0x177   :  { %5150 = vmatpush1.bf16.msra.mxu0 %v9073_v1  ;;  %5709 = vmatpush1.bf16.msra.mxu1 %v9076_v2  ;;  %v9174_v1 = vld [vmem:[%s12926_s1 + $0xda4] ss:$16 sps:$4 sm:$0xff]   ;;  %v9177_v2 = vld [vmem:[%s12926_s1 + $0xdac] ss:$16 sps:$4 sm:$0xff]  }
 0x178   :  { %5151 = vmatprep.subr.bf16.mxu0 %v9081_v3  ;;  %5710 = vmatprep.subr.bf16.mxu1 %v9084_v4  ;;  %v9172_v3 = vld [vmem:[%s12926_s1 + $0xda0] ss:$16 sps:$4 sm:$0xff]   ;;  %v9175_v4 = vld [vmem:[%s12926_s1 + $0xda8] ss:$16 sps:$4 sm:$0xff]  }
 0x17b   :  { %5152 = vmatpush1.bf16.msra.mxu0 %v9079_v5  ;;  %5711 = vmatpush1.bf16.msra.mxu1 %v9082_v6  ;;  %v9180_v5 = vld [vmem:[%s12926_s1 + $0xdc4] ss:$16 sps:$4 sm:$0xff]   ;;  %v9183_v6 = vld [vmem:[%s12926_s1 + $0xdcc] ss:$16 sps:$4 sm:$0xff]  }
 0x17c   :  { %5153 = vmatprep.subr.bf16.mxu0 %v9087_v7  ;;  %5712 = vmatprep.subr.bf16.mxu1 %v9090_v8  ;;  %v9178_v7 = vld [vmem:[%s12926_s1 + $0xdc0] ss:$16 sps:$4 sm:$0xff]   ;;  %v9181_v8 = vld [vmem:[%s12926_s1 + $0xdc8] ss:$16 sps:$4 sm:$0xff]  }
 0x17f   :  { %5154 = vmatpush1.bf16.msra.mxu0 %v9085_v9  ;;  %5713 = vmatpush1.bf16.msra.mxu1 %v9088_v10  ;;  %v9186_v9 = vld [vmem:[%s12926_s1 + $0xde4] ss:$16 sps:$4 sm:$0xff]   ;;  %v9189_v10 = vld [vmem:[%s12926_s1 + $0xdec] ss:$16 sps:$4 sm:$0xff]  }
 0x180   :  { %5166 = vmatprep.subr.bf16.mxu0 %v9096_v12  ;;  %5725 = vmatprep.subr.bf16.mxu1 %v9099_v13  ;;  %v9187_v12 = vld [vmem:[%s12926_s1 + $0xde8] ss:$16 sps:$4 sm:$0xff]   ;;  %v9190_v13 = vld [vmem:[%s12927_s0 + $0x30] ss:$100 sps:$4 sm:$0xff]  }
 0x182   :  { %5156 = vmatmul.mubr.bf16.vlgmr.msra.gmra.mrb[0].mxu0 %v9091_v11  ;;  %5715 = vmatmul.mubr.bf16.vlgmr.msra.gmra.mrb[0].mxu1 %v9091_v11  ;;  %v9184_v11 = vld [vmem:[%s12926_s1 + $0xde0] ss:$16 sps:$4 sm:$0xff]  }
 0x183   :  { %5167 = vmatpush1.bf16.msra.mxu0 %v9094_v14  ;;  %5726 = vmatpush1.bf16.msra.mxu1 %v9097_v15  ;;  %v9195_v14 = vld [vmem:[%s12926_s1 + $0xe04] ss:$16 sps:$4 sm:$0xff]   ;;  %v9198_v15 = vld [vmem:[%s12926_s1 + $0xe0c] ss:$16 sps:$4 sm:$0xff]  }
 0x184   :  { %5168 = vmatprep.subr.bf16.mxu0 %v9102_v16  ;;  %5727 = vmatprep.subr.bf16.mxu1 %v9105_v17  ;;  %v9193_v16 = vld [vmem:[%s12926_s1 + $0xe00] ss:$16 sps:$4 sm:$0xff]   ;;  %v9196_v17 = vld [vmem:[%s12926_s1 + $0xe08] ss:$16 sps:$4 sm:$0xff]  }
 0x185   :  { %5198 = vmatprep.mubr.bf16.mxu0 %v9192_v18  ;;  %5757 = vmatprep.mubr.bf16.mxu1 %v9192_v18  ;;  %v9201_v18 = vld [vmem:[%s12926_s1 + $0xe24] ss:$16 sps:$4 sm:$0xff]  }
 0x187   :  { %5169 = vmatpush1.bf16.msra.mxu0 %v9100_v19  ;;  %5728 = vmatpush1.bf16.msra.mxu1 %v9103_v20  ;;  %v9204_v19 = vld [vmem:[%s12926_s1 + $0xe2c] ss:$16 sps:$4 sm:$0xff]  }
 0x188   :  { %5170 = vmatprep.subr.bf16.mxu0 %v9108_v21  ;;  %5729 = vmatprep.subr.bf16.mxu1 %v9111_v22  ;;  %v9291_v20 = vld [vmem:[%s12927_s0 + $0x3c] ss:$100 sps:$4 sm:$0xff]   ;;  %v9202_v22 = vld [vmem:[%s12926_s1 + $0xe28] ss:$16 sps:$4 sm:$0xff]  }
 0x189   :  { %v9199_v21 = vld [vmem:[%s12926_s1 + $0xe20] ss:$16 sps:$4 sm:$0xff]  }
 0x18b   :  { %5171 = vmatpush1.bf16.msra.mxu0 %v9106_v23  ;;  %5730 = vmatpush1.bf16.msra.mxu1 %v9109_v24  ;;  %v9207_v23 = vld [vmem:[%s12926_s1 + $0xe44] ss:$16 sps:$4 sm:$0xff]   ;;  %v9210_v24 = vld [vmem:[%s12926_s1 + $0xe4c] ss:$16 sps:$4 sm:$0xff]  }
 0x18c   :  { %5172 = vmatprep.subr.bf16.mxu0 %v9114_v25  ;;  %5731 = vmatprep.subr.bf16.mxu1 %v9117_v26  ;;  %v9205_v25 = vld [vmem:[%s12926_s1 + $0xe40] ss:$16 sps:$4 sm:$0xff]   ;;  %v9208_v26 = vld [vmem:[%s12926_s1 + $0xe48] ss:$16 sps:$4 sm:$0xff]  }
 0x18f   :  { %5173 = vmatpush1.bf16.msra.mxu0 %v9112_v27  ;;  %5732 = vmatpush1.bf16.msra.mxu1 %v9115_v28  ;;  %v9213_v27 = vld [vmem:[%s12926_s1 + $0xe64] ss:$16 sps:$4 sm:$0xff]   ;;  %v9216_v28 = vld [vmem:[%s12926_s1 + $0xe6c] ss:$16 sps:$4 sm:$0xff]  }
 0x190   :  { %5174 = vmatprep.subr.bf16.mxu0 %v9120_v29  ;;  %5733 = vmatprep.subr.bf16.mxu1 %v9123_v30  ;;  %v9211_v29 = vld [vmem:[%s12926_s1 + $0xe60] ss:$16 sps:$4 sm:$0xff]   ;;  %v9214_v30 = vld [vmem:[%s12926_s1 + $0xe68] ss:$16 sps:$4 sm:$0xff]  }
 0x193   :  { %5175 = vmatpush1.bf16.msra.mxu0 %v9118_v31  ;;  %5734 = vmatpush1.bf16.msra.mxu1 %v9121_v32  ;;  %v9219_v31 = vld [vmem:[%s12926_s1 + $0xe84] ss:$16 sps:$4 sm:$0xff]   ;;  %v9222_v32 = vld [vmem:[%s12926_s1 + $0xe8c] ss:$16 sps:$4 sm:$0xff]  }
 0x194   :  { %5176 = vmatprep.subr.bf16.mxu0 %v9126_v33  ;;  %5735 = vmatprep.subr.bf16.mxu1 %v9129_v34  ;;  %v9217_v33 = vld [vmem:[%s12926_s1 + $0xe80] ss:$16 sps:$4 sm:$0xff]   ;;  %v9220_v34 = vld [vmem:[%s12926_s1 + $0xe88] ss:$16 sps:$4 sm:$0xff]  }
 0x197   :  { %5177 = vmatpush1.bf16.msra.mxu0 %v9124_v35  ;;  %5736 = vmatpush1.bf16.msra.mxu1 %v9127_v36  ;;  %v9225_v35 = vld [vmem:[%s12926_s1 + $0xea4] ss:$16 sps:$4 sm:$0xff]   ;;  %v9228_v36 = vld [vmem:[%s12926_s1 + $0xeac] ss:$16 sps:$4 sm:$0xff]  }
 0x198   :  { %5178 = vmatprep.subr.bf16.mxu0 %v9132_v37  ;;  %5737 = vmatprep.subr.bf16.mxu1 %v9135_v38  ;;  %v9223_v37 = vld [vmem:[%s12926_s1 + $0xea0] ss:$16 sps:$4 sm:$0xff]   ;;  %v9226_v38 = vld [vmem:[%s12926_s1 + $0xea8] ss:$16 sps:$4 sm:$0xff]  }
 0x19b   :  { %5179 = vmatpush1.bf16.msra.mxu0 %v9130_v39  ;;  %5738 = vmatpush1.bf16.msra.mxu1 %v9133_v40  ;;  %v9231_v39 = vld [vmem:[%s12926_s1 + $0xec4] ss:$16 sps:$4 sm:$0xff]   ;;  %v9234_v40 = vld [vmem:[%s12926_s1 + $0xecc] ss:$16 sps:$4 sm:$0xff]  }
 0x19c   :  { %5180 = vmatprep.subr.bf16.mxu0 %v9138_v41  ;;  %5739 = vmatprep.subr.bf16.mxu1 %v9141_v42  ;;  %v9229_v41 = vld [vmem:[%s12926_s1 + $0xec0] ss:$16 sps:$4 sm:$0xff]   ;;  %v9232_v42 = vld [vmem:[%s12926_s1 + $0xec8] ss:$16 sps:$4 sm:$0xff]  }
 0x19f   :  { %5181 = vmatpush1.bf16.msra.mxu0 %v9136_v43  ;;  %5740 = vmatpush1.bf16.msra.mxu1 %v9139_v44  ;;  %v9237_v43 = vld [vmem:[%s12926_s1 + $0xee4] ss:$16 sps:$4 sm:$0xff]   ;;  %v9240_v44 = vld [vmem:[%s12926_s1 + $0xeec] ss:$16 sps:$4 sm:$0xff]  }
 0x1a0   :  { %5182 = vmatprep.subr.bf16.mxu0 %v9144_v45  ;;  %5741 = vmatprep.subr.bf16.mxu1 %v9147_v46  ;;  %v9235_v45 = vld [vmem:[%s12926_s1 + $0xee0] ss:$16 sps:$4 sm:$0xff]   ;;  %v9238_v46 = vld [vmem:[%s12926_s1 + $0xee8] ss:$16 sps:$4 sm:$0xff]  }
 0x1a3   :  { %5183 = vmatpush1.bf16.msra.mxu0 %v9142_v47  ;;  %5742 = vmatpush1.bf16.msra.mxu1 %v9145_v48  ;;  %v9243_v47 = vld [vmem:[%s12926_s1 + $0xf04] ss:$16 sps:$4 sm:$0xff]   ;;  %v9246_v48 = vld [vmem:[%s12926_s1 + $0xf0c] ss:$16 sps:$4 sm:$0xff]  }
 0x1a4   :  { %5184 = vmatprep.subr.bf16.mxu0 %v9150_v49  ;;  %5743 = vmatprep.subr.bf16.mxu1 %v9153_v50  ;;  %v9241_v49 = vld [vmem:[%s12926_s1 + $0xf00] ss:$16 sps:$4 sm:$0xff]   ;;  %v9244_v50 = vld [vmem:[%s12926_s1 + $0xf08] ss:$16 sps:$4 sm:$0xff]  }
 0x1a7   :  { %5185 = vmatpush1.bf16.msra.mxu0 %v9148_v51  ;;  %5744 = vmatpush1.bf16.msra.mxu1 %v9151_v52  ;;  %v9249_v51 = vld [vmem:[%s12926_s1 + $0xf24] ss:$16 sps:$4 sm:$0xff]   ;;  %v9252_v52 = vld [vmem:[%s12926_s1 + $0xf2c] ss:$16 sps:$4 sm:$0xff]  }
 0x1a8   :  { %5186 = vmatprep.subr.bf16.mxu0 %v9156_v53  ;;  %5745 = vmatprep.subr.bf16.mxu1 %v9159_v54  ;;  %v9247_v53 = vld [vmem:[%s12926_s1 + $0xf20] ss:$16 sps:$4 sm:$0xff]   ;;  %v9250_v54 = vld [vmem:[%s12926_s1 + $0xf28] ss:$16 sps:$4 sm:$0xff]  }
 0x1ab   :  { %5187 = vmatpush1.bf16.msra.mxu0 %v9154_v55  ;;  %5746 = vmatpush1.bf16.msra.mxu1 %v9157_v56  ;;  %v9255_v55 = vld [vmem:[%s12926_s1 + $0xf44] ss:$16 sps:$4 sm:$0xff]   ;;  %v9258_v56 = vld [vmem:[%s12926_s1 + $0xf4c] ss:$16 sps:$4 sm:$0xff]  }
 0x1ac   :  { %5188 = vmatprep.subr.bf16.mxu0 %v9162_v57  ;;  %5747 = vmatprep.subr.bf16.mxu1 %v9165_v58  ;;  %v9253_v57 = vld [vmem:[%s12926_s1 + $0xf40] ss:$16 sps:$4 sm:$0xff]   ;;  %v9256_v58 = vld [vmem:[%s12926_s1 + $0xf48] ss:$16 sps:$4 sm:$0xff]  }
 0x1af   :  { %5189 = vmatpush1.bf16.msra.mxu0 %v9160_v59  ;;  %5748 = vmatpush1.bf16.msra.mxu1 %v9163_v60  ;;  %v9261_v59 = vld [vmem:[%s12926_s1 + $0xf64] ss:$16 sps:$4 sm:$0xff]   ;;  %v9264_v60 = vld [vmem:[%s12926_s1 + $0xf6c] ss:$16 sps:$4 sm:$0xff]  }
 0x1b0   :  { %5190 = vmatprep.subr.bf16.mxu0 %v9168_v61  ;;  %5749 = vmatprep.subr.bf16.mxu1 %v9171_v62  ;;  %v9259_v61 = vld [vmem:[%s12926_s1 + $0xf60] ss:$16 sps:$4 sm:$0xff]   ;;  %v9262_v62 = vld [vmem:[%s12926_s1 + $0xf68] ss:$16 sps:$4 sm:$0xff]  }
 0x1b3   :  { %5191 = vmatpush1.bf16.msra.mxu0 %v9166_v63  ;;  %5750 = vmatpush1.bf16.msra.mxu1 %v9169_v0  ;;  %v9267_v63 = vld [vmem:[%s12926_s1 + $0xf84] ss:$16 sps:$4 sm:$0xff]   ;;  %v9270_v0 = vld [vmem:[%s12926_s1 + $0xf8c] ss:$16 sps:$4 sm:$0xff]  }
 0x1b4   :  { %5192 = vmatprep.subr.bf16.mxu0 %v9174_v1  ;;  %5751 = vmatprep.subr.bf16.mxu1 %v9177_v2  ;;  %v9265_v1 = vld [vmem:[%s12926_s1 + $0xf80] ss:$16 sps:$4 sm:$0xff]   ;;  %v9268_v2 = vld [vmem:[%s12926_s1 + $0xf88] ss:$16 sps:$4 sm:$0xff]  }
 0x1b7   :  { %5193 = vmatpush1.bf16.msra.mxu0 %v9172_v3  ;;  %5752 = vmatpush1.bf16.msra.mxu1 %v9175_v4  ;;  %v9273_v3 = vld [vmem:[%s12926_s1 + $0xfa4] ss:$16 sps:$4 sm:$0xff]   ;;  %v9276_v4 = vld [vmem:[%s12926_s1 + $0xfac] ss:$16 sps:$4 sm:$0xff]  }
 0x1b8   :  { %5194 = vmatprep.subr.bf16.mxu0 %v9180_v5  ;;  %5753 = vmatprep.subr.bf16.mxu1 %v9183_v6  ;;  %v9271_v5 = vld [vmem:[%s12926_s1 + $0xfa0] ss:$16 sps:$4 sm:$0xff]   ;;  %v9274_v6 = vld [vmem:[%s12926_s1 + $0xfa8] ss:$16 sps:$4 sm:$0xff]  }
 0x1bb   :  { %5195 = vmatpush1.bf16.msra.mxu0 %v9178_v7  ;;  %5754 = vmatpush1.bf16.msra.mxu1 %v9181_v8  ;;  %v9279_v7 = vld [vmem:[%s12926_s1 + $0xfc4] ss:$16 sps:$4 sm:$0xff]   ;;  %v9282_v8 = vld [vmem:[%s12926_s1 + $0xfcc] ss:$16 sps:$4 sm:$0xff]  }
 0x1bc   :  { %5196 = vmatprep.subr.bf16.mxu0 %v9186_v9  ;;  %5755 = vmatprep.subr.bf16.mxu1 %v9189_v10  ;;  %v9277_v9 = vld [vmem:[%s12926_s1 + $0xfc0] ss:$16 sps:$4 sm:$0xff]   ;;  %v9280_v10 = vld [vmem:[%s12926_s1 + $0xfc8] ss:$16 sps:$4 sm:$0xff]  }
 0x1bf   :  { %5197 = vmatpush1.bf16.msra.mxu0 %v9184_v11  ;;  %5756 = vmatpush1.bf16.msra.mxu1 %v9187_v12  ;;  %v9285_v11 = vld [vmem:[%s12926_s1 + $0xfe4] ss:$16 sps:$4 sm:$0xff]   ;;  %v9288_v12 = vld [vmem:[%s12926_s1 + $0xfec] ss:$16 sps:$4 sm:$0xff]  }
 0x1c0   :  { %5209 = vmatprep.subr.bf16.mxu0 %v9195_v14  ;;  %5768 = vmatprep.subr.bf16.mxu1 %v9198_v15  ;;  %v9286_v14 = vld [vmem:[%s12926_s1 + $0xfe8] ss:$16 sps:$4 sm:$0xff]   ;;  %v9294_v15 = vld [vmem:[%s12926_s1 + $0x1004] ss:$16 sps:$4 sm:$0xff]  }
 0x1c2   :  { %5199 = vmatmul.mubr.bf16.vlgmr.msra.gmra.mrb[0].mxu0 %v9190_v13  ;;  %5758 = vmatmul.mubr.bf16.vlgmr.msra.gmra.mrb[0].mxu1 %v9190_v13  ;;  %v9283_v13 = vld [vmem:[%s12926_s1 + $0xfe0] ss:$16 sps:$4 sm:$0xff]  }
 0x1c3   :  { %5210 = vmatpush1.bf16.msra.mxu0 %v9193_v16  ;;  %5769 = vmatpush1.bf16.msra.mxu1 %v9196_v17  ;;  %v9297_v16 = vld [vmem:[%s12926_s1 + $0x100c] ss:$16 sps:$4 sm:$0xff]  }
 0x1c4   :  { %5211 = vmatprep.subr.bf16.mxu0 %v9201_v18  ;;  %5770 = vmatprep.subr.bf16.mxu1 %v9204_v19  ;;  %v9289_v17 = vld [vmem:[%s12927_s0 + $0x38] ss:$100 sps:$4 sm:$0xff]   ;;  %v9292_v18 = vld [vmem:[%s12926_s1 + $0x1000] ss:$16 sps:$4 sm:$0xff]  }
 0x1c5   :  { %5241 = vmatprep.mubr.bf16.mxu0 %v9291_v20  ;;  %5800 = vmatprep.mubr.bf16.mxu1 %v9291_v20  ;;  %v9295_v19 = vld [vmem:[%s12926_s1 + $0x1008] ss:$16 sps:$4 sm:$0xff]   ;;  %v9300_v20 = vld [vmem:[%s12926_s1 + $0x1024] ss:$16 sps:$4 sm:$0xff]  }
 0x1c7   :  { %5212 = vmatpush1.bf16.msra.mxu0 %v9199_v21  ;;  %5771 = vmatpush1.bf16.msra.mxu1 %v9202_v22  ;;  %v9303_v21 = vld [vmem:[%s12926_s1 + $0x102c] ss:$16 sps:$4 sm:$0xff]   ;;  %v9390_v22 = vld [vmem:[%s12927_s0 + $0x44] ss:$100 sps:$4 sm:$0xff]  }
 0x1c8   :  { %5213 = vmatprep.subr.bf16.mxu0 %v9207_v23  ;;  %5772 = vmatprep.subr.bf16.mxu1 %v9210_v24  ;;  %v9298_v23 = vld [vmem:[%s12926_s1 + $0x1020] ss:$16 sps:$4 sm:$0xff]   ;;  %v9301_v24 = vld [vmem:[%s12926_s1 + $0x1028] ss:$16 sps:$4 sm:$0xff]  }
 0x1cb   :  { %5214 = vmatpush1.bf16.msra.mxu0 %v9205_v25  ;;  %5773 = vmatpush1.bf16.msra.mxu1 %v9208_v26  ;;  %v9306_v25 = vld [vmem:[%s12926_s1 + $0x1044] ss:$16 sps:$4 sm:$0xff]   ;;  %v9309_v26 = vld [vmem:[%s12926_s1 + $0x104c] ss:$16 sps:$4 sm:$0xff]  }
 0x1cc   :  { %5215 = vmatprep.subr.bf16.mxu0 %v9213_v27  ;;  %5774 = vmatprep.subr.bf16.mxu1 %v9216_v28  ;;  %v9304_v27 = vld [vmem:[%s12926_s1 + $0x1040] ss:$16 sps:$4 sm:$0xff]   ;;  %v9307_v28 = vld [vmem:[%s12926_s1 + $0x1048] ss:$16 sps:$4 sm:$0xff]  }
 0x1cf   :  { %5216 = vmatpush1.bf16.msra.mxu0 %v9211_v29  ;;  %5775 = vmatpush1.bf16.msra.mxu1 %v9214_v30  ;;  %v9312_v29 = vld [vmem:[%s12926_s1 + $0x1064] ss:$16 sps:$4 sm:$0xff]   ;;  %v9315_v30 = vld [vmem:[%s12926_s1 + $0x106c] ss:$16 sps:$4 sm:$0xff]  }
 0x1d0   :  { %5217 = vmatprep.subr.bf16.mxu0 %v9219_v31  ;;  %5776 = vmatprep.subr.bf16.mxu1 %v9222_v32  ;;  %v9310_v31 = vld [vmem:[%s12926_s1 + $0x1060] ss:$16 sps:$4 sm:$0xff]   ;;  %v9313_v32 = vld [vmem:[%s12926_s1 + $0x1068] ss:$16 sps:$4 sm:$0xff]  }
 0x1d3   :  { %5218 = vmatpush1.bf16.msra.mxu0 %v9217_v33  ;;  %5777 = vmatpush1.bf16.msra.mxu1 %v9220_v34  ;;  %v9318_v33 = vld [vmem:[%s12926_s1 + $0x1084] ss:$16 sps:$4 sm:$0xff]   ;;  %v9321_v34 = vld [vmem:[%s12926_s1 + $0x108c] ss:$16 sps:$4 sm:$0xff]  }
 0x1d4   :  { %5219 = vmatprep.subr.bf16.mxu0 %v9225_v35  ;;  %5778 = vmatprep.subr.bf16.mxu1 %v9228_v36  ;;  %v9316_v35 = vld [vmem:[%s12926_s1 + $0x1080] ss:$16 sps:$4 sm:$0xff]   ;;  %v9319_v36 = vld [vmem:[%s12926_s1 + $0x1088] ss:$16 sps:$4 sm:$0xff]  }
 0x1d7   :  { %5220 = vmatpush1.bf16.msra.mxu0 %v9223_v37  ;;  %5779 = vmatpush1.bf16.msra.mxu1 %v9226_v38  ;;  %v9324_v37 = vld [vmem:[%s12926_s1 + $0x10a4] ss:$16 sps:$4 sm:$0xff]   ;;  %v9327_v38 = vld [vmem:[%s12926_s1 + $0x10ac] ss:$16 sps:$4 sm:$0xff]  }
 0x1d8   :  { %5221 = vmatprep.subr.bf16.mxu0 %v9231_v39  ;;  %5780 = vmatprep.subr.bf16.mxu1 %v9234_v40  ;;  %v9322_v39 = vld [vmem:[%s12926_s1 + $0x10a0] ss:$16 sps:$4 sm:$0xff]   ;;  %v9325_v40 = vld [vmem:[%s12926_s1 + $0x10a8] ss:$16 sps:$4 sm:$0xff]  }
 0x1db   :  { %5222 = vmatpush1.bf16.msra.mxu0 %v9229_v41  ;;  %5781 = vmatpush1.bf16.msra.mxu1 %v9232_v42  ;;  %v9330_v41 = vld [vmem:[%s12926_s1 + $0x10c4] ss:$16 sps:$4 sm:$0xff]   ;;  %v9333_v42 = vld [vmem:[%s12926_s1 + $0x10cc] ss:$16 sps:$4 sm:$0xff]  }
 0x1dc   :  { %5223 = vmatprep.subr.bf16.mxu0 %v9237_v43  ;;  %5782 = vmatprep.subr.bf16.mxu1 %v9240_v44  ;;  %v9328_v43 = vld [vmem:[%s12926_s1 + $0x10c0] ss:$16 sps:$4 sm:$0xff]   ;;  %v9331_v44 = vld [vmem:[%s12926_s1 + $0x10c8] ss:$16 sps:$4 sm:$0xff]  }
 0x1df   :  { %5224 = vmatpush1.bf16.msra.mxu0 %v9235_v45  ;;  %5783 = vmatpush1.bf16.msra.mxu1 %v9238_v46  ;;  %v9336_v45 = vld [vmem:[%s12926_s1 + $0x10e4] ss:$16 sps:$4 sm:$0xff]   ;;  %v9339_v46 = vld [vmem:[%s12926_s1 + $0x10ec] ss:$16 sps:$4 sm:$0xff]  }
 0x1e0   :  { %5225 = vmatprep.subr.bf16.mxu0 %v9243_v47  ;;  %5784 = vmatprep.subr.bf16.mxu1 %v9246_v48  ;;  %v9334_v47 = vld [vmem:[%s12926_s1 + $0x10e0] ss:$16 sps:$4 sm:$0xff]   ;;  %v9337_v48 = vld [vmem:[%s12926_s1 + $0x10e8] ss:$16 sps:$4 sm:$0xff]  }
 0x1e3   :  { %5226 = vmatpush1.bf16.msra.mxu0 %v9241_v49  ;;  %5785 = vmatpush1.bf16.msra.mxu1 %v9244_v50  ;;  %v9342_v49 = vld [vmem:[%s12926_s1 + $0x1104] ss:$16 sps:$4 sm:$0xff]   ;;  %v9345_v50 = vld [vmem:[%s12926_s1 + $0x110c] ss:$16 sps:$4 sm:$0xff]  }
 0x1e4   :  { %5227 = vmatprep.subr.bf16.mxu0 %v9249_v51  ;;  %5786 = vmatprep.subr.bf16.mxu1 %v9252_v52  ;;  %v9340_v51 = vld [vmem:[%s12926_s1 + $0x1100] ss:$16 sps:$4 sm:$0xff]   ;;  %v9343_v52 = vld [vmem:[%s12926_s1 + $0x1108] ss:$16 sps:$4 sm:$0xff]  }
 0x1e7   :  { %5228 = vmatpush1.bf16.msra.mxu0 %v9247_v53  ;;  %5787 = vmatpush1.bf16.msra.mxu1 %v9250_v54  ;;  %v9348_v53 = vld [vmem:[%s12926_s1 + $0x1124] ss:$16 sps:$4 sm:$0xff]   ;;  %v9351_v54 = vld [vmem:[%s12926_s1 + $0x112c] ss:$16 sps:$4 sm:$0xff]  }
 0x1e8   :  { %5229 = vmatprep.subr.bf16.mxu0 %v9255_v55  ;;  %5788 = vmatprep.subr.bf16.mxu1 %v9258_v56  ;;  %v9346_v55 = vld [vmem:[%s12926_s1 + $0x1120] ss:$16 sps:$4 sm:$0xff]   ;;  %v9349_v56 = vld [vmem:[%s12926_s1 + $0x1128] ss:$16 sps:$4 sm:$0xff]  }
 0x1eb   :  { %5230 = vmatpush1.bf16.msra.mxu0 %v9253_v57  ;;  %5789 = vmatpush1.bf16.msra.mxu1 %v9256_v58  ;;  %v9354_v57 = vld [vmem:[%s12926_s1 + $0x1144] ss:$16 sps:$4 sm:$0xff]   ;;  %v9357_v58 = vld [vmem:[%s12926_s1 + $0x114c] ss:$16 sps:$4 sm:$0xff]  }
 0x1ec   :  { %5231 = vmatprep.subr.bf16.mxu0 %v9261_v59  ;;  %5790 = vmatprep.subr.bf16.mxu1 %v9264_v60  ;;  %v9352_v59 = vld [vmem:[%s12926_s1 + $0x1140] ss:$16 sps:$4 sm:$0xff]   ;;  %v9355_v60 = vld [vmem:[%s12926_s1 + $0x1148] ss:$16 sps:$4 sm:$0xff]  }
 0x1ef   :  { %5232 = vmatpush1.bf16.msra.mxu0 %v9259_v61  ;;  %5791 = vmatpush1.bf16.msra.mxu1 %v9262_v62  ;;  %v9360_v61 = vld [vmem:[%s12926_s1 + $0x1164] ss:$16 sps:$4 sm:$0xff]   ;;  %v9363_v62 = vld [vmem:[%s12926_s1 + $0x116c] ss:$16 sps:$4 sm:$0xff]  }
 0x1f0   :  { %5233 = vmatprep.subr.bf16.mxu0 %v9267_v63  ;;  %5792 = vmatprep.subr.bf16.mxu1 %v9270_v0  ;;  %v9358_v63 = vld [vmem:[%s12926_s1 + $0x1160] ss:$16 sps:$4 sm:$0xff]   ;;  %v9361_v0 = vld [vmem:[%s12926_s1 + $0x1168] ss:$16 sps:$4 sm:$0xff]  }
 0x1f3   :  { %5234 = vmatpush1.bf16.msra.mxu0 %v9265_v1  ;;  %5793 = vmatpush1.bf16.msra.mxu1 %v9268_v2  ;;  %v9366_v1 = vld [vmem:[%s12926_s1 + $0x1184] ss:$16 sps:$4 sm:$0xff]   ;;  %v9369_v2 = vld [vmem:[%s12926_s1 + $0x118c] ss:$16 sps:$4 sm:$0xff]  }
 0x1f4   :  { %5235 = vmatprep.subr.bf16.mxu0 %v9273_v3  ;;  %5794 = vmatprep.subr.bf16.mxu1 %v9276_v4  ;;  %v9364_v3 = vld [vmem:[%s12926_s1 + $0x1180] ss:$16 sps:$4 sm:$0xff]   ;;  %v9367_v4 = vld [vmem:[%s12926_s1 + $0x1188] ss:$16 sps:$4 sm:$0xff]  }
 0x1f7   :  { %5236 = vmatpush1.bf16.msra.mxu0 %v9271_v5  ;;  %5795 = vmatpush1.bf16.msra.mxu1 %v9274_v6  ;;  %v9372_v5 = vld [vmem:[%s12926_s1 + $0x11a4] ss:$16 sps:$4 sm:$0xff]   ;;  %v9375_v6 = vld [vmem:[%s12926_s1 + $0x11ac] ss:$16 sps:$4 sm:$0xff]  }
 0x1f8   :  { %5237 = vmatprep.subr.bf16.mxu0 %v9279_v7  ;;  %5796 = vmatprep.subr.bf16.mxu1 %v9282_v8  ;;  %v9370_v7 = vld [vmem:[%s12926_s1 + $0x11a0] ss:$16 sps:$4 sm:$0xff]   ;;  %v9373_v8 = vld [vmem:[%s12926_s1 + $0x11a8] ss:$16 sps:$4 sm:$0xff]  }
 0x1fb   :  { %5238 = vmatpush1.bf16.msra.mxu0 %v9277_v9  ;;  %5797 = vmatpush1.bf16.msra.mxu1 %v9280_v10  ;;  %v9378_v9 = vld [vmem:[%s12926_s1 + $0x11c4] ss:$16 sps:$4 sm:$0xff]   ;;  %v9381_v10 = vld [vmem:[%s12926_s1 + $0x11cc] ss:$16 sps:$4 sm:$0xff]  }
 0x1fc   :  { %5239 = vmatprep.subr.bf16.mxu0 %v9285_v11  ;;  %5798 = vmatprep.subr.bf16.mxu1 %v9288_v12  ;;  %v9376_v11 = vld [vmem:[%s12926_s1 + $0x11c0] ss:$16 sps:$4 sm:$0xff]   ;;  %v9379_v12 = vld [vmem:[%s12926_s1 + $0x11c8] ss:$16 sps:$4 sm:$0xff]  }
 0x1ff   :  { %5240 = vmatpush1.bf16.msra.mxu0 %v9283_v13  ;;  %5799 = vmatpush1.bf16.msra.mxu1 %v9286_v14  ;;  %v9384_v13 = vld [vmem:[%s12926_s1 + $0x11e4] ss:$16 sps:$4 sm:$0xff]   ;;  %v9387_v14 = vld [vmem:[%s12926_s1 + $0x11ec] ss:$16 sps:$4 sm:$0xff]  }
 0x200   :  { %5252 = vmatprep.subr.bf16.mxu0 %v9294_v15  ;;  %5811 = vmatprep.subr.bf16.mxu1 %v9297_v16  ;;  %v9382_v15 = vld [vmem:[%s12926_s1 + $0x11e0] ss:$16 sps:$4 sm:$0xff]   ;;  %v9385_v16 = vld [vmem:[%s12926_s1 + $0x11e8] ss:$16 sps:$4 sm:$0xff]  }
 0x202   :  { %5242 = vmatmul.mubr.bf16.vlgmr.msra.gmra.mrb[0].mxu0 %v9289_v17  ;;  %5801 = vmatmul.mubr.bf16.vlgmr.msra.gmra.mrb[0].mxu1 %v9289_v17  ;;  %v9393_v17 = vld [vmem:[%s12926_s1 + $0x1204] ss:$16 sps:$4 sm:$0xff]  }
 0x203   :  { %5253 = vmatpush1.bf16.msra.mxu0 %v9292_v18  ;;  %5812 = vmatpush1.bf16.msra.mxu1 %v9295_v19  ;;  %v9396_v18 = vld [vmem:[%s12926_s1 + $0x120c] ss:$16 sps:$4 sm:$0xff]   ;;  %v9388_v19 = vld [vmem:[%s12927_s0 + $0x40] ss:$100 sps:$4 sm:$0xff]  }
 0x204   :  { %5254 = vmatprep.subr.bf16.mxu0 %v9300_v20  ;;  %5813 = vmatprep.subr.bf16.mxu1 %v9303_v21  ;;  %v9391_v20 = vld [vmem:[%s12926_s1 + $0x1200] ss:$16 sps:$4 sm:$0xff]   ;;  %v9394_v21 = vld [vmem:[%s12926_s1 + $0x1208] ss:$16 sps:$4 sm:$0xff]  }
 0x205   :  { %5284 = vmatprep.mubr.bf16.mxu0 %v9390_v22  ;;  %5843 = vmatprep.mubr.bf16.mxu1 %v9390_v22  ;;  %v9399_v22 = vld [vmem:[%s12926_s1 + $0x1224] ss:$16 sps:$4 sm:$0xff]  }
 0x207   :  { %5255 = vmatpush1.bf16.msra.mxu0 %v9298_v23  ;;  %5814 = vmatpush1.bf16.msra.mxu1 %v9301_v24  ;;  %v9402_v23 = vld [vmem:[%s12926_s1 + $0x122c] ss:$16 sps:$4 sm:$0xff]  }
 0x208   :  { %5256 = vmatprep.subr.bf16.mxu0 %v9306_v25  ;;  %5815 = vmatprep.subr.bf16.mxu1 %v9309_v26  ;;  %v9489_v24 = vld [vmem:[%s12927_s0 + $0x4c] ss:$100 sps:$4 sm:$0xff]   ;;  %v9400_v26 = vld [vmem:[%s12926_s1 + $0x1228] ss:$16 sps:$4 sm:$0xff]  }
 0x209   :  { %v9397_v25 = vld [vmem:[%s12926_s1 + $0x1220] ss:$16 sps:$4 sm:$0xff]  }
 0x20b   :  { %5257 = vmatpush1.bf16.msra.mxu0 %v9304_v27  ;;  %5816 = vmatpush1.bf16.msra.mxu1 %v9307_v28  ;;  %v9405_v27 = vld [vmem:[%s12926_s1 + $0x1244] ss:$16 sps:$4 sm:$0xff]   ;;  %v9408_v28 = vld [vmem:[%s12926_s1 + $0x124c] ss:$16 sps:$4 sm:$0xff]  }
 0x20c   :  { %5258 = vmatprep.subr.bf16.mxu0 %v9312_v29  ;;  %5817 = vmatprep.subr.bf16.mxu1 %v9315_v30  ;;  %v9403_v29 = vld [vmem:[%s12926_s1 + $0x1240] ss:$16 sps:$4 sm:$0xff]   ;;  %v9406_v30 = vld [vmem:[%s12926_s1 + $0x1248] ss:$16 sps:$4 sm:$0xff]  }
 0x20f   :  { %5259 = vmatpush1.bf16.msra.mxu0 %v9310_v31  ;;  %5818 = vmatpush1.bf16.msra.mxu1 %v9313_v32  ;;  %v9411_v31 = vld [vmem:[%s12926_s1 + $0x1264] ss:$16 sps:$4 sm:$0xff]   ;;  %v9414_v32 = vld [vmem:[%s12926_s1 + $0x126c] ss:$16 sps:$4 sm:$0xff]  }
 0x210   :  { %5260 = vmatprep.subr.bf16.mxu0 %v9318_v33  ;;  %5819 = vmatprep.subr.bf16.mxu1 %v9321_v34  ;;  %v9409_v33 = vld [vmem:[%s12926_s1 + $0x1260] ss:$16 sps:$4 sm:$0xff]   ;;  %v9412_v34 = vld [vmem:[%s12926_s1 + $0x1268] ss:$16 sps:$4 sm:$0xff]  }
 0x213   :  { %5261 = vmatpush1.bf16.msra.mxu0 %v9316_v35  ;;  %5820 = vmatpush1.bf16.msra.mxu1 %v9319_v36  ;;  %v9417_v35 = vld [vmem:[%s12926_s1 + $0x1284] ss:$16 sps:$4 sm:$0xff]   ;;  %v9420_v36 = vld [vmem:[%s12926_s1 + $0x128c] ss:$16 sps:$4 sm:$0xff]  }
 0x214   :  { %5262 = vmatprep.subr.bf16.mxu0 %v9324_v37  ;;  %5821 = vmatprep.subr.bf16.mxu1 %v9327_v38  ;;  %v9415_v37 = vld [vmem:[%s12926_s1 + $0x1280] ss:$16 sps:$4 sm:$0xff]   ;;  %v9418_v38 = vld [vmem:[%s12926_s1 + $0x1288] ss:$16 sps:$4 sm:$0xff]  }
 0x217   :  { %5263 = vmatpush1.bf16.msra.mxu0 %v9322_v39  ;;  %5822 = vmatpush1.bf16.msra.mxu1 %v9325_v40  ;;  %v9423_v39 = vld [vmem:[%s12926_s1 + $0x12a4] ss:$16 sps:$4 sm:$0xff]   ;;  %v9426_v40 = vld [vmem:[%s12926_s1 + $0x12ac] ss:$16 sps:$4 sm:$0xff]  }
 0x218   :  { %5264 = vmatprep.subr.bf16.mxu0 %v9330_v41  ;;  %5823 = vmatprep.subr.bf16.mxu1 %v9333_v42  ;;  %v9421_v41 = vld [vmem:[%s12926_s1 + $0x12a0] ss:$16 sps:$4 sm:$0xff]   ;;  %v9424_v42 = vld [vmem:[%s12926_s1 + $0x12a8] ss:$16 sps:$4 sm:$0xff]  }
 0x21b   :  { %5265 = vmatpush1.bf16.msra.mxu0 %v9328_v43  ;;  %5824 = vmatpush1.bf16.msra.mxu1 %v9331_v44  ;;  %v9429_v43 = vld [vmem:[%s12926_s1 + $0x12c4] ss:$16 sps:$4 sm:$0xff]   ;;  %v9432_v44 = vld [vmem:[%s12926_s1 + $0x12cc] ss:$16 sps:$4 sm:$0xff]  }
 0x21c   :  { %5266 = vmatprep.subr.bf16.mxu0 %v9336_v45  ;;  %5825 = vmatprep.subr.bf16.mxu1 %v9339_v46  ;;  %v9427_v45 = vld [vmem:[%s12926_s1 + $0x12c0] ss:$16 sps:$4 sm:$0xff]   ;;  %v9430_v46 = vld [vmem:[%s12926_s1 + $0x12c8] ss:$16 sps:$4 sm:$0xff]  }
 0x21f   :  { %5267 = vmatpush1.bf16.msra.mxu0 %v9334_v47  ;;  %5826 = vmatpush1.bf16.msra.mxu1 %v9337_v48  ;;  %v9435_v47 = vld [vmem:[%s12926_s1 + $0x12e4] ss:$16 sps:$4 sm:$0xff]   ;;  %v9438_v48 = vld [vmem:[%s12926_s1 + $0x12ec] ss:$16 sps:$4 sm:$0xff]  }
 0x220   :  { %5268 = vmatprep.subr.bf16.mxu0 %v9342_v49  ;;  %5827 = vmatprep.subr.bf16.mxu1 %v9345_v50  ;;  %v9433_v49 = vld [vmem:[%s12926_s1 + $0x12e0] ss:$16 sps:$4 sm:$0xff]   ;;  %v9436_v50 = vld [vmem:[%s12926_s1 + $0x12e8] ss:$16 sps:$4 sm:$0xff]  }
 0x223   :  { %5269 = vmatpush1.bf16.msra.mxu0 %v9340_v51  ;;  %5828 = vmatpush1.bf16.msra.mxu1 %v9343_v52  ;;  %v9441_v51 = vld [vmem:[%s12926_s1 + $0x1304] ss:$16 sps:$4 sm:$0xff]   ;;  %v9444_v52 = vld [vmem:[%s12926_s1 + $0x130c] ss:$16 sps:$4 sm:$0xff]  }
 0x224   :  { %5270 = vmatprep.subr.bf16.mxu0 %v9348_v53  ;;  %5829 = vmatprep.subr.bf16.mxu1 %v9351_v54  ;;  %v9439_v53 = vld [vmem:[%s12926_s1 + $0x1300] ss:$16 sps:$4 sm:$0xff]   ;;  %v9442_v54 = vld [vmem:[%s12926_s1 + $0x1308] ss:$16 sps:$4 sm:$0xff]  }
 0x227   :  { %5271 = vmatpush1.bf16.msra.mxu0 %v9346_v55  ;;  %5830 = vmatpush1.bf16.msra.mxu1 %v9349_v56  ;;  %v9447_v55 = vld [vmem:[%s12926_s1 + $0x1324] ss:$16 sps:$4 sm:$0xff]   ;;  %v9450_v56 = vld [vmem:[%s12926_s1 + $0x132c] ss:$16 sps:$4 sm:$0xff]  }
 0x228   :  { %5272 = vmatprep.subr.bf16.mxu0 %v9354_v57  ;;  %5831 = vmatprep.subr.bf16.mxu1 %v9357_v58  ;;  %v9445_v57 = vld [vmem:[%s12926_s1 + $0x1320] ss:$16 sps:$4 sm:$0xff]   ;;  %v9448_v58 = vld [vmem:[%s12926_s1 + $0x1328] ss:$16 sps:$4 sm:$0xff]  }
 0x22b   :  { %5273 = vmatpush1.bf16.msra.mxu0 %v9352_v59  ;;  %5832 = vmatpush1.bf16.msra.mxu1 %v9355_v60  ;;  %v9453_v59 = vld [vmem:[%s12926_s1 + $0x1344] ss:$16 sps:$4 sm:$0xff]   ;;  %v9456_v60 = vld [vmem:[%s12926_s1 + $0x134c] ss:$16 sps:$4 sm:$0xff]  }
 0x22c   :  { %5274 = vmatprep.subr.bf16.mxu0 %v9360_v61  ;;  %5833 = vmatprep.subr.bf16.mxu1 %v9363_v62  ;;  %v9451_v61 = vld [vmem:[%s12926_s1 + $0x1340] ss:$16 sps:$4 sm:$0xff]   ;;  %v9454_v62 = vld [vmem:[%s12926_s1 + $0x1348] ss:$16 sps:$4 sm:$0xff]  }
 0x22f   :  { %5275 = vmatpush1.bf16.msra.mxu0 %v9358_v63  ;;  %5834 = vmatpush1.bf16.msra.mxu1 %v9361_v0  ;;  %v9459_v63 = vld [vmem:[%s12926_s1 + $0x1364] ss:$16 sps:$4 sm:$0xff]   ;;  %v9462_v0 = vld [vmem:[%s12926_s1 + $0x136c] ss:$16 sps:$4 sm:$0xff]  }
 0x230   :  { %5276 = vmatprep.subr.bf16.mxu0 %v9366_v1  ;;  %5835 = vmatprep.subr.bf16.mxu1 %v9369_v2  ;;  %v9457_v1 = vld [vmem:[%s12926_s1 + $0x1360] ss:$16 sps:$4 sm:$0xff]   ;;  %v9460_v2 = vld [vmem:[%s12926_s1 + $0x1368] ss:$16 sps:$4 sm:$0xff]  }
 0x233   :  { %5277 = vmatpush1.bf16.msra.mxu0 %v9364_v3  ;;  %5836 = vmatpush1.bf16.msra.mxu1 %v9367_v4  ;;  %v9465_v3 = vld [vmem:[%s12926_s1 + $0x1384] ss:$16 sps:$4 sm:$0xff]   ;;  %v9468_v4 = vld [vmem:[%s12926_s1 + $0x138c] ss:$16 sps:$4 sm:$0xff]  }
 0x234   :  { %5278 = vmatprep.subr.bf16.mxu0 %v9372_v5  ;;  %5837 = vmatprep.subr.bf16.mxu1 %v9375_v6  ;;  %v9463_v5 = vld [vmem:[%s12926_s1 + $0x1380] ss:$16 sps:$4 sm:$0xff]   ;;  %v9466_v6 = vld [vmem:[%s12926_s1 + $0x1388] ss:$16 sps:$4 sm:$0xff]  }
 0x237   :  { %5279 = vmatpush1.bf16.msra.mxu0 %v9370_v7  ;;  %5838 = vmatpush1.bf16.msra.mxu1 %v9373_v8  ;;  %v9471_v7 = vld [vmem:[%s12926_s1 + $0x13a4] ss:$16 sps:$4 sm:$0xff]   ;;  %v9474_v8 = vld [vmem:[%s12926_s1 + $0x13ac] ss:$16 sps:$4 sm:$0xff]  }
 0x238   :  { %5280 = vmatprep.subr.bf16.mxu0 %v9378_v9  ;;  %5839 = vmatprep.subr.bf16.mxu1 %v9381_v10  ;;  %v9469_v9 = vld [vmem:[%s12926_s1 + $0x13a0] ss:$16 sps:$4 sm:$0xff]   ;;  %v9472_v10 = vld [vmem:[%s12926_s1 + $0x13a8] ss:$16 sps:$4 sm:$0xff]  }
 0x23b   :  { %5281 = vmatpush1.bf16.msra.mxu0 %v9376_v11  ;;  %5840 = vmatpush1.bf16.msra.mxu1 %v9379_v12  ;;  %v9477_v11 = vld [vmem:[%s12926_s1 + $0x13c4] ss:$16 sps:$4 sm:$0xff]   ;;  %v9480_v12 = vld [vmem:[%s12926_s1 + $0x13cc] ss:$16 sps:$4 sm:$0xff]  }
 0x23c   :  { %5282 = vmatprep.subr.bf16.mxu0 %v9384_v13  ;;  %5841 = vmatprep.subr.bf16.mxu1 %v9387_v14  ;;  %v9475_v13 = vld [vmem:[%s12926_s1 + $0x13c0] ss:$16 sps:$4 sm:$0xff]   ;;  %v9478_v14 = vld [vmem:[%s12926_s1 + $0x13c8] ss:$16 sps:$4 sm:$0xff]  }
 0x23f   :  { %5283 = vmatpush1.bf16.msra.mxu0 %v9382_v15  ;;  %5842 = vmatpush1.bf16.msra.mxu1 %v9385_v16  ;;  %v9483_v15 = vld [vmem:[%s12926_s1 + $0x13e4] ss:$16 sps:$4 sm:$0xff]   ;;  %v9486_v16 = vld [vmem:[%s12926_s1 + $0x13ec] ss:$16 sps:$4 sm:$0xff]  }
 0x240   :  { %5295 = vmatprep.subr.bf16.mxu0 %v9393_v17  ;;  %5854 = vmatprep.subr.bf16.mxu1 %v9396_v18  ;;  %v9481_v17 = vld [vmem:[%s12926_s1 + $0x13e0] ss:$16 sps:$4 sm:$0xff]   ;;  %v9484_v18 = vld [vmem:[%s12926_s1 + $0x13e8] ss:$16 sps:$4 sm:$0xff]  }
 0x242   :  { %5285 = vmatmul.mubr.bf16.vlgmr.msra.gmra.mrb[0].mxu0 %v9388_v19  ;;  %5844 = vmatmul.mubr.bf16.vlgmr.msra.gmra.mrb[0].mxu1 %v9388_v19  ;;  %v9492_v19 = vld [vmem:[%s12926_s1 + $0x1404] ss:$16 sps:$4 sm:$0xff]  }
 0x243   :  { %5296 = vmatpush1.bf16.msra.mxu0 %v9391_v20  ;;  %5855 = vmatpush1.bf16.msra.mxu1 %v9394_v21  ;;  %v9495_v20 = vld [vmem:[%s12926_s1 + $0x140c] ss:$16 sps:$4 sm:$0xff]  }
 0x244   :  { %5297 = vmatprep.subr.bf16.mxu0 %v9399_v22  ;;  %5856 = vmatprep.subr.bf16.mxu1 %v9402_v23  ;;  %v9487_v21 = vld [vmem:[%s12927_s0 + $0x48] ss:$100 sps:$4 sm:$0xff]   ;;  %v9490_v22 = vld [vmem:[%s12926_s1 + $0x1400] ss:$16 sps:$4 sm:$0xff]  }
 0x245   :  { %5327 = vmatprep.mubr.bf16.mxu0 %v9489_v24  ;;  %5886 = vmatprep.mubr.bf16.mxu1 %v9489_v24  ;;  %v9493_v23 = vld [vmem:[%s12926_s1 + $0x1408] ss:$16 sps:$4 sm:$0xff]   ;;  %v9498_v24 = vld [vmem:[%s12926_s1 + $0x1424] ss:$16 sps:$4 sm:$0xff]  }
 0x247   :  { %5298 = vmatpush1.bf16.msra.mxu0 %v9397_v25  ;;  %5857 = vmatpush1.bf16.msra.mxu1 %v9400_v26  ;;  %v9501_v25 = vld [vmem:[%s12926_s1 + $0x142c] ss:$16 sps:$4 sm:$0xff]   ;;  %v9588_v26 = vld [vmem:[%s12927_s0 + $0x54] ss:$100 sps:$4 sm:$0xff]  }
 0x248   :  { %5299 = vmatprep.subr.bf16.mxu0 %v9405_v27  ;;  %5858 = vmatprep.subr.bf16.mxu1 %v9408_v28  ;;  %v9496_v27 = vld [vmem:[%s12926_s1 + $0x1420] ss:$16 sps:$4 sm:$0xff]   ;;  %v9499_v28 = vld [vmem:[%s12926_s1 + $0x1428] ss:$16 sps:$4 sm:$0xff]  }
 0x24b   :  { %5300 = vmatpush1.bf16.msra.mxu0 %v9403_v29  ;;  %5859 = vmatpush1.bf16.msra.mxu1 %v9406_v30  ;;  %v9504_v29 = vld [vmem:[%s12926_s1 + $0x1444] ss:$16 sps:$4 sm:$0xff]   ;;  %v9507_v30 = vld [vmem:[%s12926_s1 + $0x144c] ss:$16 sps:$4 sm:$0xff]  }
 0x24c   :  { %5301 = vmatprep.subr.bf16.mxu0 %v9411_v31  ;;  %5860 = vmatprep.subr.bf16.mxu1 %v9414_v32  ;;  %v9502_v31 = vld [vmem:[%s12926_s1 + $0x1440] ss:$16 sps:$4 sm:$0xff]   ;;  %v9505_v32 = vld [vmem:[%s12926_s1 + $0x1448] ss:$16 sps:$4 sm:$0xff]  }
 0x24f   :  { %5302 = vmatpush1.bf16.msra.mxu0 %v9409_v33  ;;  %5861 = vmatpush1.bf16.msra.mxu1 %v9412_v34  ;;  %v9510_v33 = vld [vmem:[%s12926_s1 + $0x1464] ss:$16 sps:$4 sm:$0xff]   ;;  %v9513_v34 = vld [vmem:[%s12926_s1 + $0x146c] ss:$16 sps:$4 sm:$0xff]  }
 0x250   :  { %5303 = vmatprep.subr.bf16.mxu0 %v9417_v35  ;;  %5862 = vmatprep.subr.bf16.mxu1 %v9420_v36  ;;  %v9508_v35 = vld [vmem:[%s12926_s1 + $0x1460] ss:$16 sps:$4 sm:$0xff]   ;;  %v9511_v36 = vld [vmem:[%s12926_s1 + $0x1468] ss:$16 sps:$4 sm:$0xff]  }
 0x253   :  { %5304 = vmatpush1.bf16.msra.mxu0 %v9415_v37  ;;  %5863 = vmatpush1.bf16.msra.mxu1 %v9418_v38  ;;  %v9516_v37 = vld [vmem:[%s12926_s1 + $0x1484] ss:$16 sps:$4 sm:$0xff]   ;;  %v9519_v38 = vld [vmem:[%s12926_s1 + $0x148c] ss:$16 sps:$4 sm:$0xff]  }
 0x254   :  { %5305 = vmatprep.subr.bf16.mxu0 %v9423_v39  ;;  %5864 = vmatprep.subr.bf16.mxu1 %v9426_v40  ;;  %v9514_v39 = vld [vmem:[%s12926_s1 + $0x1480] ss:$16 sps:$4 sm:$0xff]   ;;  %v9517_v40 = vld [vmem:[%s12926_s1 + $0x1488] ss:$16 sps:$4 sm:$0xff]  }
 0x257   :  { %5306 = vmatpush1.bf16.msra.mxu0 %v9421_v41  ;;  %5865 = vmatpush1.bf16.msra.mxu1 %v9424_v42  ;;  %v9522_v41 = vld [vmem:[%s12926_s1 + $0x14a4] ss:$16 sps:$4 sm:$0xff]   ;;  %v9525_v42 = vld [vmem:[%s12926_s1 + $0x14ac] ss:$16 sps:$4 sm:$0xff]  }
 0x258   :  { %5307 = vmatprep.subr.bf16.mxu0 %v9429_v43  ;;  %5866 = vmatprep.subr.bf16.mxu1 %v9432_v44  ;;  %v9520_v43 = vld [vmem:[%s12926_s1 + $0x14a0] ss:$16 sps:$4 sm:$0xff]   ;;  %v9523_v44 = vld [vmem:[%s12926_s1 + $0x14a8] ss:$16 sps:$4 sm:$0xff]  }
 0x25b   :  { %5308 = vmatpush1.bf16.msra.mxu0 %v9427_v45  ;;  %5867 = vmatpush1.bf16.msra.mxu1 %v9430_v46  ;;  %v9528_v45 = vld [vmem:[%s12926_s1 + $0x14c4] ss:$16 sps:$4 sm:$0xff]   ;;  %v9531_v46 = vld [vmem:[%s12926_s1 + $0x14cc] ss:$16 sps:$4 sm:$0xff]  }
 0x25c   :  { %5309 = vmatprep.subr.bf16.mxu0 %v9435_v47  ;;  %5868 = vmatprep.subr.bf16.mxu1 %v9438_v48  ;;  %v9526_v47 = vld [vmem:[%s12926_s1 + $0x14c0] ss:$16 sps:$4 sm:$0xff]   ;;  %v9529_v48 = vld [vmem:[%s12926_s1 + $0x14c8] ss:$16 sps:$4 sm:$0xff]  }
 0x25f   :  { %5310 = vmatpush1.bf16.msra.mxu0 %v9433_v49  ;;  %5869 = vmatpush1.bf16.msra.mxu1 %v9436_v50  ;;  %v9534_v49 = vld [vmem:[%s12926_s1 + $0x14e4] ss:$16 sps:$4 sm:$0xff]   ;;  %v9537_v50 = vld [vmem:[%s12926_s1 + $0x14ec] ss:$16 sps:$4 sm:$0xff]  }
 0x260   :  { %5311 = vmatprep.subr.bf16.mxu0 %v9441_v51  ;;  %5870 = vmatprep.subr.bf16.mxu1 %v9444_v52  ;;  %v9532_v51 = vld [vmem:[%s12926_s1 + $0x14e0] ss:$16 sps:$4 sm:$0xff]   ;;  %v9535_v52 = vld [vmem:[%s12926_s1 + $0x14e8] ss:$16 sps:$4 sm:$0xff]  }
 0x263   :  { %5312 = vmatpush1.bf16.msra.mxu0 %v9439_v53  ;;  %5871 = vmatpush1.bf16.msra.mxu1 %v9442_v54  ;;  %v9540_v53 = vld [vmem:[%s12926_s1 + $0x1504] ss:$16 sps:$4 sm:$0xff]   ;;  %v9543_v54 = vld [vmem:[%s12926_s1 + $0x150c] ss:$16 sps:$4 sm:$0xff]  }
 0x264   :  { %5313 = vmatprep.subr.bf16.mxu0 %v9447_v55  ;;  %5872 = vmatprep.subr.bf16.mxu1 %v9450_v56  ;;  %v9538_v55 = vld [vmem:[%s12926_s1 + $0x1500] ss:$16 sps:$4 sm:$0xff]   ;;  %v9541_v56 = vld [vmem:[%s12926_s1 + $0x1508] ss:$16 sps:$4 sm:$0xff]  }
 0x267   :  { %5314 = vmatpush1.bf16.msra.mxu0 %v9445_v57  ;;  %5873 = vmatpush1.bf16.msra.mxu1 %v9448_v58  ;;  %v9546_v57 = vld [vmem:[%s12926_s1 + $0x1524] ss:$16 sps:$4 sm:$0xff]   ;;  %v9549_v58 = vld [vmem:[%s12926_s1 + $0x152c] ss:$16 sps:$4 sm:$0xff]  }
 0x268   :  { %5315 = vmatprep.subr.bf16.mxu0 %v9453_v59  ;;  %5874 = vmatprep.subr.bf16.mxu1 %v9456_v60  ;;  %v9544_v59 = vld [vmem:[%s12926_s1 + $0x1520] ss:$16 sps:$4 sm:$0xff]   ;;  %v9547_v60 = vld [vmem:[%s12926_s1 + $0x1528] ss:$16 sps:$4 sm:$0xff]  }
 0x26b   :  { %5316 = vmatpush1.bf16.msra.mxu0 %v9451_v61  ;;  %5875 = vmatpush1.bf16.msra.mxu1 %v9454_v62  ;;  %v9552_v61 = vld [vmem:[%s12926_s1 + $0x1544] ss:$16 sps:$4 sm:$0xff]   ;;  %v9555_v62 = vld [vmem:[%s12926_s1 + $0x154c] ss:$16 sps:$4 sm:$0xff]  }
 0x26c   :  { %5317 = vmatprep.subr.bf16.mxu0 %v9459_v63  ;;  %5876 = vmatprep.subr.bf16.mxu1 %v9462_v0  ;;  %v9550_v63 = vld [vmem:[%s12926_s1 + $0x1540] ss:$16 sps:$4 sm:$0xff]   ;;  %v9553_v0 = vld [vmem:[%s12926_s1 + $0x1548] ss:$16 sps:$4 sm:$0xff]  }
 0x26f   :  { %5318 = vmatpush1.bf16.msra.mxu0 %v9457_v1  ;;  %5877 = vmatpush1.bf16.msra.mxu1 %v9460_v2  ;;  %v9558_v1 = vld [vmem:[%s12926_s1 + $0x1564] ss:$16 sps:$4 sm:$0xff]   ;;  %v9561_v2 = vld [vmem:[%s12926_s1 + $0x156c] ss:$16 sps:$4 sm:$0xff]  }
 0x270   :  { %5319 = vmatprep.subr.bf16.mxu0 %v9465_v3  ;;  %5878 = vmatprep.subr.bf16.mxu1 %v9468_v4  ;;  %v9556_v3 = vld [vmem:[%s12926_s1 + $0x1560] ss:$16 sps:$4 sm:$0xff]   ;;  %v9559_v4 = vld [vmem:[%s12926_s1 + $0x1568] ss:$16 sps:$4 sm:$0xff]  }
 0x273   :  { %5320 = vmatpush1.bf16.msra.mxu0 %v9463_v5  ;;  %5879 = vmatpush1.bf16.msra.mxu1 %v9466_v6  ;;  %v9564_v5 = vld [vmem:[%s12926_s1 + $0x1584] ss:$16 sps:$4 sm:$0xff]   ;;  %v9567_v6 = vld [vmem:[%s12926_s1 + $0x158c] ss:$16 sps:$4 sm:$0xff]  }
 0x274   :  { %5321 = vmatprep.subr.bf16.mxu0 %v9471_v7  ;;  %5880 = vmatprep.subr.bf16.mxu1 %v9474_v8  ;;  %v9562_v7 = vld [vmem:[%s12926_s1 + $0x1580] ss:$16 sps:$4 sm:$0xff]   ;;  %v9565_v8 = vld [vmem:[%s12926_s1 + $0x1588] ss:$16 sps:$4 sm:$0xff]  }
 0x277   :  { %5322 = vmatpush1.bf16.msra.mxu0 %v9469_v9  ;;  %5881 = vmatpush1.bf16.msra.mxu1 %v9472_v10  ;;  %v9570_v9 = vld [vmem:[%s12926_s1 + $0x15a4] ss:$16 sps:$4 sm:$0xff]   ;;  %v9573_v10 = vld [vmem:[%s12926_s1 + $0x15ac] ss:$16 sps:$4 sm:$0xff]  }
 0x278   :  { %5323 = vmatprep.subr.bf16.mxu0 %v9477_v11  ;;  %5882 = vmatprep.subr.bf16.mxu1 %v9480_v12  ;;  %v9568_v11 = vld [vmem:[%s12926_s1 + $0x15a0] ss:$16 sps:$4 sm:$0xff]   ;;  %v9571_v12 = vld [vmem:[%s12926_s1 + $0x15a8] ss:$16 sps:$4 sm:$0xff]  }
 0x27b   :  { %5324 = vmatpush1.bf16.msra.mxu0 %v9475_v13  ;;  %5883 = vmatpush1.bf16.msra.mxu1 %v9478_v14  ;;  %v9576_v13 = vld [vmem:[%s12926_s1 + $0x15c4] ss:$16 sps:$4 sm:$0xff]   ;;  %v9579_v14 = vld [vmem:[%s12926_s1 + $0x15cc] ss:$16 sps:$4 sm:$0xff]  }
 0x27c   :  { %5325 = vmatprep.subr.bf16.mxu0 %v9483_v15  ;;  %5884 = vmatprep.subr.bf16.mxu1 %v9486_v16  ;;  %v9574_v15 = vld [vmem:[%s12926_s1 + $0x15c0] ss:$16 sps:$4 sm:$0xff]   ;;  %v9577_v16 = vld [vmem:[%s12926_s1 + $0x15c8] ss:$16 sps:$4 sm:$0xff]  }
 0x27f   :  { %5326 = vmatpush1.bf16.msra.mxu0 %v9481_v17  ;;  %5885 = vmatpush1.bf16.msra.mxu1 %v9484_v18  ;;  %v9582_v17 = vld [vmem:[%s12926_s1 + $0x15e4] ss:$16 sps:$4 sm:$0xff]   ;;  %v9585_v18 = vld [vmem:[%s12926_s1 + $0x15ec] ss:$16 sps:$4 sm:$0xff]  }
 0x280   :  { %5338 = vmatprep.subr.bf16.mxu0 %v9492_v19  ;;  %5897 = vmatprep.subr.bf16.mxu1 %v9495_v20  ;;  %v9580_v19 = vld [vmem:[%s12926_s1 + $0x15e0] ss:$16 sps:$4 sm:$0xff]   ;;  %v9583_v20 = vld [vmem:[%s12926_s1 + $0x15e8] ss:$16 sps:$4 sm:$0xff]  }
 0x282   :  { %5328 = vmatmul.mubr.bf16.vlgmr.msra.gmra.mrb[0].mxu0 %v9487_v21  ;;  %5887 = vmatmul.mubr.bf16.vlgmr.msra.gmra.mrb[0].mxu1 %v9487_v21  ;;  %v9586_v21 = vld [vmem:[%s12927_s0 + $0x50] ss:$100 sps:$4 sm:$0xff]  }
 0x283   :  { %5339 = vmatpush1.bf16.msra.mxu0 %v9490_v22  ;;  %5898 = vmatpush1.bf16.msra.mxu1 %v9493_v23  ;;  %v9591_v22 = vld [vmem:[%s12926_s1 + $0x1604] ss:$16 sps:$4 sm:$0xff]   ;;  %v9594_v23 = vld [vmem:[%s12926_s1 + $0x160c] ss:$16 sps:$4 sm:$0xff]  }
 0x284   :  { %5340 = vmatprep.subr.bf16.mxu0 %v9498_v24  ;;  %5899 = vmatprep.subr.bf16.mxu1 %v9501_v25  ;;  %v9589_v24 = vld [vmem:[%s12926_s1 + $0x1600] ss:$16 sps:$4 sm:$0xff]   ;;  %v9592_v25 = vld [vmem:[%s12926_s1 + $0x1608] ss:$16 sps:$4 sm:$0xff]  }
 0x285   :  { %5370 = vmatprep.mubr.bf16.mxu0 %v9588_v26  ;;  %5929 = vmatprep.mubr.bf16.mxu1 %v9588_v26  ;;  %v9597_v26 = vld [vmem:[%s12926_s1 + $0x1624] ss:$16 sps:$4 sm:$0xff]  }
 0x287   :  { %5341 = vmatpush1.bf16.msra.mxu0 %v9496_v27  ;;  %5900 = vmatpush1.bf16.msra.mxu1 %v9499_v28  ;;  %v9600_v27 = vld [vmem:[%s12926_s1 + $0x162c] ss:$16 sps:$4 sm:$0xff]  }
 0x288   :  { %5342 = vmatprep.subr.bf16.mxu0 %v9504_v29  ;;  %5901 = vmatprep.subr.bf16.mxu1 %v9507_v30  ;;  %v9687_v28 = vld [vmem:[%s12927_s0 + $0x5c] ss:$100 sps:$4 sm:$0xff]   ;;  %v9598_v30 = vld [vmem:[%s12926_s1 + $0x1628] ss:$16 sps:$4 sm:$0xff]  }
 0x289   :  { %v9595_v29 = vld [vmem:[%s12926_s1 + $0x1620] ss:$16 sps:$4 sm:$0xff]  }
 0x28b   :  { %5343 = vmatpush1.bf16.msra.mxu0 %v9502_v31  ;;  %5902 = vmatpush1.bf16.msra.mxu1 %v9505_v32  ;;  %v9603_v31 = vld [vmem:[%s12926_s1 + $0x1644] ss:$16 sps:$4 sm:$0xff]   ;;  %v9606_v32 = vld [vmem:[%s12926_s1 + $0x164c] ss:$16 sps:$4 sm:$0xff]  }
 0x28c   :  { %5344 = vmatprep.subr.bf16.mxu0 %v9510_v33  ;;  %5903 = vmatprep.subr.bf16.mxu1 %v9513_v34  ;;  %v9601_v33 = vld [vmem:[%s12926_s1 + $0x1640] ss:$16 sps:$4 sm:$0xff]   ;;  %v9604_v34 = vld [vmem:[%s12926_s1 + $0x1648] ss:$16 sps:$4 sm:$0xff]  }
 0x28f   :  { %5345 = vmatpush1.bf16.msra.mxu0 %v9508_v35  ;;  %5904 = vmatpush1.bf16.msra.mxu1 %v9511_v36  ;;  %v9609_v35 = vld [vmem:[%s12926_s1 + $0x1664] ss:$16 sps:$4 sm:$0xff]   ;;  %v9612_v36 = vld [vmem:[%s12926_s1 + $0x166c] ss:$16 sps:$4 sm:$0xff]  }
 0x290   :  { %5346 = vmatprep.subr.bf16.mxu0 %v9516_v37  ;;  %5905 = vmatprep.subr.bf16.mxu1 %v9519_v38  ;;  %v9607_v37 = vld [vmem:[%s12926_s1 + $0x1660] ss:$16 sps:$4 sm:$0xff]   ;;  %v9610_v38 = vld [vmem:[%s12926_s1 + $0x1668] ss:$16 sps:$4 sm:$0xff]  }
 0x293   :  { %5347 = vmatpush1.bf16.msra.mxu0 %v9514_v39  ;;  %5906 = vmatpush1.bf16.msra.mxu1 %v9517_v40  ;;  %v9615_v39 = vld [vmem:[%s12926_s1 + $0x1684] ss:$16 sps:$4 sm:$0xff]   ;;  %v9618_v40 = vld [vmem:[%s12926_s1 + $0x168c] ss:$16 sps:$4 sm:$0xff]  }
 0x294   :  { %5348 = vmatprep.subr.bf16.mxu0 %v9522_v41  ;;  %5907 = vmatprep.subr.bf16.mxu1 %v9525_v42  ;;  %v9613_v41 = vld [vmem:[%s12926_s1 + $0x1680] ss:$16 sps:$4 sm:$0xff]   ;;  %v9616_v42 = vld [vmem:[%s12926_s1 + $0x1688] ss:$16 sps:$4 sm:$0xff]  }
 0x297   :  { %5349 = vmatpush1.bf16.msra.mxu0 %v9520_v43  ;;  %5908 = vmatpush1.bf16.msra.mxu1 %v9523_v44  ;;  %v9621_v43 = vld [vmem:[%s12926_s1 + $0x16a4] ss:$16 sps:$4 sm:$0xff]   ;;  %v9624_v44 = vld [vmem:[%s12926_s1 + $0x16ac] ss:$16 sps:$4 sm:$0xff]  }
 0x298   :  { %5350 = vmatprep.subr.bf16.mxu0 %v9528_v45  ;;  %5909 = vmatprep.subr.bf16.mxu1 %v9531_v46  ;;  %v9619_v45 = vld [vmem:[%s12926_s1 + $0x16a0] ss:$16 sps:$4 sm:$0xff]   ;;  %v9622_v46 = vld [vmem:[%s12926_s1 + $0x16a8] ss:$16 sps:$4 sm:$0xff]  }
 0x29b   :  { %5351 = vmatpush1.bf16.msra.mxu0 %v9526_v47  ;;  %5910 = vmatpush1.bf16.msra.mxu1 %v9529_v48  ;;  %v9627_v47 = vld [vmem:[%s12926_s1 + $0x16c4] ss:$16 sps:$4 sm:$0xff]   ;;  %v9630_v48 = vld [vmem:[%s12926_s1 + $0x16cc] ss:$16 sps:$4 sm:$0xff]  }
 0x29c   :  { %5352 = vmatprep.subr.bf16.mxu0 %v9534_v49  ;;  %5911 = vmatprep.subr.bf16.mxu1 %v9537_v50  ;;  %v9625_v49 = vld [vmem:[%s12926_s1 + $0x16c0] ss:$16 sps:$4 sm:$0xff]   ;;  %v9628_v50 = vld [vmem:[%s12926_s1 + $0x16c8] ss:$16 sps:$4 sm:$0xff]  }
 0x29f   :  { %5353 = vmatpush1.bf16.msra.mxu0 %v9532_v51  ;;  %5912 = vmatpush1.bf16.msra.mxu1 %v9535_v52  ;;  %v9633_v51 = vld [vmem:[%s12926_s1 + $0x16e4] ss:$16 sps:$4 sm:$0xff]   ;;  %v9636_v52 = vld [vmem:[%s12926_s1 + $0x16ec] ss:$16 sps:$4 sm:$0xff]  }
 0x2a0   :  { %5354 = vmatprep.subr.bf16.mxu0 %v9540_v53  ;;  %5913 = vmatprep.subr.bf16.mxu1 %v9543_v54  ;;  %v9631_v53 = vld [vmem:[%s12926_s1 + $0x16e0] ss:$16 sps:$4 sm:$0xff]   ;;  %v9634_v54 = vld [vmem:[%s12926_s1 + $0x16e8] ss:$16 sps:$4 sm:$0xff]  }
 0x2a3   :  { %5355 = vmatpush1.bf16.msra.mxu0 %v9538_v55  ;;  %5914 = vmatpush1.bf16.msra.mxu1 %v9541_v56  ;;  %v9639_v55 = vld [vmem:[%s12926_s1 + $0x1704] ss:$16 sps:$4 sm:$0xff]   ;;  %v9642_v56 = vld [vmem:[%s12926_s1 + $0x170c] ss:$16 sps:$4 sm:$0xff]  }
 0x2a4   :  { %5356 = vmatprep.subr.bf16.mxu0 %v9546_v57  ;;  %5915 = vmatprep.subr.bf16.mxu1 %v9549_v58  ;;  %v9637_v57 = vld [vmem:[%s12926_s1 + $0x1700] ss:$16 sps:$4 sm:$0xff]   ;;  %v9640_v58 = vld [vmem:[%s12926_s1 + $0x1708] ss:$16 sps:$4 sm:$0xff]  }
 0x2a7   :  { %5357 = vmatpush1.bf16.msra.mxu0 %v9544_v59  ;;  %5916 = vmatpush1.bf16.msra.mxu1 %v9547_v60  ;;  %v9645_v59 = vld [vmem:[%s12926_s1 + $0x1724] ss:$16 sps:$4 sm:$0xff]   ;;  %v9648_v60 = vld [vmem:[%s12926_s1 + $0x172c] ss:$16 sps:$4 sm:$0xff]  }
 0x2a8   :  { %5358 = vmatprep.subr.bf16.mxu0 %v9552_v61  ;;  %5917 = vmatprep.subr.bf16.mxu1 %v9555_v62  ;;  %v9643_v61 = vld [vmem:[%s12926_s1 + $0x1720] ss:$16 sps:$4 sm:$0xff]   ;;  %v9646_v62 = vld [vmem:[%s12926_s1 + $0x1728] ss:$16 sps:$4 sm:$0xff]  }
 0x2ab   :  { %5359 = vmatpush1.bf16.msra.mxu0 %v9550_v63  ;;  %5918 = vmatpush1.bf16.msra.mxu1 %v9553_v0  ;;  %v9651_v63 = vld [vmem:[%s12926_s1 + $0x1744] ss:$16 sps:$4 sm:$0xff]   ;;  %v9654_v0 = vld [vmem:[%s12926_s1 + $0x174c] ss:$16 sps:$4 sm:$0xff]  }
 0x2ac   :  { %5360 = vmatprep.subr.bf16.mxu0 %v9558_v1  ;;  %5919 = vmatprep.subr.bf16.mxu1 %v9561_v2  ;;  %v9649_v1 = vld [vmem:[%s12926_s1 + $0x1740] ss:$16 sps:$4 sm:$0xff]   ;;  %v9652_v2 = vld [vmem:[%s12926_s1 + $0x1748] ss:$16 sps:$4 sm:$0xff]  }
 0x2af   :  { %5361 = vmatpush1.bf16.msra.mxu0 %v9556_v3  ;;  %5920 = vmatpush1.bf16.msra.mxu1 %v9559_v4  ;;  %v9657_v3 = vld [vmem:[%s12926_s1 + $0x1764] ss:$16 sps:$4 sm:$0xff]   ;;  %v9660_v4 = vld [vmem:[%s12926_s1 + $0x176c] ss:$16 sps:$4 sm:$0xff]  }
 0x2b0   :  { %5362 = vmatprep.subr.bf16.mxu0 %v9564_v5  ;;  %5921 = vmatprep.subr.bf16.mxu1 %v9567_v6  ;;  %v9655_v5 = vld [vmem:[%s12926_s1 + $0x1760] ss:$16 sps:$4 sm:$0xff]   ;;  %v9658_v6 = vld [vmem:[%s12926_s1 + $0x1768] ss:$16 sps:$4 sm:$0xff]  }
 0x2b3   :  { %5363 = vmatpush1.bf16.msra.mxu0 %v9562_v7  ;;  %5922 = vmatpush1.bf16.msra.mxu1 %v9565_v8  ;;  %v9663_v7 = vld [vmem:[%s12926_s1 + $0x1784] ss:$16 sps:$4 sm:$0xff]   ;;  %v9666_v8 = vld [vmem:[%s12926_s1 + $0x178c] ss:$16 sps:$4 sm:$0xff]  }
 0x2b4   :  { %5364 = vmatprep.subr.bf16.mxu0 %v9570_v9  ;;  %5923 = vmatprep.subr.bf16.mxu1 %v9573_v10  ;;  %v9661_v9 = vld [vmem:[%s12926_s1 + $0x1780] ss:$16 sps:$4 sm:$0xff]   ;;  %v9664_v10 = vld [vmem:[%s12926_s1 + $0x1788] ss:$16 sps:$4 sm:$0xff]  }
 0x2b7   :  { %5365 = vmatpush1.bf16.msra.mxu0 %v9568_v11  ;;  %5924 = vmatpush1.bf16.msra.mxu1 %v9571_v12  ;;  %v9669_v11 = vld [vmem:[%s12926_s1 + $0x17a4] ss:$16 sps:$4 sm:$0xff]   ;;  %v9672_v12 = vld [vmem:[%s12926_s1 + $0x17ac] ss:$16 sps:$4 sm:$0xff]  }
 0x2b8   :  { %5366 = vmatprep.subr.bf16.mxu0 %v9576_v13  ;;  %5925 = vmatprep.subr.bf16.mxu1 %v9579_v14  ;;  %v9667_v13 = vld [vmem:[%s12926_s1 + $0x17a0] ss:$16 sps:$4 sm:$0xff]   ;;  %v9670_v14 = vld [vmem:[%s12926_s1 + $0x17a8] ss:$16 sps:$4 sm:$0xff]  }
 0x2bb   :  { %5367 = vmatpush1.bf16.msra.mxu0 %v9574_v15  ;;  %5926 = vmatpush1.bf16.msra.mxu1 %v9577_v16  ;;  %v9675_v15 = vld [vmem:[%s12926_s1 + $0x17c4] ss:$16 sps:$4 sm:$0xff]   ;;  %v9678_v16 = vld [vmem:[%s12926_s1 + $0x17cc] ss:$16 sps:$4 sm:$0xff]  }
 0x2bc   :  { %5368 = vmatprep.subr.bf16.mxu0 %v9582_v17  ;;  %5927 = vmatprep.subr.bf16.mxu1 %v9585_v18  ;;  %v9673_v17 = vld [vmem:[%s12926_s1 + $0x17c0] ss:$16 sps:$4 sm:$0xff]   ;;  %v9676_v18 = vld [vmem:[%s12926_s1 + $0x17c8] ss:$16 sps:$4 sm:$0xff]  }
 0x2bf   :  { %5369 = vmatpush1.bf16.msra.mxu0 %v9580_v19  ;;  %5928 = vmatpush1.bf16.msra.mxu1 %v9583_v20  ;;  %v9681_v19 = vld [vmem:[%s12926_s1 + $0x17e4] ss:$16 sps:$4 sm:$0xff]   ;;  %v9684_v20 = vld [vmem:[%s12926_s1 + $0x17ec] ss:$16 sps:$4 sm:$0xff]  }
 0x2c0   :  { %5381 = vmatprep.subr.bf16.mxu0 %v9591_v22  ;;  %5940 = vmatprep.subr.bf16.mxu1 %v9594_v23  ;;  %v9682_v22 = vld [vmem:[%s12926_s1 + $0x17e8] ss:$16 sps:$4 sm:$0xff]   ;;  %v9690_v23 = vld [vmem:[%s12926_s1 + $0x1804] ss:$16 sps:$4 sm:$0xff]  }
 0x2c2   :  { %5371 = vmatmul.mubr.bf16.vlgmr.msra.gmra.mrb[0].mxu0 %v9586_v21  ;;  %5930 = vmatmul.mubr.bf16.vlgmr.msra.gmra.mrb[0].mxu1 %v9586_v21  ;;  %v9679_v21 = vld [vmem:[%s12926_s1 + $0x17e0] ss:$16 sps:$4 sm:$0xff]  }
 0x2c3   :  { %5382 = vmatpush1.bf16.msra.mxu0 %v9589_v24  ;;  %5941 = vmatpush1.bf16.msra.mxu1 %v9592_v25  ;;  %v9693_v24 = vld [vmem:[%s12926_s1 + $0x180c] ss:$16 sps:$4 sm:$0xff]  }
 0x2c4   :  { %5383 = vmatprep.subr.bf16.mxu0 %v9597_v26  ;;  %5942 = vmatprep.subr.bf16.mxu1 %v9600_v27  ;;  %v9685_v25 = vld [vmem:[%s12927_s0 + $0x58] ss:$100 sps:$4 sm:$0xff]   ;;  %v9688_v26 = vld [vmem:[%s12926_s1 + $0x1800] ss:$16 sps:$4 sm:$0xff]  }
 0x2c5   :  { %5413 = vmatprep.mubr.bf16.mxu0 %v9687_v28  ;;  %5972 = vmatprep.mubr.bf16.mxu1 %v9687_v28  ;;  %v9691_v27 = vld [vmem:[%s12926_s1 + $0x1808] ss:$16 sps:$4 sm:$0xff]   ;;  %v9696_v28 = vld [vmem:[%s12926_s1 + $0x1824] ss:$16 sps:$4 sm:$0xff]  }
 0x2c7   :  { %5384 = vmatpush1.bf16.msra.mxu0 %v9595_v29  ;;  %5943 = vmatpush1.bf16.msra.mxu1 %v9598_v30  ;;  %v9699_v29 = vld [vmem:[%s12926_s1 + $0x182c] ss:$16 sps:$4 sm:$0xff]   ;;  %v9694_v30 = vld [vmem:[%s12926_s1 + $0x1820] ss:$16 sps:$4 sm:$0xff]  }
 0x2c8   :  { %5385 = vmatprep.subr.bf16.mxu0 %v9603_v31  ;;  %5944 = vmatprep.subr.bf16.mxu1 %v9606_v32  ;;  %v9697_v31 = vld [vmem:[%s12926_s1 + $0x1828] ss:$16 sps:$4 sm:$0xff]   ;;  %v9702_v32 = vld [vmem:[%s12926_s1 + $0x1844] ss:$16 sps:$4 sm:$0xff]  }
 0x2cb   :  { %5386 = vmatpush1.bf16.msra.mxu0 %v9601_v33  ;;  %5945 = vmatpush1.bf16.msra.mxu1 %v9604_v34  ;;  %v9705_v33 = vld [vmem:[%s12926_s1 + $0x184c] ss:$16 sps:$4 sm:$0xff]   ;;  %v9937_v34 = vmov 0  }
 0x2cc   :  { %5387 = vmatprep.subr.bf16.mxu0 %v9609_v35  ;;  %5946 = vmatprep.subr.bf16.mxu1 %v9612_v36  ;;  %v9700_v35 = vld [vmem:[%s12926_s1 + $0x1840] ss:$16 sps:$4 sm:$0xff]   ;;  %v9703_v36 = vld [vmem:[%s12926_s1 + $0x1848] ss:$16 sps:$4 sm:$0xff]  }
 0x2cf   :  { %5388 = vmatpush1.bf16.msra.mxu0 %v9607_v37  ;;  %5947 = vmatpush1.bf16.msra.mxu1 %v9610_v38  ;;  %v9708_v37 = vld [vmem:[%s12926_s1 + $0x1864] ss:$16 sps:$4 sm:$0xff]   ;;  %v9711_v38 = vld [vmem:[%s12926_s1 + $0x186c] ss:$16 sps:$4 sm:$0xff]  }
 0x2d0   :  { %5389 = vmatprep.subr.bf16.mxu0 %v9615_v39  ;;  %5948 = vmatprep.subr.bf16.mxu1 %v9618_v40  ;;  %v9706_v39 = vld [vmem:[%s12926_s1 + $0x1860] ss:$16 sps:$4 sm:$0xff]   ;;  %v9709_v40 = vld [vmem:[%s12926_s1 + $0x1868] ss:$16 sps:$4 sm:$0xff]  }
 0x2d3   :  { %5390 = vmatpush1.bf16.msra.mxu0 %v9613_v41  ;;  %5949 = vmatpush1.bf16.msra.mxu1 %v9616_v42  ;;  %v9715_v41 = vld [vmem:[%s12928_s3 + $0x4] ss:$16 sps:$4 sm:$0xff]   ;;  %v9718_v42 = vld [vmem:[%s12928_s3 + $0xc] ss:$16 sps:$4 sm:$0xff]  }
 0x2d4   :  { %5391 = vmatprep.subr.bf16.mxu0 %v9621_v43  ;;  %5950 = vmatprep.subr.bf16.mxu1 %v9624_v44  ;;  %v9712_v43 = vld [vmem:[%s12927_s0 + $0x60] ss:$100 sps:$4 sm:$0xff]  }
 0x2d5   :  { %v9713_v44 = vld [vmem:[%s12928_s3] ss:$16 sps:$4 sm:$0xff]  }
 0x2d7   :  { %5392 = vmatpush1.bf16.msra.mxu0 %v9619_v45  ;;  %5951 = vmatpush1.bf16.msra.mxu1 %v9622_v46  ;;  %v9716_v45 = vld [vmem:[%s12928_s3 + $0x8] ss:$16 sps:$4 sm:$0xff]   ;;  %v9721_v46 = vld [vmem:[%s12928_s3 + $0x24] ss:$16 sps:$4 sm:$0xff]  }
 0x2d8   :  { %5393 = vmatprep.subr.bf16.mxu0 %v9627_v47  ;;  %5952 = vmatprep.subr.bf16.mxu1 %v9630_v48  ;;  %v9724_v47 = vld [vmem:[%s12928_s3 + $0x2c] ss:$16 sps:$4 sm:$0xff]   ;;  %v9719_v48 = vld [vmem:[%s12928_s3 + $0x20] ss:$16 sps:$4 sm:$0xff]  }
 0x2db   :  { %5394 = vmatpush1.bf16.msra.mxu0 %v9625_v49  ;;  %5953 = vmatpush1.bf16.msra.mxu1 %v9628_v50  ;;  %v9722_v49 = vld [vmem:[%s12928_s3 + $0x28] ss:$16 sps:$4 sm:$0xff]   ;;  %v9727_v50 = vld [vmem:[%s12928_s3 + $0x44] ss:$16 sps:$4 sm:$0xff]  }
 0x2dc   :  { %5395 = vmatprep.subr.bf16.mxu0 %v9633_v51  ;;  %5954 = vmatprep.subr.bf16.mxu1 %v9636_v52  ;;  %v9730_v51 = vld [vmem:[%s12928_s3 + $0x4c] ss:$16 sps:$4 sm:$0xff]   ;;  %v9725_v52 = vld [vmem:[%s12928_s3 + $0x40] ss:$16 sps:$4 sm:$0xff]  }
 0x2df   :  { %5396 = vmatpush1.bf16.msra.mxu0 %v9631_v53  ;;  %5955 = vmatpush1.bf16.msra.mxu1 %v9634_v54  ;;  %v9728_v53 = vld [vmem:[%s12928_s3 + $0x48] ss:$16 sps:$4 sm:$0xff]   ;;  %v9733_v54 = vld [vmem:[%s12928_s3 + $0x64] ss:$16 sps:$4 sm:$0xff]  }
 0x2e0   :  { %5397 = vmatprep.subr.bf16.mxu0 %v9639_v55  ;;  %5956 = vmatprep.subr.bf16.mxu1 %v9642_v56  ;;  %v9736_v55 = vld [vmem:[%s12928_s3 + $0x6c] ss:$16 sps:$4 sm:$0xff]   ;;  %v9731_v56 = vld [vmem:[%s12928_s3 + $0x60] ss:$16 sps:$4 sm:$0xff]  }
 0x2e3   :  { %5398 = vmatpush1.bf16.msra.mxu0 %v9637_v57  ;;  %5957 = vmatpush1.bf16.msra.mxu1 %v9640_v58  ;;  %v9734_v57 = vld [vmem:[%s12928_s3 + $0x68] ss:$16 sps:$4 sm:$0xff]   ;;  %v9739_v58 = vld [vmem:[%s12928_s3 + $0x84] ss:$16 sps:$4 sm:$0xff]  }
 0x2e4   :  { %5399 = vmatprep.subr.bf16.mxu0 %v9645_v59  ;;  %5958 = vmatprep.subr.bf16.mxu1 %v9648_v60  ;;  %v9742_v59 = vld [vmem:[%s12928_s3 + $0x8c] ss:$16 sps:$4 sm:$0xff]   ;;  %v9737_v60 = vld [vmem:[%s12928_s3 + $0x80] ss:$16 sps:$4 sm:$0xff]  }
 0x2e7   :  { %5400 = vmatpush1.bf16.msra.mxu0 %v9643_v61  ;;  %5959 = vmatpush1.bf16.msra.mxu1 %v9646_v62  ;;  %v9740_v61 = vld [vmem:[%s12928_s3 + $0x88] ss:$16 sps:$4 sm:$0xff]   ;;  %v9745_v62 = vld [vmem:[%s12928_s3 + $0xa4] ss:$16 sps:$4 sm:$0xff]  }
 0x2e8   :  { %5401 = vmatprep.subr.bf16.mxu0 %v9651_v63  ;;  %5960 = vmatprep.subr.bf16.mxu1 %v9654_v0  ;;  %v9748_v63 = vld [vmem:[%s12928_s3 + $0xac] ss:$16 sps:$4 sm:$0xff]   ;;  %v9743_v0 = vld [vmem:[%s12928_s3 + $0xa0] ss:$16 sps:$4 sm:$0xff]  }
 0x2eb   :  { %5402 = vmatpush1.bf16.msra.mxu0 %v9649_v1  ;;  %5961 = vmatpush1.bf16.msra.mxu1 %v9652_v2  ;;  %v9746_v1 = vld [vmem:[%s12928_s3 + $0xa8] ss:$16 sps:$4 sm:$0xff]   ;;  %v9751_v2 = vld [vmem:[%s12928_s3 + $0xc4] ss:$16 sps:$4 sm:$0xff]  }
 0x2ec   :  { %5403 = vmatprep.subr.bf16.mxu0 %v9657_v3  ;;  %5962 = vmatprep.subr.bf16.mxu1 %v9660_v4  ;;  %v9754_v3 = vld [vmem:[%s12928_s3 + $0xcc] ss:$16 sps:$4 sm:$0xff]   ;;  %v9749_v4 = vld [vmem:[%s12928_s3 + $0xc0] ss:$16 sps:$4 sm:$0xff]  }
 0x2ef   :  { %5404 = vmatpush1.bf16.msra.mxu0 %v9655_v5  ;;  %5963 = vmatpush1.bf16.msra.mxu1 %v9658_v6  ;;  %v9752_v5 = vld [vmem:[%s12928_s3 + $0xc8] ss:$16 sps:$4 sm:$0xff]   ;;  %v9757_v6 = vld [vmem:[%s12928_s3 + $0xe4] ss:$16 sps:$4 sm:$0xff]  }
 0x2f0   :  { %5405 = vmatprep.subr.bf16.mxu0 %v9663_v7  ;;  %5964 = vmatprep.subr.bf16.mxu1 %v9666_v8  ;;  %v9760_v7 = vld [vmem:[%s12928_s3 + $0xec] ss:$16 sps:$4 sm:$0xff]   ;;  %v9755_v8 = vld [vmem:[%s12928_s3 + $0xe0] ss:$16 sps:$4 sm:$0xff]  }
 0x2f3   :  { %5406 = vmatpush1.bf16.msra.mxu0 %v9661_v9  ;;  %5965 = vmatpush1.bf16.msra.mxu1 %v9664_v10  ;;  %v9758_v9 = vld [vmem:[%s12928_s3 + $0xe8] ss:$16 sps:$4 sm:$0xff]   ;;  %v9763_v10 = vld [vmem:[%s12928_s3 + $0x104] ss:$16 sps:$4 sm:$0xff]  }
 0x2f4   :  { %5407 = vmatprep.subr.bf16.mxu0 %v9669_v11  ;;  %5966 = vmatprep.subr.bf16.mxu1 %v9672_v12  ;;  %v9766_v11 = vld [vmem:[%s12928_s3 + $0x10c] ss:$16 sps:$4 sm:$0xff]   ;;  %v9761_v12 = vld [vmem:[%s12928_s3 + $0x100] ss:$16 sps:$4 sm:$0xff]  }
 0x2f7   :  { %5408 = vmatpush1.bf16.msra.mxu0 %v9667_v13  ;;  %5967 = vmatpush1.bf16.msra.mxu1 %v9670_v14  ;;  %v9764_v13 = vld [vmem:[%s12928_s3 + $0x108] ss:$16 sps:$4 sm:$0xff]   ;;  %v9769_v14 = vld [vmem:[%s12928_s3 + $0x124] ss:$16 sps:$4 sm:$0xff]  }
 0x2f8   :  { %5409 = vmatprep.subr.bf16.mxu0 %v9675_v15  ;;  %5968 = vmatprep.subr.bf16.mxu1 %v9678_v16  ;;  %v9772_v15 = vld [vmem:[%s12928_s3 + $0x12c] ss:$16 sps:$4 sm:$0xff]   ;;  %v9767_v16 = vld [vmem:[%s12928_s3 + $0x120] ss:$16 sps:$4 sm:$0xff]  }
 0x2fb   :  { %5410 = vmatpush1.bf16.msra.mxu0 %v9673_v17  ;;  %5969 = vmatpush1.bf16.msra.mxu1 %v9676_v18  ;;  %v9770_v17 = vld [vmem:[%s12928_s3 + $0x128] ss:$16 sps:$4 sm:$0xff]   ;;  %v9775_v18 = vld [vmem:[%s12928_s3 + $0x144] ss:$16 sps:$4 sm:$0xff]  }
 0x2fc   :  { %5411 = vmatprep.subr.bf16.mxu0 %v9681_v19  ;;  %5970 = vmatprep.subr.bf16.mxu1 %v9684_v20  ;;  %v9778_v19 = vld [vmem:[%s12928_s3 + $0x14c] ss:$16 sps:$4 sm:$0xff]   ;;  %v9773_v20 = vld [vmem:[%s12928_s3 + $0x140] ss:$16 sps:$4 sm:$0xff]  }
 0x2ff   :  { %5412 = vmatpush1.bf16.msra.mxu0 %v9679_v21  ;;  %5971 = vmatpush1.bf16.msra.mxu1 %v9682_v22  ;;  %v9776_v21 = vld [vmem:[%s12928_s3 + $0x148] ss:$16 sps:$4 sm:$0xff]   ;;  %v9781_v22 = vld [vmem:[%s12928_s3 + $0x164] ss:$16 sps:$4 sm:$0xff]  }
 0x300   :  { %5424 = vmatprep.subr.bf16.mxu0 %v9690_v23  ;;  %5983 = vmatprep.subr.bf16.mxu1 %v9693_v24  ;;  %v9784_v23 = vld [vmem:[%s12928_s3 + $0x16c] ss:$16 sps:$4 sm:$0xff]   ;;  %v9779_v24 = vld [vmem:[%s12928_s3 + $0x160] ss:$16 sps:$4 sm:$0xff]  }
 0x302   :  { %5414 = vmatmul.mubr.bf16.vlgmr.msra.gmra.mrb[0].mxu0 %v9685_v25  ;;  %5973 = vmatmul.mubr.bf16.vlgmr.msra.gmra.mrb[0].mxu1 %v9685_v25  ;;  %v9782_v25 = vld [vmem:[%s12928_s3 + $0x168] ss:$16 sps:$4 sm:$0xff]  }
 0x303   :  { %5425 = vmatpush1.bf16.msra.mxu0 %v9688_v26  ;;  %5984 = vmatpush1.bf16.msra.mxu1 %v9691_v27  ;;  %v9787_v26 = vld [vmem:[%s12928_s3 + $0x184] ss:$16 sps:$4 sm:$0xff]   ;;  %v9790_v27 = vld [vmem:[%s12928_s3 + $0x18c] ss:$16 sps:$4 sm:$0xff]  }
 0x304   :  { %5426 = vmatprep.subr.bf16.mxu0 %v9696_v28  ;;  %5985 = vmatprep.subr.bf16.mxu1 %v9699_v29  ;;  %v9785_v28 = vld [vmem:[%s12928_s3 + $0x180] ss:$16 sps:$4 sm:$0xff]   ;;  %v9788_v29 = vld [vmem:[%s12928_s3 + $0x188] ss:$16 sps:$4 sm:$0xff]  }
 0x305   :  { %5456 = vmatprep.mubr.bf16.mxu0 %v9937_v34  ;;  %6015 = vmatprep.mubr.bf16.mxu1 %v9937_v34  ;;  %v9799_v34 = vld [vmem:[%s12928_s3 + $0x1c4] ss:$16 sps:$4 sm:$0xff]  }
 0x307   :  { %5427 = vmatpush1.bf16.msra.mxu0 %v9694_v30  ;;  %5986 = vmatpush1.bf16.msra.mxu1 %v9697_v31  ;;  %v9793_v30 = vld [vmem:[%s12928_s3 + $0x1a4] ss:$16 sps:$4 sm:$0xff]   ;;  %v9796_v31 = vld [vmem:[%s12928_s3 + $0x1ac] ss:$16 sps:$4 sm:$0xff]  }
 0x308   :  { %5428 = vmatprep.subr.bf16.mxu0 %v9702_v32  ;;  %5987 = vmatprep.subr.bf16.mxu1 %v9705_v33  ;;  %v9791_v32 = vld [vmem:[%s12928_s3 + $0x1a0] ss:$16 sps:$4 sm:$0xff]   ;;  %v9794_v33 = vld [vmem:[%s12928_s3 + $0x1a8] ss:$16 sps:$4 sm:$0xff]  }
 0x30b   :  { %5429 = vmatpush1.bf16.msra.mxu0 %v9700_v35  ;;  %5988 = vmatpush1.bf16.msra.mxu1 %v9703_v36  ;;  %v9802_v35 = vld [vmem:[%s12928_s3 + $0x1cc] ss:$16 sps:$4 sm:$0xff]   ;;  %v9797_v36 = vld [vmem:[%s12928_s3 + $0x1c0] ss:$16 sps:$4 sm:$0xff]  }
 0x30c   :  { %5430 = vmatprep.subr.bf16.mxu0 %v9708_v37  ;;  %5989 = vmatprep.subr.bf16.mxu1 %v9711_v38  ;;  %v9800_v37 = vld [vmem:[%s12928_s3 + $0x1c8] ss:$16 sps:$4 sm:$0xff]   ;;  %v9805_v38 = vld [vmem:[%s12928_s3 + $0x1e4] ss:$16 sps:$4 sm:$0xff]  }
 0x30f   :  { %5431 = vmatpush1.bf16.msra.mxu0 %v9706_v39  ;;  %5990 = vmatpush1.bf16.msra.mxu1 %v9709_v40  ;;  %v9808_v39 = vld [vmem:[%s12928_s3 + $0x1ec] ss:$16 sps:$4 sm:$0xff]   ;;  %v9803_v40 = vld [vmem:[%s12928_s3 + $0x1e0] ss:$16 sps:$4 sm:$0xff]  }
 0x310   :  { %6828 = vmatprep.subr.bf16.mxu0 %v9715_v41  ;;  %6914 = vmatprep.subr.bf16.mxu1 %v9718_v42  ;;  %v9806_v41 = vld [vmem:[%s12928_s3 + $0x1e8] ss:$16 sps:$4 sm:$0xff]   ;;  %v9811_v42 = vld [vmem:[%s12928_s3 + $0x204] ss:$16 sps:$4 sm:$0xff]  }
 0x312   :  { %8172 = vmatmul.mubr.msk.bf16.vlgmr.msra.gmra.mrb[0].mxu0 %vm4904_vm0, %v9712_v43  ;;  %8173 = vmatmul.mubr.msk.bf16.vlgmr.msra.gmra.mrb[0].mxu1 %vm4904_vm0, %v9712_v43  ;;  %v9814_v43 = vld [vmem:[%s12928_s3 + $0x20c] ss:$16 sps:$4 sm:$0xff]  }
 0x313   :  { %6829 = vmatpush1.bf16.msra.mxu0 %v9713_v44  ;;  %6915 = vmatpush1.bf16.msra.mxu1 %v9716_v45  ;;  %v839_v44 = vlaneseq }
 0x314   :  { %6830 = vmatprep.subr.bf16.mxu0 %v9721_v46  ;;  %6916 = vmatprep.subr.bf16.mxu1 %v9724_v47 }
 0x315   :  { %v12603_v45 = vshrl.u32 %v839_v44, 7  ;;  %v9848_v44 = vld [vmem:[%s12928_s3 + $0x2c8] ss:$16 sps:$4 sm:$0xff]  }
 0x317   :  { %6831 = vmatpush1.bf16.msra.mxu0 %v9719_v48  ;;  %6917 = vmatpush1.bf16.msra.mxu1 %v9722_v49  ;;  %v841_v46 = vsub.s32 0, %v12603_v45  ;;  %v849_v47 = vsub.s32 2, %v12603_v45  ;;  %v837_v48 = vld [vmem:[%s12930_s2] sm:$0xf]  ;;  %v845_v49 = vsub.s32 1, %v12603_v45 }
 0x318   :  { %6832 = vmatprep.subr.bf16.mxu0 %v9727_v50  ;;  %6918 = vmatprep.subr.bf16.mxu1 %v9730_v51  ;;  %v853_v50 = vsub.s32 3, %v12603_v45 }
 0x319   :  { %v842_v51 = vrot.slane %v837_v48, %v841_v46 }
 0x31b   :  { %6833 = vmatpush1.bf16.msra.mxu0 %v9725_v52  ;;  %6919 = vmatpush1.bf16.msra.mxu1 %v9728_v53  ;;  %v850_v52 = vrot.slane %v837_v48, %v849_v47  ;;  %v846_v53 = vrot.slane %v837_v48, %v845_v49 }
 0x31c   :  { %6834 = vmatprep.subr.bf16.mxu0 %v9733_v54  ;;  %6920 = vmatprep.subr.bf16.mxu1 %v9736_v55  ;;  %v854_v54 = vrot.slane %v837_v48, %v853_v50  ;;  %v9853_v48 = vld [vmem:[%s12928_s3 + $0x2e4] ss:$16 sps:$4 sm:$0xff]  }
 0x31f   :  { %6835 = vmatpush1.bf16.msra.mxu0 %v9731_v56  ;;  %6921 = vmatpush1.bf16.msra.mxu1 %v9734_v57 }
 0x320   :  { %6836 = vmatprep.subr.bf16.mxu0 %v9739_v58  ;;  %6922 = vmatprep.subr.bf16.mxu1 %v9742_v59 }
 0x323   :  { %6837 = vmatpush1.bf16.msra.mxu0 %v9737_v60  ;;  %6923 = vmatpush1.bf16.msra.mxu1 %v9740_v61 }
 0x324   :  { %6838 = vmatprep.subr.bf16.mxu0 %v9745_v62  ;;  %6924 = vmatprep.subr.bf16.mxu1 %v9748_v63 }
 0x327   :  { %6839 = vmatpush1.bf16.msra.mxu0 %v9743_v0  ;;  %6925 = vmatpush1.bf16.msra.mxu1 %v9746_v1 }
 0x328   :  { %6840 = vmatprep.subr.bf16.mxu0 %v9751_v2  ;;  %6926 = vmatprep.subr.bf16.mxu1 %v9754_v3 }
 0x32b   :  { %6841 = vmatpush1.bf16.msra.mxu0 %v9749_v4  ;;  %6927 = vmatpush1.bf16.msra.mxu1 %v9752_v5 }
 0x32c   :  { %6842 = vmatprep.subr.bf16.mxu0 %v9757_v6  ;;  %6928 = vmatprep.subr.bf16.mxu1 %v9760_v7 }
 0x32f   :  { %6843 = vmatpush1.bf16.msra.mxu0 %v9755_v8  ;;  %6929 = vmatpush1.bf16.msra.mxu1 %v9758_v9 }
 0x330   :  { %6844 = vmatprep.subr.bf16.mxu0 %v9763_v10  ;;  %6930 = vmatprep.subr.bf16.mxu1 %v9766_v11 }
 0x333   :  { %6845 = vmatpush1.bf16.msra.mxu0 %v9761_v12  ;;  %6931 = vmatpush1.bf16.msra.mxu1 %v9764_v13 }
 0x334   :  { %6846 = vmatprep.subr.bf16.mxu0 %v9769_v14  ;;  %6932 = vmatprep.subr.bf16.mxu1 %v9772_v15 }
 0x337   :  { %6847 = vmatpush1.bf16.msra.mxu0 %v9767_v16  ;;  %6933 = vmatpush1.bf16.msra.mxu1 %v9770_v17 }
 0x338   :  { %6848 = vmatprep.subr.bf16.mxu0 %v9775_v18  ;;  %6934 = vmatprep.subr.bf16.mxu1 %v9778_v19  ;;  %v9809_v19 = vld [vmem:[%s12928_s3 + $0x200] ss:$16 sps:$4 sm:$0xff]  }
 0x33b   :  { %6849 = vmatpush1.bf16.msra.mxu0 %v9773_v20  ;;  %6935 = vmatpush1.bf16.msra.mxu1 %v9776_v21  ;;  %v9812_v20 = vld [vmem:[%s12928_s3 + $0x208] ss:$16 sps:$4 sm:$0xff]   ;;  %v9817_v21 = vld [vmem:[%s12928_s3 + $0x224] ss:$16 sps:$4 sm:$0xff]  }
 0x33c   :  { %6850 = vmatprep.subr.bf16.mxu0 %v9781_v22  ;;  %6936 = vmatprep.subr.bf16.mxu1 %v9784_v23  ;;  %v9820_v22 = vld [vmem:[%s12928_s3 + $0x22c] ss:$16 sps:$4 sm:$0xff]   ;;  %v9815_v23 = vld [vmem:[%s12928_s3 + $0x220] ss:$16 sps:$4 sm:$0xff]  }
 0x33f   :  { %6851 = vmatpush1.bf16.msra.mxu0 %v9779_v24  ;;  %6937 = vmatpush1.bf16.msra.mxu1 %v9782_v25  ;;  %v9818_v24 = vld [vmem:[%s12928_s3 + $0x228] ss:$16 sps:$4 sm:$0xff]   ;;  %v9823_v25 = vld [vmem:[%s12928_s3 + $0x244] ss:$16 sps:$4 sm:$0xff]  }
 0x340   :  { %6852 = vmatprep.subr.bf16.mxu0 %v9787_v26  ;;  %6938 = vmatprep.subr.bf16.mxu1 %v9790_v27  ;;  %v9826_v26 = vld [vmem:[%s12928_s3 + $0x24c] ss:$16 sps:$4 sm:$0xff]   ;;  %v9821_v27 = vld [vmem:[%s12928_s3 + $0x240] ss:$16 sps:$4 sm:$0xff]  }
 0x343   :  { %6853 = vmatpush1.bf16.msra.mxu0 %v9785_v28  ;;  %6939 = vmatpush1.bf16.msra.mxu1 %v9788_v29  ;;  %v9824_v28 = vld [vmem:[%s12928_s3 + $0x248] ss:$16 sps:$4 sm:$0xff]   ;;  %v9829_v29 = vld [vmem:[%s12928_s3 + $0x264] ss:$16 sps:$4 sm:$0xff]  }
 0x344   :  { %6854 = vmatprep.subr.bf16.mxu0 %v9793_v30  ;;  %6940 = vmatprep.subr.bf16.mxu1 %v9796_v31  ;;  %v9832_v30 = vld [vmem:[%s12928_s3 + $0x26c] ss:$16 sps:$4 sm:$0xff]   ;;  %v9827_v31 = vld [vmem:[%s12928_s3 + $0x260] ss:$16 sps:$4 sm:$0xff]  }
 0x347   :  { %6855 = vmatpush1.bf16.msra.mxu0 %v9791_v32  ;;  %6941 = vmatpush1.bf16.msra.mxu1 %v9794_v33  ;;  %v9830_v32 = vld [vmem:[%s12928_s3 + $0x268] ss:$16 sps:$4 sm:$0xff]   ;;  %v9835_v33 = vld [vmem:[%s12928_s3 + $0x284] ss:$16 sps:$4 sm:$0xff]  }
 0x348   :  { %6856 = vmatprep.subr.bf16.mxu0 %v9799_v34  ;;  %6942 = vmatprep.subr.bf16.mxu1 %v9802_v35  ;;  %v9838_v34 = vld [vmem:[%s12928_s3 + $0x28c] ss:$16 sps:$4 sm:$0xff]   ;;  %v9833_v35 = vld [vmem:[%s12928_s3 + $0x280] ss:$16 sps:$4 sm:$0xff]  }
 0x34b   :  { %6857 = vmatpush1.bf16.msra.mxu0 %v9797_v36  ;;  %6943 = vmatpush1.bf16.msra.mxu1 %v9800_v37  ;;  %v9836_v36 = vld [vmem:[%s12928_s3 + $0x288] ss:$16 sps:$4 sm:$0xff]   ;;  %v9841_v37 = vld [vmem:[%s12928_s3 + $0x2a4] ss:$16 sps:$4 sm:$0xff]  }
 0x34c   :  { %6858 = vmatprep.subr.bf16.mxu0 %v9805_v38  ;;  %6944 = vmatprep.subr.bf16.mxu1 %v9808_v39  ;;  %v9844_v38 = vld [vmem:[%s12928_s3 + $0x2ac] ss:$16 sps:$4 sm:$0xff]   ;;  %v9839_v39 = vld [vmem:[%s12928_s3 + $0x2a0] ss:$16 sps:$4 sm:$0xff]  }
 0x34f   :  { %6859 = vmatpush1.bf16.msra.mxu0 %v9803_v40  ;;  %6945 = vmatpush1.bf16.msra.mxu1 %v9806_v41  ;;  %v9842_v40 = vld [vmem:[%s12928_s3 + $0x2a8] ss:$16 sps:$4 sm:$0xff]   ;;  %v9847_v41 = vld [vmem:[%s12928_s3 + $0x2c4] ss:$16 sps:$4 sm:$0xff]  }
 0x350   :  { %6871 = vmatprep.subr.bf16.mxu0 %v9811_v42  ;;  %6957 = vmatprep.subr.bf16.mxu1 %v9814_v43  ;;  %v9850_v42 = vld [vmem:[%s12928_s3 + $0x2cc] ss:$16 sps:$4 sm:$0xff]   ;;  %v9845_v43 = vld [vmem:[%s12928_s3 + $0x2c0] ss:$16 sps:$4 sm:$0xff]  }
 0x3e5   :  { %v5458_v55 = vpop.f32.mrb[0].mxu0  ;;  %v6017_v56 = vpop.f32.mrb[0].mxu1 }
 0x3e6   :  { %v8379_v57 = vadd.f32 %v5458_v55, %v842_v51  ;;  %v8383_v58 = vadd.f32 %v6017_v56, %v850_v52  ;;  %v5460_v59 = vpop.f32.mrb[1].mxu0  ;;  %v6019_v60 = vpop.f32.mrb[1].mxu1  ;;  %v9862_v55 = vld [vmem:[%s12928_s3 + $0x30c] ss:$16 sps:$4 sm:$0xff]   ;;  %v9857_v56 = vld [vmem:[%s12928_s3 + $0x300] ss:$16 sps:$4 sm:$0xff]  }
 0x3e7   :  { %v8380_v61 = vadd.f32 %v5460_v59, %v846_v53  ;;  %v8384_v62 = vadd.f32 %v6019_v60, %v854_v54  ;;  %v5462_v63 = vpop.f32.mrb[2].mxu0  ;;  %v6021_v0 = vpop.f32.mrb[2].mxu1  ;;  %v9868_v59 = vld [vmem:[%s12928_s3 + $0x32c] ss:$16 sps:$4 sm:$0xff]   ;;  %v9863_v60 = vld [vmem:[%s12928_s3 + $0x320] ss:$16 sps:$4 sm:$0xff]  }
 0x3e8   :  { %v8381_v1 = vadd.f32 %v5462_v63, %v842_v51  ;;  %v8385_v2 = vadd.f32 %v6021_v0, %v850_v52  ;;  %v5464_v3 = vpop.f32.mrb[3].mxu0  ;;  %v6023_v4 = vpop.f32.mrb[3].mxu1  ;;  %v6026_v7 = vmax.f32 %v8379_v57, 0.0  ;;  %v6028_v8 = vmax.f32 %v8383_v58, 0.0  ;;  %v9856_v51 = vld [vmem:[%s12928_s3 + $0x2ec] ss:$16 sps:$4 sm:$0xff]  }
 0x3e9   :  { %v8382_v5 = vadd.f32 %v5464_v3, %v846_v53  ;;  %v8386_v6 = vadd.f32 %v6023_v4, %v854_v54  ;;  %v6027_v11 = vmax.f32 %v8380_v61, 0.0  ;;  %v6029_v12 = vmax.f32 %v8384_v62, 0.0  ;;  %v9851_v52 = vld [vmem:[%s12928_s3 + $0x2e0] ss:$16 sps:$4 sm:$0xff]   ;;  %v9854_v53 = vld [vmem:[%s12928_s3 + $0x2e8] ss:$16 sps:$4 sm:$0xff]  }
 0x3ea   :  { %v6030_v9 = vmax.f32 %v8381_v1, 0.0  ;;  %v6032_v10 = vmax.f32 %v8385_v2, 0.0  ;;  %v9859_v54 = vld [vmem:[%s12928_s3 + $0x304] ss:$16 sps:$4 sm:$0xff]   ;;  %v9860_v57 = vld [vmem:[%s12928_s3 + $0x308] ss:$16 sps:$4 sm:$0xff]  }
 0x3eb   :  { %v6031_v13 = vmax.f32 %v8382_v5, 0.0  ;;  %v6033_v14 = vmax.f32 %v8386_v6, 0.0  ;;  %v9865_v58 = vld [vmem:[%s12928_s3 + $0x324] ss:$16 sps:$4 sm:$0xff]   ;;  %v9866_v61 = vld [vmem:[%s12928_s3 + $0x328] ss:$16 sps:$4 sm:$0xff]  }
 0x3ec   :  { %v6034_v15 = vpack.c.bf16 %v6030_v9, %v6026_v7  ;;  %v12620_v16 = vpack.c.bf16 %v6032_v10, %v6028_v8  ;;  %v9871_v62 = vld [vmem:[%s12928_s3 + $0x344] ss:$16 sps:$4 sm:$0xff]   ;;  %v9874_v63 = vld [vmem:[%s12928_s3 + $0x34c] ss:$16 sps:$4 sm:$0xff]   ;;  %v9869_v0 = vld [vmem:[%s12928_s3 + $0x340] ss:$16 sps:$4 sm:$0xff]  }
 0x3ed   :  { %v6035_v17 = vpack.c.bf16 %v6031_v13, %v6027_v11  ;;  %v6037_v18 = vpack.c.bf16 %v6033_v14, %v6029_v12  ;;  %v9872_v1 = vld [vmem:[%s12928_s3 + $0x348] ss:$16 sps:$4 sm:$0xff]   ;;  %v9877_v2 = vld [vmem:[%s12928_s3 + $0x364] ss:$16 sps:$4 sm:$0xff]   ;;  %v9880_v3 = vld [vmem:[%s12928_s3 + $0x36c] ss:$16 sps:$4 sm:$0xff]  }
 0x3ee   :  { %v9875_v4 = vld [vmem:[%s12928_s3 + $0x360] ss:$16 sps:$4 sm:$0xff]   ;;  %v9878_v5 = vld [vmem:[%s12928_s3 + $0x368] ss:$16 sps:$4 sm:$0xff]   ;;  %v9883_v6 = vld [vmem:[%s12928_s3 + $0x384] ss:$16 sps:$4 sm:$0xff]  }
 0x3ef   :  { %6860 = vmatprep.mubr.bf16.mxu0 %v6035_v17  ;;  %6946 = vmatprep.mubr.bf16.mxu1 %v6035_v17  ;;  %v9886_v7 = vld [vmem:[%s12928_s3 + $0x38c] ss:$16 sps:$4 sm:$0xff]   ;;  %v9881_v8 = vld [vmem:[%s12928_s3 + $0x380] ss:$16 sps:$4 sm:$0xff]   ;;  %v9884_v9 = vld [vmem:[%s12928_s3 + $0x388] ss:$16 sps:$4 sm:$0xff]  }
 0x3f0   :  { %6861 = vmatmul.mubr.bf16.vlgmr.msra.gmra.mrb[4].mxu0 %v6034_v15  ;;  %6947 = vmatmul.mubr.bf16.vlgmr.msra.gmra.mrb[4].mxu1 %v6034_v15  ;;  %v9889_v10 = vld [vmem:[%s12928_s3 + $0x3a4] ss:$16 sps:$4 sm:$0xff]   ;;  %v9892_v11 = vld [vmem:[%s12928_s3 + $0x3ac] ss:$16 sps:$4 sm:$0xff]   ;;  %v9887_v12 = vld [vmem:[%s12928_s3 + $0x3a0] ss:$16 sps:$4 sm:$0xff]  }
 0x3f1   :  { %6872 = vmatpush1.bf16.msra.mxu0 %v9809_v19  ;;  %6958 = vmatpush1.bf16.msra.mxu1 %v9812_v20  ;;  %v9890_v13 = vld [vmem:[%s12928_s3 + $0x3a8] ss:$16 sps:$4 sm:$0xff]   ;;  %v9895_v14 = vld [vmem:[%s12928_s3 + $0x3c4] ss:$16 sps:$4 sm:$0xff]   ;;  %v9898_v15 = vld [vmem:[%s12928_s3 + $0x3cc] ss:$16 sps:$4 sm:$0xff]  }
 0x3f2   :  { %6903 = vmatprep.mubr.bf16.mxu0 %v6037_v18  ;;  %6989 = vmatprep.mubr.bf16.mxu1 %v6037_v18  ;;  %v9893_v17 = vld [vmem:[%s12928_s3 + $0x3c0] ss:$16 sps:$4 sm:$0xff]   ;;  %v9896_v18 = vld [vmem:[%s12928_s3 + $0x3c8] ss:$16 sps:$4 sm:$0xff]   ;;  %v9901_v19 = vld [vmem:[%s12928_s3 + $0x3e4] ss:$16 sps:$4 sm:$0xff]  }
 0x3f3   :  { %6873 = vmatprep.subr.bf16.mxu0 %v9817_v21  ;;  %6959 = vmatprep.subr.bf16.mxu1 %v9820_v22  ;;  %v9904_v20 = vld [vmem:[%s12928_s3 + $0x3ec] ss:$16 sps:$4 sm:$0xff]   ;;  %v9899_v21 = vld [vmem:[%s12928_s3 + $0x3e0] ss:$16 sps:$4 sm:$0xff]   ;;  %v9902_v22 = vld [vmem:[%s12928_s3 + $0x3e8] ss:$16 sps:$4 sm:$0xff]  }
 0x3f5   :  { %6874 = vmatpush1.bf16.msra.mxu0 %v9815_v23  ;;  %6960 = vmatpush1.bf16.msra.mxu1 %v9818_v24  ;;  %v9905_v23 = vld [vmem:[%s12929_s5 + $0x40] sm:$0xff]  }
 0x3f6   :  { %6875 = vmatprep.subr.bf16.mxu0 %v9823_v25  ;;  %6961 = vmatprep.subr.bf16.mxu1 %v9826_v26  ;;  %v9906_v24 = vld [vmem:[%s12929_s5 + $0xc0] sm:$0xff]  }
 0x3f7   :  { %v9907_v25 = vld [vmem:[%s12929_s5] sm:$0xff]  }
 0x3f8   :  { %v9908_v26 = vld [vmem:[%s12929_s5 + $0x80] sm:$0xff]  }
 0x3f9   :  { %6876 = vmatpush1.bf16.msra.mxu0 %v9821_v27  ;;  %6962 = vmatpush1.bf16.msra.mxu1 %v9824_v28  ;;  %v9909_v27 = vld [vmem:[%s12929_s5 + $0x48] sm:$0xff]  }
 0x3fa   :  { %6877 = vmatprep.subr.bf16.mxu0 %v9829_v29  ;;  %6963 = vmatprep.subr.bf16.mxu1 %v9832_v30  ;;  %v9910_v28 = vld [vmem:[%s12929_s5 + $0xc8] sm:$0xff]  }
 0x3fb   :  { %v9911_v29 = vld [vmem:[%s12929_s5 + $0x8] sm:$0xff]  }
 0x3fc   :  { %v9912_v30 = vld [vmem:[%s12929_s5 + $0x88] sm:$0xff]  }
 0x3fd   :  { %6878 = vmatpush1.bf16.msra.mxu0 %v9827_v31  ;;  %6964 = vmatpush1.bf16.msra.mxu1 %v9830_v32  ;;  %v9913_v31 = vld [vmem:[%s12929_s5 + $0x50] sm:$0xff]  }
 0x3fe   :  { %6879 = vmatprep.subr.bf16.mxu0 %v9835_v33  ;;  %6965 = vmatprep.subr.bf16.mxu1 %v9838_v34  ;;  %v9915_v32 = vld [vmem:[%s12929_s5 + $0x10] sm:$0xff]   ;;  %v9917_v34 = vld [vmem:[%s12929_s5 + $0x58] sm:$0xff]  }
 0x3ff   :  { %v9916_v33 = vld [vmem:[%s12929_s5 + $0x90] sm:$0xff]  }
 0x401   :  { %6880 = vmatpush1.bf16.msra.mxu0 %v9833_v35  ;;  %6966 = vmatpush1.bf16.msra.mxu1 %v9836_v36  ;;  %v9918_v35 = vld [vmem:[%s12929_s5 + $0xd8] sm:$0xff]  }
 0x402   :  { %6881 = vmatprep.subr.bf16.mxu0 %v9841_v37  ;;  %6967 = vmatprep.subr.bf16.mxu1 %v9844_v38  ;;  %v9919_v36 = vld [vmem:[%s12929_s5 + $0x18] sm:$0xff]   ;;  %v9921_v38 = vld [vmem:[%s12929_s5 + $0x60] sm:$0xff]  }
 0x403   :  { %v9920_v37 = vld [vmem:[%s12929_s5 + $0x98] sm:$0xff]  }
 0x405   :  { %6882 = vmatpush1.bf16.msra.mxu0 %v9839_v39  ;;  %6968 = vmatpush1.bf16.msra.mxu1 %v9842_v40  ;;  %v9922_v39 = vld [vmem:[%s12929_s5 + $0xe0] sm:$0xff]  }
 0x406   :  { %6883 = vmatprep.subr.bf16.mxu0 %v9847_v41  ;;  %6969 = vmatprep.subr.bf16.mxu1 %v9850_v42  ;;  %v9923_v40 = vld [vmem:[%s12929_s5 + $0x20] sm:$0xff]   ;;  %v9925_v42 = vld [vmem:[%s12929_s5 + $0x68] sm:$0xff]  }
 0x407   :  { %v9924_v41 = vld [vmem:[%s12929_s5 + $0xa0] sm:$0xff]  }
 0x409   :  { %6884 = vmatpush1.bf16.msra.mxu0 %v9845_v43  ;;  %6970 = vmatpush1.bf16.msra.mxu1 %v9848_v44  ;;  %v9926_v43 = vld [vmem:[%s12929_s5 + $0xe8] sm:$0xff]  }
 0x40a   :  { %6885 = vmatprep.subr.bf16.mxu0 %v9853_v48  ;;  %6971 = vmatprep.subr.bf16.mxu1 %v9856_v51  ;;  %v9927_v44 = vld [vmem:[%s12929_s5 + $0x28] sm:$0xff]   ;;  %v9929_v51 = vld [vmem:[%s12929_s5 + $0x70] sm:$0xff]  }
 0x40b   :  { %v9928_v48 = vld [vmem:[%s12929_s5 + $0xa8] sm:$0xff]  }
 0x40d   :  { %6886 = vmatpush1.bf16.msra.mxu0 %v9851_v52  ;;  %6972 = vmatpush1.bf16.msra.mxu1 %v9854_v53  ;;  %v9930_v52 = vld [vmem:[%s12929_s5 + $0xf0] sm:$0xff]  }
 0x40e   :  { %6887 = vmatprep.subr.bf16.mxu0 %v9859_v54  ;;  %6973 = vmatprep.subr.bf16.mxu1 %v9862_v55  ;;  %v9931_v53 = vld [vmem:[%s12929_s5 + $0x30] sm:$0xff]   ;;  %v9933_v55 = vld [vmem:[%s12929_s5 + $0x78] sm:$0xff]  }
 0x40f   :  { %v9932_v54 = vld [vmem:[%s12929_s5 + $0xb0] sm:$0xff]  }
 0x411   :  { %6888 = vmatpush1.bf16.msra.mxu0 %v9857_v56  ;;  %6974 = vmatpush1.bf16.msra.mxu1 %v9860_v57  ;;  %v9934_v56 = vld [vmem:[%s12929_s5 + $0xf8] sm:$0xff]  }
 0x412   :  { %6889 = vmatprep.subr.bf16.mxu0 %v9865_v58  ;;  %6975 = vmatprep.subr.bf16.mxu1 %v9868_v59  ;;  %v9935_v57 = vld [vmem:[%s12929_s5 + $0x38] sm:$0xff]   ;;  %v6166_v59 = vld [vmem:[%s12931_s4] sm:$0xf] }
 0x413   :  { %v9936_v58 = vld [vmem:[%s12929_s5 + $0xb8] sm:$0xff]  }
 0x415   :  { %6890 = vmatpush1.bf16.msra.mxu0 %v9863_v60  ;;  %6976 = vmatpush1.bf16.msra.mxu1 %v9866_v61  ;;  %v6171_v60 = vrot.slane %v6166_v59, %v841_v46  ;;  %v6179_v61 = vrot.slane %v6166_v59, %v849_v47 }
 0x416   :  { %6891 = vmatprep.subr.bf16.mxu0 %v9871_v62  ;;  %6977 = vmatprep.subr.bf16.mxu1 %v9874_v63  ;;  %v6175_v62 = vrot.slane %v6166_v59, %v845_v49  ;;  %v6183_v63 = vrot.slane %v6166_v59, %v853_v50 }
 0x419   :  { %6892 = vmatpush1.bf16.msra.mxu0 %v9869_v0  ;;  %6978 = vmatpush1.bf16.msra.mxu1 %v9872_v1 }
 0x41a   :  { %6893 = vmatprep.subr.bf16.mxu0 %v9877_v2  ;;  %6979 = vmatprep.subr.bf16.mxu1 %v9880_v3 }
 0x41d   :  { %6894 = vmatpush1.bf16.msra.mxu0 %v9875_v4  ;;  %6980 = vmatpush1.bf16.msra.mxu1 %v9878_v5 }
 0x41e   :  { %6895 = vmatprep.subr.bf16.mxu0 %v9883_v6  ;;  %6981 = vmatprep.subr.bf16.mxu1 %v9886_v7 }
 0x421   :  { %6896 = vmatpush1.bf16.msra.mxu0 %v9881_v8  ;;  %6982 = vmatpush1.bf16.msra.mxu1 %v9884_v9 }
 0x422   :  { %6897 = vmatprep.subr.bf16.mxu0 %v9889_v10  ;;  %6983 = vmatprep.subr.bf16.mxu1 %v9892_v11 }
 0x425   :  { %6898 = vmatpush1.bf16.msra.mxu0 %v9887_v12  ;;  %6984 = vmatpush1.bf16.msra.mxu1 %v9890_v13 }
 0x426   :  { %6899 = vmatprep.subr.bf16.mxu0 %v9895_v14  ;;  %6985 = vmatprep.subr.bf16.mxu1 %v9898_v15 }
 0x429   :  { %6900 = vmatpush1.bf16.msra.mxu0 %v9893_v17  ;;  %6986 = vmatpush1.bf16.msra.mxu1 %v9896_v18 }
 0x42a   :  { %6901 = vmatprep.subr.bf16.mxu0 %v9901_v19  ;;  %6987 = vmatprep.subr.bf16.mxu1 %v9904_v20 }
 0x42d   :  { %6902 = vmatpush1.bf16.msra.mxu0 %v9899_v21  ;;  %6988 = vmatpush1.bf16.msra.mxu1 %v9902_v22 }
 0x42e   :  { %8335 = vmatprep.subr.bf16.mxu0 %v9905_v23  ;;  %8357 = vmatprep.subr.bf16.mxu1 %v9906_v24 }
 0x430   :  { %6904 = vmatmul.mubr.bf16.vlgmr.msra.gmra.mrb[4].mxu0 %v12620_v16  ;;  %6990 = vmatmul.mubr.bf16.vlgmr.msra.gmra.mrb[4].mxu1 %v12620_v16  ;;  %v9914_v16 = vld [vmem:[%s12929_s5 + $0xd0] sm:$0xff]  }
 0x431   :  { %8336 = vmatpush3.bf16.msra.mxu0 %v9907_v25  ;;  %8358 = vmatpush3.bf16.msra.mxu1 %v9908_v26  ;;  %v8302_v26 = vld [vmem:[%s12932_s6] ss:$0 sm:$0xff] }
 0x432   :  { %8337 = vmatprep.subr.bf16.mxu0 %v9909_v27  ;;  %8359 = vmatprep.subr.bf16.mxu1 %v9910_v28 }
 0x435   :  { %8338 = vmatpush3.bf16.msra.mxu0 %v9911_v29  ;;  %8360 = vmatpush3.bf16.msra.mxu1 %v9912_v30 }
 0x436   :  { %8339 = vmatprep.subr.bf16.mxu0 %v9913_v31  ;;  %8361 = vmatprep.subr.bf16.mxu1 %v9914_v16 }
 0x439   :  { %8340 = vmatpush3.bf16.msra.mxu0 %v9915_v32  ;;  %8362 = vmatpush3.bf16.msra.mxu1 %v9916_v33 }
 0x43a   :  { %8341 = vmatprep.subr.bf16.mxu0 %v9917_v34  ;;  %8363 = vmatprep.subr.bf16.mxu1 %v9918_v35 }
 0x43d   :  { %8342 = vmatpush3.bf16.msra.mxu0 %v9919_v36  ;;  %8364 = vmatpush3.bf16.msra.mxu1 %v9920_v37 }
 0x43e   :  { %8343 = vmatprep.subr.bf16.mxu0 %v9921_v38  ;;  %8365 = vmatprep.subr.bf16.mxu1 %v9922_v39 }
 0x441   :  { %8344 = vmatpush3.bf16.msra.mxu0 %v9923_v40  ;;  %8366 = vmatpush3.bf16.msra.mxu1 %v9924_v41 }
 0x442   :  { %8345 = vmatprep.subr.bf16.mxu0 %v9925_v42  ;;  %8367 = vmatprep.subr.bf16.mxu1 %v9926_v43 }
 0x445   :  { %8346 = vmatpush3.bf16.msra.mxu0 %v9927_v44  ;;  %8368 = vmatpush3.bf16.msra.mxu1 %v9928_v48 }
 0x446   :  { %8347 = vmatprep.subr.bf16.mxu0 %v9929_v51  ;;  %8369 = vmatprep.subr.bf16.mxu1 %v9930_v52 }
 0x449   :  { %8348 = vmatpush3.bf16.msra.mxu0 %v9931_v53  ;;  %8370 = vmatpush3.bf16.msra.mxu1 %v9932_v54 }
 0x44a   :  { %8349 = vmatprep.subr.bf16.mxu0 %v9933_v55  ;;  %8371 = vmatprep.subr.bf16.mxu1 %v9934_v56 }
 0x44d   :  { %8350 = vmatpush3.bf16.msra.mxu0 %v9935_v57  ;;  %8372 = vmatpush3.bf16.msra.mxu1 %v9936_v58 }
 0x503   :  { %v6905_v0 = vpop.f32.mrb[4].mxu0  ;;  %v6991_v1 = vpop.f32.mrb[4].mxu1 }
 0x504   :  { %v8387_v2 = vadd.f32 %v6905_v0, %v6171_v60  ;;  %v8391_v3 = vadd.f32 %v6991_v1, %v6179_v61  ;;  %v6907_v4 = vpop.f32.mrb[5].mxu0  ;;  %v6993_v5 = vpop.f32.mrb[5].mxu1 }
 0x505   :  { %v8388_v6 = vadd.f32 %v6907_v4, %v6175_v62  ;;  %v8392_v7 = vadd.f32 %v6993_v5, %v6183_v63  ;;  %v6909_v8 = vpop.f32.mrb[6].mxu0  ;;  %v6995_v9 = vpop.f32.mrb[6].mxu1 }
 0x506   :  { %v8389_v46 = vadd.f32 %v6909_v8, %v6171_v60  ;;  %v8393_v10 = vadd.f32 %v6995_v9, %v6179_v61  ;;  %v6911_v11 = vpop.f32.mrb[7].mxu0  ;;  %v6997_v47 = vpop.f32.mrb[7].mxu1  ;;  %v7000_v49 = vmax.f32 %v8387_v2, 0.0  ;;  %v7002_v14 = vmax.f32 %v8391_v3, 0.0 }
 0x507   :  { %v8390_v12 = vadd.f32 %v6911_v11, %v6175_v62  ;;  %v8394_v13 = vadd.f32 %v6997_v47, %v6183_v63  ;;  %v7001_v15 = vmax.f32 %v8388_v6, 0.0  ;;  %v7003_v17 = vmax.f32 %v8392_v7, 0.0 }
 0x508   :  { %v7004_v45 = vmax.f32 %v8389_v46, 0.0  ;;  %v7006_v50 = vmax.f32 %v8393_v10, 0.0 }
 0x509   :  { %v7005_v18 = vmax.f32 %v8390_v12, 0.0  ;;  %v7007_v19 = vmax.f32 %v8394_v13, 0.0 }
 0x50a   :  { %v7008_v20 = vpack.c.bf16 %v7004_v45, %v7000_v49  ;;  %v7010_v21 = vpack.c.bf16 %v7006_v50, %v7002_v14 }
 0x50b   :  { %v7009_v22 = vpack.c.bf16 %v7005_v18, %v7001_v15  ;;  %v7011_v23 = vpack.c.bf16 %v7007_v19, %v7003_v17 }
 0x50d   :  { %7307 = vmatprep.mubr.bf16.mxu0 %v7009_v22  ;;  %7348 = vmatprep.mubr.bf16.mxu1 %v7011_v23 }
 0x50e   :  { %7308 = vmatmul.mubr.bf16.vlgmr.msra.gmra.mrb[8].mxu0 %v7008_v20  ;;  %7349 = vmatmul.mubr.bf16.vlgmr.msra.gmra.mrb[8].mxu1 %v7010_v21 }
 0x5e1   :  { %v8351_v24 = vpop.f32.mrb[8].mxu0  ;;  %v8373_v25 = vpop.f32.mrb[8].mxu1 }
 0x5e2   :  { %v8352_v27 = vpop.f32.mrb[9].mxu0  ;;  %v8374_v28 = vpop.f32.mrb[9].mxu1 }
 0x5e3   :  { %v8353_v29 = vadd.f32 %v8352_v27, %v8351_v24  ;;  %v8375_v30 = vadd.f32 %v8374_v28, %v8373_v25  ;;  %v8354_v31 = vpop.f32.mrb[10].mxu0  ;;  %v8376_v16 = vpop.f32.mrb[10].mxu1 }
 0x5e4   :  { %v8355_v32 = vpop.f32.mrb[11].mxu0  ;;  %v8377_v33 = vpop.f32.mrb[11].mxu1 }
 0x5e5   :  { %v7310_v34 = vadd.f32 %v8353_v29, %v8302_v26  ;;  %v8356_v35 = vadd.f32 %v8355_v32, %v8354_v31  ;;  %v8378_v36 = vadd.f32 %v8377_v33, %v8376_v16 }
 0x5e7   :  { %v7351_v37 = vadd.f32 %v8375_v30, %v7310_v34  ;;  %v7313_v38 = vadd.f32 %v8356_v35, %v8302_v26 }
 0x5e9   :  { %7357 = vst [vmem:[%s12933_s7] sm:$0xff] %v7351_v37  ;;  %v7354_v39 = vadd.f32 %v8378_v36, %v7313_v38 }
 0x5eb   :  { %7358 = vst [vmem:[%s12933_s7 + $0x8] sm:$0xff] %v7354_v39 }

</bundles_post_ra>
